<compile_context>
chip_gen: v5e
topology: v5e:2x2
jax: 0.10.0
libtpu: 0.0.40
codegen_flags: <defaults>
</compile_context>

<pallas_src>
import functools

import numpy as np
import jax
import jax.numpy as jnp
from jax import lax
from jax.experimental import pallas as pl
from jax.experimental.pallas import tpu as pltpu

KSIZE = 5
PAD = KSIZE // 2
GN_GROUPS = 4
GN_EPS = 1e-5
LANE = 128


def _round_up(x, m):
    return ((x + m - 1) // m) * m


# ----------------------------------------------------------------------------
# In-kernel helpers.
# ----------------------------------------------------------------------------
def _group_norm_cm(y, gamma, beta, proj, inv_hw):
    """GroupNorm on a channels-major activation y: (C, HW).

    Lane reduction first, then the (C, C) same-group projector
    (indicator / group_size, no H*W baked in) acts on the tiny (C, 1)
    statistics.  Two-pass (centered) variance.
    """
    s = jnp.sum(y, axis=1, keepdims=True) * inv_hw                       # (C,1)
    mean_c = jnp.dot(proj, s, preferred_element_type=jnp.float32)        # (C,1)
    yc = y - mean_c
    s2 = jnp.sum(yc * yc, axis=1, keepdims=True) * inv_hw                # (C,1)
    var_c = jnp.dot(proj, s2, preferred_element_type=jnp.float32)        # (C,1)
    return yc * lax.rsqrt(var_c + GN_EPS) * gamma + beta


# ----------------------------------------------------------------------------
# Fused ST-LSTM cell kernel: one grid step == one batch sample.
# ----------------------------------------------------------------------------
def _st_lstm_kernel(x_ref, h_ref, m_ref, c_ref, colmask_ref,
                    wfull_ref, bfull_ref, gamfull_ref, betfull_ref, projfull_ref,
                    wm_ref, bm_ref, gamm_ref, betm_ref, projm_ref,
                    h_out_ref, c_out_ref, m_out_ref,
                    imcol_g_ref, imcol_m_ref, hn_ref,
                    *, H, W, Ch, Cxp, OFF, LP):
    HW = H * W
    inv_hw = 1.0 / float(HW)
    cmask = colmask_ref[...]                       # (KSIZE, HW), 0/1 in MXU dtype

    def fill_taps(dst_ref, row0, img, cdim):
        """Write the 25 tap blocks of a channels-major padded-flat image.

        img: (cdim, LP) value, image interior at lanes [OFF, OFF+HW).  Each tap
        is a static lane-shifted slice (no relayouts); the kw-dependent mask
        zeroes the column-wrap lanes.  Row offsets are multiples of 8.
        """
        for kh in range(KSIZE):
            for kw in range(KSIZE):
                t = kh * KSIZE + kw
                start = OFF + (kh - PAD) * W + (kw - PAD)
                tap = img[:, start:start + HW] * cmask[kw:kw + 1, :]
                r0 = row0 + t * cdim
                dst_ref[r0:r0 + cdim, :] = tap.astype(dst_ref.dtype)

    x = x_ref[0]                                   # (Cxp, LP)
    h = h_ref[0]                                   # (Ch,  LP)
    m = m_ref[0]                                   # (Ch,  LP)
    c = c_ref[0]                                   # (Ch,  HW) flattened NCHW

    # ---- gates + 1x1 residual: ONE fused contraction, K = 25*(Cxp+Ch) ----
    fill_taps(imcol_g_ref, 0, x, Cxp)
    fill_taps(imcol_g_ref, KSIZE * KSIZE * Cxp, h, Ch)
    gr = jnp.dot(wfull_ref[...], imcol_g_ref[...],
                 preferred_element_type=jnp.float32) + bfull_ref[...]    # (5Ch,HW)
    gr = _group_norm_cm(gr, gamfull_ref[...], betfull_ref[...],
                        projfull_ref[...], inv_hw)
    res = gr[4 * Ch:5 * Ch, :]                     # GroupNorm(conv1x1(x)+br)

    # ---- memory branch on m: tanh(GroupNorm(conv5x5(m))) ----
    fill_taps(imcol_m_ref, 0, m, Ch)
    m_t = jnp.dot(wm_ref[...], imcol_m_ref[...],
                  preferred_element_type=jnp.float32) + bm_ref[...]
    m_t = _group_norm_cm(m_t, gamm_ref[...], betm_ref[...], projm_ref[...], inv_hw)
    tmt = jnp.tanh(m_t)

    # ---- gating: nonlinearities per slice (no wasted sigmoid on g rows) ----
    i_g = jax.nn.sigmoid(gr[0 * Ch:1 * Ch, :])
    f_g = jax.nn.sigmoid(gr[1 * Ch:2 * Ch, :])
    g_g = jnp.tanh(gr[2 * Ch:3 * Ch, :])
    o_g = jax.nn.sigmoid(gr[3 * Ch:4 * Ch, :])

    c_next = f_g * c + i_g * g_g + tmt             # (Ch, HW)
    h_next = o_g * jnp.tanh(c_next) + res          # (Ch, HW)

    # ---- m_next = tanh(GroupNorm(conv5x5(h_next))), still channels-major ----
    # Re-pad h_next in VMEM: only the lane-aligned halo slabs are zeroed (the
    # interior is fully overwritten).  Zeroed every step (not pl.when(step==0))
    # so the kernel stays correct when the batch axis is split across cores.
    hn_dt = hn_ref.dtype
    hn_ref[:, 0:OFF] = jnp.zeros((Ch, OFF), hn_dt)
    hn_ref[:, OFF + HW:] = jnp.zeros((Ch, LP - OFF - HW), hn_dt)
    hn_ref[:, OFF:OFF + HW] = h_next.astype(hn_dt)

    fill_taps(imcol_m_ref, 0, hn_ref[...], Ch)     # scratch reused (m done)
    m_n = jnp.dot(wm_ref[...], imcol_m_ref[...],
                  preferred_element_type=jnp.float32) + bm_ref[...]
    m_n = _group_norm_cm(m_n, gamm_ref[...], betm_ref[...], projm_ref[...], inv_hw)

    # Lane-dense stores, already in flattened-NCHW layout.
    h_out_ref[0] = h_next
    c_out_ref[0] = c_next
    m_out_ref[0] = jnp.tanh(m_n)


# ----------------------------------------------------------------------------
# Public wrapper: NCHW in / NCHW out (PyTorch layout), one fused pallas_call.
# ----------------------------------------------------------------------------
def st_lstm_forward(kp, x_nchw, h_nchw=None, c_nchw=None, m_nchw=None):
    B, Cin, H, W = x_nchw.shape
    Ch = kp['wm'].shape[0]
    Kg = kp['wfull'].shape[1]
    Km = kp['wm'].shape[1]
    Cxp = Kg // (KSIZE * KSIZE) - Ch
    HW = H * W
    DT = kp['wfull'].dtype                         # MXU operand dtype (bf16/f32)

    # Padded-flat image geometry: interior starts at a 128-lane-aligned offset
    # so the in-kernel h_next re-pad stores are lane-aligned.
    OFF = _round_up(2 * W + 2, LANE)
    LP = _round_up(OFF + HW + 2 * W + 2, LANE)

    if h_nchw is None:
        z = jnp.zeros((B, Ch, H, W), jnp.float32)
        h_nchw, c_nchw, m_nchw = z, z, z

    def prep(t, c_tot):
        # NCHW -> channels-major padded-flat (B, c_tot, LP).  Trivial XLA glue
        # (reshape + pad + cast); no NHWC transpose, no spatial 2-D pad.
        Bb, C = t.shape[0], t.shape[1]
        t = t.reshape(Bb, C, HW)
        t = jnp.pad(t, ((0, 0), (0, c_tot - C), (OFF, LP - OFF - HW)))
        return t.astype(DT)

    xf = prep(x_nchw, Cxp)                         # (B, Cxp, LP)
    hf = prep(h_nchw, Ch)                          # (B, Ch,  LP)
    mf = prep(m_nchw, Ch)                          # (B, Ch,  LP)
    c2 = c_nchw.astype(jnp.float32).reshape(B, Ch, HW)

    # Per-kw column-validity masks for the flattened-spatial tap slices
    # (zero the lanes whose column index wraps out of [0, W)).
    wpos = np.arange(HW) % W
    cmask = np.stack([((wpos + kw - PAD >= 0) & (wpos + kw - PAD < W))
                      for kw in range(KSIZE)], axis=0).astype(np.float32)
    cmask = jnp.asarray(cmask).astype(DT)          # (KSIZE, HW)

    kern = functools.partial(_st_lstm_kernel, H=H, W=W, Ch=Ch, Cxp=Cxp,
                             OFF=OFF, LP=LP)

    img_spec = lambda cdim: pl.BlockSpec((1, cdim, LP), lambda b: (b, 0, 0))
    state_spec = pl.BlockSpec((1, Ch, HW), lambda b: (b, 0, 0))

    def rep(arr):                                  # weight resident across grid
        nd = arr.ndim
        return pl.BlockSpec(arr.shape, lambda b, _n=nd: (0,) * _n)

    weights = [cmask, kp['wfull'], kp['bfull'], kp['gamfull'], kp['betfull'],
               kp['projfull'], kp['wm'], kp['bm'], kp['gamm'], kp['betm'],
               kp['projm']]

    h2, c_n2, m2 = pl.pallas_call(
        kern,
        out_shape=(jax.ShapeDtypeStruct((B, Ch, HW), jnp.float32),) * 3,
        grid=(B,),
        in_specs=[img_spec(Cxp), img_spec(Ch), img_spec(Ch), state_spec]
                 + [rep(w) for w in weights],
        out_specs=(state_spec, state_spec, state_spec),
        scratch_shapes=[pltpu.VMEM((Kg, HW), DT),      # gates im2col
                        pltpu.VMEM((Km, HW), DT),      # m / h_next im2col
                        pltpu.VMEM((Ch, LP), DT)],     # padded-flat h_next
        compiler_params=pltpu.CompilerParams(
            dimension_semantics=("parallel",),         # batch across TCs (v7x)
        ),
    )(xf, hf, mf, c2, *weights)

    rs = lambda t: t.reshape(B, Ch, H, W)          # already flattened NCHW
    return rs(h2), rs(c_n2), rs(m2)


# ----------------------------------------------------------------------------
# Deterministic parameters + one-time repack into kernel layouts.
# ----------------------------------------------------------------------------
def init_params(key, cin, ch):
    """Raw (PyTorch-equivalent) parameters; conv weights are (KH, KW, Cin, Cout)."""
    ct = cin + ch
    ks = jax.random.split(key, 12)

    def w5(k, c_in, c_out):
        fan = KSIZE * KSIZE * c_in
        return jax.random.normal(k, (KSIZE, KSIZE, c_in, c_out), jnp.float32) / np.sqrt(fan)

    def vec(k, c, base=0.0, scale=0.1):
        return base + scale * jax.random.normal(k, (c,), jnp.float32)

    return dict(
        wg=w5(ks[0], ct, 4 * ch), bg=vec(ks[1], 4 * ch),
        gam_g=vec(ks[2], 4 * ch, base=1.0), bet_g=vec(ks[3], 4 * ch),
        wm=w5(ks[4], ch, ch), bm=vec(ks[5], ch),
        gam_m=vec(ks[6], ch, base=1.0), bet_m=vec(ks[7], ch),
        wr=jax.random.normal(ks[8], (cin, ch), jnp.float32) / np.sqrt(cin),
        br=vec(ks[9], ch),
        gam_r=vec(ks[10], ch, base=1.0), bet_r=vec(ks[11], ch),
    )


def prepare_kernel_params(params, cin, ch, mxu_dtype=jnp.bfloat16):
    """One-time repack into kernel layouts (no spatial-size dependence)."""
    cxp = _round_up(cin, 8)
    n_tap = KSIZE * KSIZE
    col = lambda v: jnp.asarray(v, jnp.float32).reshape(-1, 1)

    def cols_from_hwio(w4, c_pad):
        # (KH, KW, Cin, Cout) -> (Cout, 25*c_pad), column index = t*c_pad + cin
        c_in, c_out = w4.shape[2], w4.shape[3]
        w4 = jnp.pad(w4, ((0, 0), (0, 0), (0, c_pad - c_in), (0, 0)))
        return jnp.transpose(w4, (3, 0, 1, 2)).reshape(c_out, n_tap * c_pad)

    wg = params['wg']                                       # (5,5,cin+ch,4ch)
    wx_cols = cols_from_hwio(wg[:, :, :cin, :], cxp)        # (4ch, 25*cxp)
    wh_cols = cols_from_hwio(wg[:, :, cin:, :], ch)         # (4ch, 25*ch)

    # 1x1 residual conv fused as extra output rows of the same contraction:
    # only the centre-tap (kh=kw=2) x-columns are non-zero.
    centre = (KSIZE * PAD + PAD) * cxp
    res_x = jnp.zeros((ch, n_tap * cxp), jnp.float32)
    res_x = res_x.at[:, centre:centre + cin].set(params['wr'].T)
    res_rows = jnp.concatenate([res_x, jnp.zeros((ch, n_tap * ch), jnp.float32)],
                               axis=1)
    wfull = jnp.concatenate(
        [jnp.concatenate([wx_cols, wh_cols], axis=1), res_rows], axis=0)

    def gproj(c):   # same-group indicator / group_size (no H*W baked in)
        gs = c // GN_GROUPS
        ind = (np.arange(c)[:, None] // gs == np.arange(c)[None, :] // gs)
        return ind.astype(np.float32) / float(gs)

    projfull = np.zeros((5 * ch, 5 * ch), np.float32)
    projfull[:4 * ch, :4 * ch] = gproj(4 * ch)              # gates: groups of 4Ch/4
    projfull[4 * ch:, 4 * ch:] = gproj(ch)                  # residual: groups of Ch/4

    return dict(
        wfull=wfull.astype(mxu_dtype),
        bfull=col(jnp.concatenate([params['bg'], params['br']])),
        gamfull=col(jnp.concatenate([params['gam_g'], params['gam_r']])),
        betfull=col(jnp.concatenate([params['bet_g'], params['bet_r']])),
        projfull=jnp.asarray(projfull),
        wm=cols_from_hwio(params['wm'], ch).astype(mxu_dtype),   # (ch, 25*ch)
        bm=col(params['bm']),
        gamm=col(params['gam_m']),
        betm=col(params['bet_m']),
        projm=jnp.asarray(gproj(ch)),
    )


# ----------------------------------------------------------------------------
# Pure-JAX reference (mirrors the PyTorch forward) for the correctness check.
# ----------------------------------------------------------------------------
def reference_forward(params, x_nchw, h_nchw, c_nchw, m_nchw):
    Ch = params['wr'].shape[1]
    nhwc = lambda t: jnp.transpose(t, (0, 2, 3, 1))
    x, h, c, m = map(nhwc, (x_nchw, h_nchw, c_nchw, m_nchw))

    def conv5(t, w4, b):
        y = lax.conv_general_dilated(
            t, w4, window_strides=(1, 1), padding='SAME',
            dimension_numbers=('NHWC', 'HWIO', 'NHWC'),
            precision=lax.Precision.HIGHEST)
        return y + b.reshape(1, 1, 1, -1)

    def gn(t, gamma, beta):
        bb, hh, ww, cc = t.shape
        gs = cc // GN_GROUPS
        tg = t.reshape(bb, hh, ww, GN_GROUPS, gs)
        mu = tg.mean(axis=(1, 2, 4), keepdims=True)
        var = ((tg - mu) ** 2).mean(axis=(1, 2, 4), keepdims=True)
        tn = (tg - mu) / jnp.sqrt(var + GN_EPS)
        return (tn.reshape(bb, hh, ww, cc) * gamma.reshape(1, 1, 1, -1)
                + beta.reshape(1, 1, 1, -1))

    res = gn(jnp.einsum('bhwc,cd->bhwd', x, params['wr'],
                        precision=lax.Precision.HIGHEST)
             + params['br'].reshape(1, 1, 1, -1),
             params['gam_r'], params['bet_r'])
    comb = jnp.concatenate([x, h], axis=-1)
    gates = gn(conv5(comb, params['wg'], params['bg']),
               params['gam_g'], params['bet_g'])
    i = jax.nn.sigmoid(gates[..., :Ch])
    f = jax.nn.sigmoid(gates[..., Ch:2 * Ch])
    g = jnp.tanh(gates[..., 2 * Ch:3 * Ch])
    o = jax.nn.sigmoid(gates[..., 3 * Ch:])
    m_t = gn(conv5(m, params['wm'], params['bm']), params['gam_m'], params['bet_m'])
    c_next = f * c + i * g + jnp.tanh(m_t)
    h_next = o * jnp.tanh(c_next) + res
    m_next = jnp.tanh(gn(conv5(h_next, params['wm'], params['bm']),
                         params['gam_m'], params['bet_m']))
    back = lambda t: jnp.transpose(t, (0, 3, 1, 2))
    return back(h_next), back(c_next), back(m_next)


# ----------------------------------------------------------------------------
if __name__ == "__main__":
    B, Cin, Ch, H, W = 2, 4, 8, 16, 16          # hidden_channels divisible by 4

    key = jax.random.PRNGKey(0)
    kp_key, kx, kh_, kc, km = jax.random.split(key, 5)
    params = init_params(kp_key, Cin, Ch)

    x = jax.random.normal(kx, (B, Cin, H, W), jnp.float32)
    h = jax.random.normal(kh_, (B, Ch, H, W), jnp.float32)
    c = jax.random.normal(kc, (B, Ch, H, W), jnp.float32)
    m = jax.random.normal(km, (B, Ch, H, W), jnp.float32)

    h_r, c_r, m_r = reference_forward(params, x, h, c, m)

    fwd = jax.jit(st_lstm_forward)

    # 1) f32 MXU operands: strict parity with the f32 reference.
    kp32 = prepare_kernel_params(params, Cin, Ch, mxu_dtype=jnp.float32)
    out32 = fwd(kp32, x, h, c, m)
    jax.block_until_ready(out32)

    # 2) bf16 MXU operands (production default, review item 3): tolerance sized
    #    for bf16 rounding propagated through the chained K=200..400 contractions.
    kpbf = prepare_kernel_params(params, Cin, Ch, mxu_dtype=jnp.bfloat16)
    outbf = fwd(kpbf, x, h, c, m)
    jax.block_until_ready(outbf)

    def max_diff(outs):
        return max(float(jnp.max(jnp.abs(a - b)))
                   for a, b in zip(outs, (h_r, c_r, m_r)))

    for outs in (out32, outbf):
        for t in outs:
            assert t.shape == (B, Ch, H, W)
    d32 = max_diff(out32)
    dbf = max_diff(outbf)
    assert d32 < 5e-3, f"f32 kernel mismatch vs pure-JAX reference: {d32}"
    assert dbf < 5e-2, f"bf16 kernel mismatch vs pure-JAX reference: {dbf}"
    print("KERNEL_OK")
</pallas_src>

<mosaic_0001>
module attributes {stable_mosaic.version = 11 : i64} {
  func.func @_st_lstm_kernel(%arg0: i32, %arg1: memref<1x8x512xf32, #tpu.memory_space<vmem>>, %arg2: memref<1x8x512xf32, #tpu.memory_space<vmem>>, %arg3: memref<1x8x512xf32, #tpu.memory_space<vmem>>, %arg4: memref<1x8x256xf32, #tpu.memory_space<vmem>>, %arg5: memref<5x256xf32, #tpu.memory_space<vmem>>, %arg6: memref<40x400xf32, #tpu.memory_space<vmem>>, %arg7: memref<40x1xf32, #tpu.memory_space<vmem>>, %arg8: memref<40x1xf32, #tpu.memory_space<vmem>>, %arg9: memref<40x1xf32, #tpu.memory_space<vmem>>, %arg10: memref<40x40xf32, #tpu.memory_space<vmem>>, %arg11: memref<8x200xf32, #tpu.memory_space<vmem>>, %arg12: memref<8x1xf32, #tpu.memory_space<vmem>>, %arg13: memref<8x1xf32, #tpu.memory_space<vmem>>, %arg14: memref<8x1xf32, #tpu.memory_space<vmem>>, %arg15: memref<8x8xf32, #tpu.memory_space<vmem>>, %arg16: memref<1x8x256xf32, #tpu.memory_space<vmem>>, %arg17: memref<1x8x256xf32, #tpu.memory_space<vmem>>, %arg18: memref<1x8x256xf32, #tpu.memory_space<vmem>>, %arg19: memref<400x256xf32, #tpu.memory_space<vmem>>, %arg20: memref<200x256xf32, #tpu.memory_space<vmem>>, %arg21: memref<8x512xf32, #tpu.memory_space<vmem>>) attributes {dimension_semantics = [#tpu.dimension_semantics<parallel>], iteration_bounds = array<i64: 2>, scalar_prefetch = 0 : i64, scratch_operands = 3 : i64, tpu.core_type = #tpu.core_type<tc>, window_params = [{transform_indices = @transform_0, window_bounds = array<i64: 1, 8, 512>}, {transform_indices = @transform_1, window_bounds = array<i64: 1, 8, 512>}, {transform_indices = @transform_2, window_bounds = array<i64: 1, 8, 512>}, {transform_indices = @transform_3, window_bounds = array<i64: 1, 8, 256>}, {pipeline_mode = #tpu.pipeline_mode<synchronous>, transform_indices = @transform_4, window_bounds = array<i64: 5, 256>}, {pipeline_mode = #tpu.pipeline_mode<synchronous>, transform_indices = @transform_5, window_bounds = array<i64: 40, 400>}, {pipeline_mode = #tpu.pipeline_mode<synchronous>, transform_indices = @transform_6, window_bounds = array<i64: 40, 1>}, {pipeline_mode = #tpu.pipeline_mode<synchronous>, transform_indices = @transform_7, window_bounds = array<i64: 40, 1>}, {pipeline_mode = #tpu.pipeline_mode<synchronous>, transform_indices = @transform_8, window_bounds = array<i64: 40, 1>}, {pipeline_mode = #tpu.pipeline_mode<synchronous>, transform_indices = @transform_9, window_bounds = array<i64: 40, 40>}, {pipeline_mode = #tpu.pipeline_mode<synchronous>, transform_indices = @transform_10, window_bounds = array<i64: 8, 200>}, {pipeline_mode = #tpu.pipeline_mode<synchronous>, transform_indices = @transform_11, window_bounds = array<i64: 8, 1>}, {pipeline_mode = #tpu.pipeline_mode<synchronous>, transform_indices = @transform_12, window_bounds = array<i64: 8, 1>}, {pipeline_mode = #tpu.pipeline_mode<synchronous>, transform_indices = @transform_13, window_bounds = array<i64: 8, 1>}, {pipeline_mode = #tpu.pipeline_mode<synchronous>, transform_indices = @transform_14, window_bounds = array<i64: 8, 8>}, {transform_indices = @transform_15, window_bounds = array<i64: 1, 8, 256>}, {transform_indices = @transform_16, window_bounds = array<i64: 1, 8, 256>}, {transform_indices = @transform_17, window_bounds = array<i64: 1, 8, 256>}]} {
    %c0 = arith.constant 0 : index
    %c0_0 = arith.constant 0 : index
    %0 = vector.load %arg5[%c0, %c0_0] : memref<5x256xf32, #tpu.memory_space<vmem>>, vector<5x256xf32>
    %c0_1 = arith.constant 0 : index
    %c0_2 = arith.constant 0 : index
    %c0_3 = arith.constant 0 : index
    %1 = vector.load %arg1[%c0_1, %c0_2, %c0_3] : memref<1x8x512xf32, #tpu.memory_space<vmem>>, vector<1x8x512xf32>
    %2 = vector.shape_cast %1 : vector<1x8x512xf32> to vector<8x512xf32>
    %c0_4 = arith.constant 0 : index
    %c0_5 = arith.constant 0 : index
    %c0_6 = arith.constant 0 : index
    %3 = vector.load %arg2[%c0_4, %c0_5, %c0_6] : memref<1x8x512xf32, #tpu.memory_space<vmem>>, vector<1x8x512xf32>
    %4 = vector.shape_cast %3 : vector<1x8x512xf32> to vector<8x512xf32>
    %c0_7 = arith.constant 0 : index
    %c0_8 = arith.constant 0 : index
    %c0_9 = arith.constant 0 : index
    %5 = vector.load %arg3[%c0_7, %c0_8, %c0_9] : memref<1x8x512xf32, #tpu.memory_space<vmem>>, vector<1x8x512xf32>
    %6 = vector.shape_cast %5 : vector<1x8x512xf32> to vector<8x512xf32>
    %c0_10 = arith.constant 0 : index
    %c0_11 = arith.constant 0 : index
    %c0_12 = arith.constant 0 : index
    %7 = vector.load %arg4[%c0_10, %c0_11, %c0_12] : memref<1x8x256xf32, #tpu.memory_space<vmem>>, vector<1x8x256xf32>
    %8 = vector.shape_cast %7 : vector<1x8x256xf32> to vector<8x256xf32>
    %9 = vector.extract_strided_slice %2 {offsets = [0, 94], sizes = [8, 256], strides = [1, 1]} : vector<8x512xf32> to vector<8x256xf32>
    %10 = vector.extract_strided_slice %0 {offsets = [0, 0], sizes = [1, 256], strides = [1, 1]} : vector<5x256xf32> to vector<1x256xf32>
    %11 = vector.broadcast %10 : vector<1x256xf32> to vector<8x256xf32>
    %12 = arith.mulf %9, %11 : vector<8x256xf32>
    %c0_13 = arith.constant 0 : index
    %c0_14 = arith.constant 0 : index
    %13 = vector.load %arg19[%c0_13, %c0_14] : memref<400x256xf32, #tpu.memory_space<vmem>>, vector<8x256xf32>
    tpu.vector_store %arg19[%c0_13, %c0_14], %12 {strides = array<i32>} : memref<400x256xf32, #tpu.memory_space<vmem>>, vector<8x256xf32>,
    %14 = vector.extract_strided_slice %2 {offsets = [0, 95], sizes = [8, 256], strides = [1, 1]} : vector<8x512xf32> to vector<8x256xf32>
    %15 = vector.extract_strided_slice %0 {offsets = [1, 0], sizes = [1, 256], strides = [1, 1]} : vector<5x256xf32> to vector<1x256xf32>
    %16 = vector.broadcast %15 : vector<1x256xf32> to vector<8x256xf32>
    %17 = arith.mulf %14, %16 : vector<8x256xf32>
    %c8 = arith.constant 8 : index
    %c0_15 = arith.constant 0 : index
    %18 = vector.load %arg19[%c8, %c0_15] : memref<400x256xf32, #tpu.memory_space<vmem>>, vector<8x256xf32>
    tpu.vector_store %arg19[%c8, %c0_15], %17 {strides = array<i32>} : memref<400x256xf32, #tpu.memory_space<vmem>>, vector<8x256xf32>,
    %19 = vector.extract_strided_slice %2 {offsets = [0, 96], sizes = [8, 256], strides = [1, 1]} : vector<8x512xf32> to vector<8x256xf32>
    %20 = vector.extract_strided_slice %0 {offsets = [2, 0], sizes = [1, 256], strides = [1, 1]} : vector<5x256xf32> to vector<1x256xf32>
    %21 = vector.broadcast %20 : vector<1x256xf32> to vector<8x256xf32>
    %22 = arith.mulf %19, %21 : vector<8x256xf32>
    %c16 = arith.constant 16 : index
    %c0_16 = arith.constant 0 : index
    %23 = vector.load %arg19[%c16, %c0_16] : memref<400x256xf32, #tpu.memory_space<vmem>>, vector<8x256xf32>
    tpu.vector_store %arg19[%c16, %c0_16], %22 {strides = array<i32>} : memref<400x256xf32, #tpu.memory_space<vmem>>, vector<8x256xf32>,
    %24 = vector.extract_strided_slice %2 {offsets = [0, 97], sizes = [8, 256], strides = [1, 1]} : vector<8x512xf32> to vector<8x256xf32>
    %25 = vector.extract_strided_slice %0 {offsets = [3, 0], sizes = [1, 256], strides = [1, 1]} : vector<5x256xf32> to vector<1x256xf32>
    %26 = vector.broadcast %25 : vector<1x256xf32> to vector<8x256xf32>
    %27 = arith.mulf %24, %26 : vector<8x256xf32>
    %c24 = arith.constant 24 : index
    %c0_17 = arith.constant 0 : index
    %28 = vector.load %arg19[%c24, %c0_17] : memref<400x256xf32, #tpu.memory_space<vmem>>, vector<8x256xf32>
    tpu.vector_store %arg19[%c24, %c0_17], %27 {strides = array<i32>} : memref<400x256xf32, #tpu.memory_space<vmem>>, vector<8x256xf32>,
    %29 = vector.extract_strided_slice %2 {offsets = [0, 98], sizes = [8, 256], strides = [1, 1]} : vector<8x512xf32> to vector<8x256xf32>
    %30 = vector.extract_strided_slice %0 {offsets = [4, 0], sizes = [1, 256], strides = [1, 1]} : vector<5x256xf32> to vector<1x256xf32>
    %31 = vector.broadcast %30 : vector<1x256xf32> to vector<8x256xf32>
    %32 = arith.mulf %29, %31 : vector<8x256xf32>
    %c32 = arith.constant 32 : index
    %c0_18 = arith.constant 0 : index
    %33 = vector.load %arg19[%c32, %c0_18] : memref<400x256xf32, #tpu.memory_space<vmem>>, vector<8x256xf32>
    tpu.vector_store %arg19[%c32, %c0_18], %32 {strides = array<i32>} : memref<400x256xf32, #tpu.memory_space<vmem>>, vector<8x256xf32>,
    %34 = vector.extract_strided_slice %2 {offsets = [0, 110], sizes = [8, 256], strides = [1, 1]} : vector<8x512xf32> to vector<8x256xf32>
    %35 = vector.extract_strided_slice %0 {offsets = [0, 0], sizes = [1, 256], strides = [1, 1]} : vector<5x256xf32> to vector<1x256xf32>
    %36 = vector.broadcast %35 : vector<1x256xf32> to vector<8x256xf32>
    %37 = arith.mulf %34, %36 : vector<8x256xf32>
    %c40 = arith.constant 40 : index
    %c0_19 = arith.constant 0 : index
    %38 = vector.load %arg19[%c40, %c0_19] : memref<400x256xf32, #tpu.memory_space<vmem>>, vector<8x256xf32>
    tpu.vector_store %arg19[%c40, %c0_19], %37 {strides = array<i32>} : memref<400x256xf32, #tpu.memory_space<vmem>>, vector<8x256xf32>,
    %39 = vector.extract_strided_slice %2 {offsets = [0, 111], sizes = [8, 256], strides = [1, 1]} : vector<8x512xf32> to vector<8x256xf32>
    %40 = vector.extract_strided_slice %0 {offsets = [1, 0], sizes = [1, 256], strides = [1, 1]} : vector<5x256xf32> to vector<1x256xf32>
    %41 = vector.broadcast %40 : vector<1x256xf32> to vector<8x256xf32>
    %42 = arith.mulf %39, %41 : vector<8x256xf32>
    %c48 = arith.constant 48 : index
    %c0_20 = arith.constant 0 : index
    %43 = vector.load %arg19[%c48, %c0_20] : memref<400x256xf32, #tpu.memory_space<vmem>>, vector<8x256xf32>
    tpu.vector_store %arg19[%c48, %c0_20], %42 {strides = array<i32>} : memref<400x256xf32, #tpu.memory_space<vmem>>, vector<8x256xf32>,
    %44 = vector.extract_strided_slice %2 {offsets = [0, 112], sizes = [8, 256], strides = [1, 1]} : vector<8x512xf32> to vector<8x256xf32>
    %45 = vector.extract_strided_slice %0 {offsets = [2, 0], sizes = [1, 256], strides = [1, 1]} : vector<5x256xf32> to vector<1x256xf32>
    %46 = vector.broadcast %45 : vector<1x256xf32> to vector<8x256xf32>
    %47 = arith.mulf %44, %46 : vector<8x256xf32>
    %c56 = arith.constant 56 : index
    %c0_21 = arith.constant 0 : index
    %48 = vector.load %arg19[%c56, %c0_21] : memref<400x256xf32, #tpu.memory_space<vmem>>, vector<8x256xf32>
    tpu.vector_store %arg19[%c56, %c0_21], %47 {strides = array<i32>} : memref<400x256xf32, #tpu.memory_space<vmem>>, vector<8x256xf32>,
    %49 = vector.extract_strided_slice %2 {offsets = [0, 113], sizes = [8, 256], strides = [1, 1]} : vector<8x512xf32> to vector<8x256xf32>
    %50 = vector.extract_strided_slice %0 {offsets = [3, 0], sizes = [1, 256], strides = [1, 1]} : vector<5x256xf32> to vector<1x256xf32>
    %51 = vector.broadcast %50 : vector<1x256xf32> to vector<8x256xf32>
    %52 = arith.mulf %49, %51 : vector<8x256xf32>
    %c64 = arith.constant 64 : index
    %c0_22 = arith.constant 0 : index
    %53 = vector.load %arg19[%c64, %c0_22] : memref<400x256xf32, #tpu.memory_space<vmem>>, vector<8x256xf32>
    tpu.vector_store %arg19[%c64, %c0_22], %52 {strides = array<i32>} : memref<400x256xf32, #tpu.memory_space<vmem>>, vector<8x256xf32>,
    %54 = vector.extract_strided_slice %2 {offsets = [0, 114], sizes = [8, 256], strides = [1, 1]} : vector<8x512xf32> to vector<8x256xf32>
    %55 = vector.extract_strided_slice %0 {offsets = [4, 0], sizes = [1, 256], strides = [1, 1]} : vector<5x256xf32> to vector<1x256xf32>
    %56 = vector.broadcast %55 : vector<1x256xf32> to vector<8x256xf32>
    %57 = arith.mulf %54, %56 : vector<8x256xf32>
    %c72 = arith.constant 72 : index
    %c0_23 = arith.constant 0 : index
    %58 = vector.load %arg19[%c72, %c0_23] : memref<400x256xf32, #tpu.memory_space<vmem>>, vector<8x256xf32>
    tpu.vector_store %arg19[%c72, %c0_23], %57 {strides = array<i32>} : memref<400x256xf32, #tpu.memory_space<vmem>>, vector<8x256xf32>,
    %59 = vector.extract_strided_slice %2 {offsets = [0, 126], sizes = [8, 256], strides = [1, 1]} : vector<8x512xf32> to vector<8x256xf32>
    %60 = vector.extract_strided_slice %0 {offsets = [0, 0], sizes = [1, 256], strides = [1, 1]} : vector<5x256xf32> to vector<1x256xf32>
    %61 = vector.broadcast %60 : vector<1x256xf32> to vector<8x256xf32>
    %62 = arith.mulf %59, %61 : vector<8x256xf32>
    %c80 = arith.constant 80 : index
    %c0_24 = arith.constant 0 : index
    %63 = vector.load %arg19[%c80, %c0_24] : memref<400x256xf32, #tpu.memory_space<vmem>>, vector<8x256xf32>
    tpu.vector_store %arg19[%c80, %c0_24], %62 {strides = array<i32>} : memref<400x256xf32, #tpu.memory_space<vmem>>, vector<8x256xf32>,
    %64 = vector.extract_strided_slice %2 {offsets = [0, 127], sizes = [8, 256], strides = [1, 1]} : vector<8x512xf32> to vector<8x256xf32>
    %65 = vector.extract_strided_slice %0 {offsets = [1, 0], sizes = [1, 256], strides = [1, 1]} : vector<5x256xf32> to vector<1x256xf32>
    %66 = vector.broadcast %65 : vector<1x256xf32> to vector<8x256xf32>
    %67 = arith.mulf %64, %66 : vector<8x256xf32>
    %c88 = arith.constant 88 : index
    %c0_25 = arith.constant 0 : index
    %68 = vector.load %arg19[%c88, %c0_25] : memref<400x256xf32, #tpu.memory_space<vmem>>, vector<8x256xf32>
    tpu.vector_store %arg19[%c88, %c0_25], %67 {strides = array<i32>} : memref<400x256xf32, #tpu.memory_space<vmem>>, vector<8x256xf32>,
    %69 = vector.extract_strided_slice %2 {offsets = [0, 128], sizes = [8, 256], strides = [1, 1]} : vector<8x512xf32> to vector<8x256xf32>
    %70 = vector.extract_strided_slice %0 {offsets = [2, 0], sizes = [1, 256], strides = [1, 1]} : vector<5x256xf32> to vector<1x256xf32>
    %71 = vector.broadcast %70 : vector<1x256xf32> to vector<8x256xf32>
    %72 = arith.mulf %69, %71 : vector<8x256xf32>
    %c96 = arith.constant 96 : index
    %c0_26 = arith.constant 0 : index
    %73 = vector.load %arg19[%c96, %c0_26] : memref<400x256xf32, #tpu.memory_space<vmem>>, vector<8x256xf32>
    tpu.vector_store %arg19[%c96, %c0_26], %72 {strides = array<i32>} : memref<400x256xf32, #tpu.memory_space<vmem>>, vector<8x256xf32>,
    %74 = vector.extract_strided_slice %2 {offsets = [0, 129], sizes = [8, 256], strides = [1, 1]} : vector<8x512xf32> to vector<8x256xf32>
    %75 = vector.extract_strided_slice %0 {offsets = [3, 0], sizes = [1, 256], strides = [1, 1]} : vector<5x256xf32> to vector<1x256xf32>
    %76 = vector.broadcast %75 : vector<1x256xf32> to vector<8x256xf32>
    %77 = arith.mulf %74, %76 : vector<8x256xf32>
    %c104 = arith.constant 104 : index
    %c0_27 = arith.constant 0 : index
    %78 = vector.load %arg19[%c104, %c0_27] : memref<400x256xf32, #tpu.memory_space<vmem>>, vector<8x256xf32>
    tpu.vector_store %arg19[%c104, %c0_27], %77 {strides = array<i32>} : memref<400x256xf32, #tpu.memory_space<vmem>>, vector<8x256xf32>,
    %79 = vector.extract_strided_slice %2 {offsets = [0, 130], sizes = [8, 256], strides = [1, 1]} : vector<8x512xf32> to vector<8x256xf32>
    %80 = vector.extract_strided_slice %0 {offsets = [4, 0], sizes = [1, 256], strides = [1, 1]} : vector<5x256xf32> to vector<1x256xf32>
    %81 = vector.broadcast %80 : vector<1x256xf32> to vector<8x256xf32>
    %82 = arith.mulf %79, %81 : vector<8x256xf32>
    %c112 = arith.constant 112 : index
    %c0_28 = arith.constant 0 : index
    %83 = vector.load %arg19[%c112, %c0_28] : memref<400x256xf32, #tpu.memory_space<vmem>>, vector<8x256xf32>
    tpu.vector_store %arg19[%c112, %c0_28], %82 {strides = array<i32>} : memref<400x256xf32, #tpu.memory_space<vmem>>, vector<8x256xf32>,
    %84 = vector.extract_strided_slice %2 {offsets = [0, 142], sizes = [8, 256], strides = [1, 1]} : vector<8x512xf32> to vector<8x256xf32>
    %85 = vector.extract_strided_slice %0 {offsets = [0, 0], sizes = [1, 256], strides = [1, 1]} : vector<5x256xf32> to vector<1x256xf32>
    %86 = vector.broadcast %85 : vector<1x256xf32> to vector<8x256xf32>
    %87 = arith.mulf %84, %86 : vector<8x256xf32>
    %c120 = arith.constant 120 : index
    %c0_29 = arith.constant 0 : index
    %88 = vector.load %arg19[%c120, %c0_29] : memref<400x256xf32, #tpu.memory_space<vmem>>, vector<8x256xf32>
    tpu.vector_store %arg19[%c120, %c0_29], %87 {strides = array<i32>} : memref<400x256xf32, #tpu.memory_space<vmem>>, vector<8x256xf32>,
    %89 = vector.extract_strided_slice %2 {offsets = [0, 143], sizes = [8, 256], strides = [1, 1]} : vector<8x512xf32> to vector<8x256xf32>
    %90 = vector.extract_strided_slice %0 {offsets = [1, 0], sizes = [1, 256], strides = [1, 1]} : vector<5x256xf32> to vector<1x256xf32>
    %91 = vector.broadcast %90 : vector<1x256xf32> to vector<8x256xf32>
    %92 = arith.mulf %89, %91 : vector<8x256xf32>
    %c128 = arith.constant 128 : index
    %c0_30 = arith.constant 0 : index
    %93 = vector.load %arg19[%c128, %c0_30] : memref<400x256xf32, #tpu.memory_space<vmem>>, vector<8x256xf32>
    tpu.vector_store %arg19[%c128, %c0_30], %92 {strides = array<i32>} : memref<400x256xf32, #tpu.memory_space<vmem>>, vector<8x256xf32>,
    %94 = vector.extract_strided_slice %2 {offsets = [0, 144], sizes = [8, 256], strides = [1, 1]} : vector<8x512xf32> to vector<8x256xf32>
    %95 = vector.extract_strided_slice %0 {offsets = [2, 0], sizes = [1, 256], strides = [1, 1]} : vector<5x256xf32> to vector<1x256xf32>
    %96 = vector.broadcast %95 : vector<1x256xf32> to vector<8x256xf32>
    %97 = arith.mulf %94, %96 : vector<8x256xf32>
    %c136 = arith.constant 136 : index
    %c0_31 = arith.constant 0 : index
    %98 = vector.load %arg19[%c136, %c0_31] : memref<400x256xf32, #tpu.memory_space<vmem>>, vector<8x256xf32>
    tpu.vector_store %arg19[%c136, %c0_31], %97 {strides = array<i32>} : memref<400x256xf32, #tpu.memory_space<vmem>>, vector<8x256xf32>,
    %99 = vector.extract_strided_slice %2 {offsets = [0, 145], sizes = [8, 256], strides = [1, 1]} : vector<8x512xf32> to vector<8x256xf32>
    %100 = vector.extract_strided_slice %0 {offsets = [3, 0], sizes = [1, 256], strides = [1, 1]} : vector<5x256xf32> to vector<1x256xf32>
    %101 = vector.broadcast %100 : vector<1x256xf32> to vector<8x256xf32>
    %102 = arith.mulf %99, %101 : vector<8x256xf32>
    %c144 = arith.constant 144 : index
    %c0_32 = arith.constant 0 : index
    %103 = vector.load %arg19[%c144, %c0_32] : memref<400x256xf32, #tpu.memory_space<vmem>>, vector<8x256xf32>
    tpu.vector_store %arg19[%c144, %c0_32], %102 {strides = array<i32>} : memref<400x256xf32, #tpu.memory_space<vmem>>, vector<8x256xf32>,
    %104 = vector.extract_strided_slice %2 {offsets = [0, 146], sizes = [8, 256], strides = [1, 1]} : vector<8x512xf32> to vector<8x256xf32>
    %105 = vector.extract_strided_slice %0 {offsets = [4, 0], sizes = [1, 256], strides = [1, 1]} : vector<5x256xf32> to vector<1x256xf32>
    %106 = vector.broadcast %105 : vector<1x256xf32> to vector<8x256xf32>
    %107 = arith.mulf %104, %106 : vector<8x256xf32>
    %c152 = arith.constant 152 : index
    %c0_33 = arith.constant 0 : index
    %108 = vector.load %arg19[%c152, %c0_33] : memref<400x256xf32, #tpu.memory_space<vmem>>, vector<8x256xf32>
    tpu.vector_store %arg19[%c152, %c0_33], %107 {strides = array<i32>} : memref<400x256xf32, #tpu.memory_space<vmem>>, vector<8x256xf32>,
    %109 = vector.extract_strided_slice %2 {offsets = [0, 158], sizes = [8, 256], strides = [1, 1]} : vector<8x512xf32> to vector<8x256xf32>
    %110 = vector.extract_strided_slice %0 {offsets = [0, 0], sizes = [1, 256], strides = [1, 1]} : vector<5x256xf32> to vector<1x256xf32>
    %111 = vector.broadcast %110 : vector<1x256xf32> to vector<8x256xf32>
    %112 = arith.mulf %109, %111 : vector<8x256xf32>
    %c160 = arith.constant 160 : index
    %c0_34 = arith.constant 0 : index
    %113 = vector.load %arg19[%c160, %c0_34] : memref<400x256xf32, #tpu.memory_space<vmem>>, vector<8x256xf32>
    tpu.vector_store %arg19[%c160, %c0_34], %112 {strides = array<i32>} : memref<400x256xf32, #tpu.memory_space<vmem>>, vector<8x256xf32>,
    %114 = vector.extract_strided_slice %2 {offsets = [0, 159], sizes = [8, 256], strides = [1, 1]} : vector<8x512xf32> to vector<8x256xf32>
    %115 = vector.extract_strided_slice %0 {offsets = [1, 0], sizes = [1, 256], strides = [1, 1]} : vector<5x256xf32> to vector<1x256xf32>
    %116 = vector.broadcast %115 : vector<1x256xf32> to vector<8x256xf32>
    %117 = arith.mulf %114, %116 : vector<8x256xf32>
    %c168 = arith.constant 168 : index
    %c0_35 = arith.constant 0 : index
    %118 = vector.load %arg19[%c168, %c0_35] : memref<400x256xf32, #tpu.memory_space<vmem>>, vector<8x256xf32>
    tpu.vector_store %arg19[%c168, %c0_35], %117 {strides = array<i32>} : memref<400x256xf32, #tpu.memory_space<vmem>>, vector<8x256xf32>,
    %119 = vector.extract_strided_slice %2 {offsets = [0, 160], sizes = [8, 256], strides = [1, 1]} : vector<8x512xf32> to vector<8x256xf32>
    %120 = vector.extract_strided_slice %0 {offsets = [2, 0], sizes = [1, 256], strides = [1, 1]} : vector<5x256xf32> to vector<1x256xf32>
    %121 = vector.broadcast %120 : vector<1x256xf32> to vector<8x256xf32>
    %122 = arith.mulf %119, %121 : vector<8x256xf32>
    %c176 = arith.constant 176 : index
    %c0_36 = arith.constant 0 : index
    %123 = vector.load %arg19[%c176, %c0_36] : memref<400x256xf32, #tpu.memory_space<vmem>>, vector<8x256xf32>
    tpu.vector_store %arg19[%c176, %c0_36], %122 {strides = array<i32>} : memref<400x256xf32, #tpu.memory_space<vmem>>, vector<8x256xf32>,
    %124 = vector.extract_strided_slice %2 {offsets = [0, 161], sizes = [8, 256], strides = [1, 1]} : vector<8x512xf32> to vector<8x256xf32>
    %125 = vector.extract_strided_slice %0 {offsets = [3, 0], sizes = [1, 256], strides = [1, 1]} : vector<5x256xf32> to vector<1x256xf32>
    %126 = vector.broadcast %125 : vector<1x256xf32> to vector<8x256xf32>
    %127 = arith.mulf %124, %126 : vector<8x256xf32>
    %c184 = arith.constant 184 : index
    %c0_37 = arith.constant 0 : index
    %128 = vector.load %arg19[%c184, %c0_37] : memref<400x256xf32, #tpu.memory_space<vmem>>, vector<8x256xf32>
    tpu.vector_store %arg19[%c184, %c0_37], %127 {strides = array<i32>} : memref<400x256xf32, #tpu.memory_space<vmem>>, vector<8x256xf32>,
    %129 = vector.extract_strided_slice %2 {offsets = [0, 162], sizes = [8, 256], strides = [1, 1]} : vector<8x512xf32> to vector<8x256xf32>
    %130 = vector.extract_strided_slice %0 {offsets = [4, 0], sizes = [1, 256], strides = [1, 1]} : vector<5x256xf32> to vector<1x256xf32>
    %131 = vector.broadcast %130 : vector<1x256xf32> to vector<8x256xf32>
    %132 = arith.mulf %129, %131 : vector<8x256xf32>
    %c192 = arith.constant 192 : index
    %c0_38 = arith.constant 0 : index
    %133 = vector.load %arg19[%c192, %c0_38] : memref<400x256xf32, #tpu.memory_space<vmem>>, vector<8x256xf32>
    tpu.vector_store %arg19[%c192, %c0_38], %132 {strides = array<i32>} : memref<400x256xf32, #tpu.memory_space<vmem>>, vector<8x256xf32>,
    %134 = vector.extract_strided_slice %4 {offsets = [0, 94], sizes = [8, 256], strides = [1, 1]} : vector<8x512xf32> to vector<8x256xf32>
    %135 = vector.extract_strided_slice %0 {offsets = [0, 0], sizes = [1, 256], strides = [1, 1]} : vector<5x256xf32> to vector<1x256xf32>
    %136 = vector.broadcast %135 : vector<1x256xf32> to vector<8x256xf32>
    %137 = arith.mulf %134, %136 : vector<8x256xf32>
    %c200 = arith.constant 200 : index
    %c0_39 = arith.constant 0 : index
    %138 = vector.load %arg19[%c200, %c0_39] : memref<400x256xf32, #tpu.memory_space<vmem>>, vector<8x256xf32>
    tpu.vector_store %arg19[%c200, %c0_39], %137 {strides = array<i32>} : memref<400x256xf32, #tpu.memory_space<vmem>>, vector<8x256xf32>,
    %139 = vector.extract_strided_slice %4 {offsets = [0, 95], sizes = [8, 256], strides = [1, 1]} : vector<8x512xf32> to vector<8x256xf32>
    %140 = vector.extract_strided_slice %0 {offsets = [1, 0], sizes = [1, 256], strides = [1, 1]} : vector<5x256xf32> to vector<1x256xf32>
    %141 = vector.broadcast %140 : vector<1x256xf32> to vector<8x256xf32>
    %142 = arith.mulf %139, %141 : vector<8x256xf32>
    %c208 = arith.constant 208 : index
    %c0_40 = arith.constant 0 : index
    %143 = vector.load %arg19[%c208, %c0_40] : memref<400x256xf32, #tpu.memory_space<vmem>>, vector<8x256xf32>
    tpu.vector_store %arg19[%c208, %c0_40], %142 {strides = array<i32>} : memref<400x256xf32, #tpu.memory_space<vmem>>, vector<8x256xf32>,
    %144 = vector.extract_strided_slice %4 {offsets = [0, 96], sizes = [8, 256], strides = [1, 1]} : vector<8x512xf32> to vector<8x256xf32>
    %145 = vector.extract_strided_slice %0 {offsets = [2, 0], sizes = [1, 256], strides = [1, 1]} : vector<5x256xf32> to vector<1x256xf32>
    %146 = vector.broadcast %145 : vector<1x256xf32> to vector<8x256xf32>
    %147 = arith.mulf %144, %146 : vector<8x256xf32>
    %c216 = arith.constant 216 : index
    %c0_41 = arith.constant 0 : index
    %148 = vector.load %arg19[%c216, %c0_41] : memref<400x256xf32, #tpu.memory_space<vmem>>, vector<8x256xf32>
    tpu.vector_store %arg19[%c216, %c0_41], %147 {strides = array<i32>} : memref<400x256xf32, #tpu.memory_space<vmem>>, vector<8x256xf32>,
    %149 = vector.extract_strided_slice %4 {offsets = [0, 97], sizes = [8, 256], strides = [1, 1]} : vector<8x512xf32> to vector<8x256xf32>
    %150 = vector.extract_strided_slice %0 {offsets = [3, 0], sizes = [1, 256], strides = [1, 1]} : vector<5x256xf32> to vector<1x256xf32>
    %151 = vector.broadcast %150 : vector<1x256xf32> to vector<8x256xf32>
    %152 = arith.mulf %149, %151 : vector<8x256xf32>
    %c224 = arith.constant 224 : index
    %c0_42 = arith.constant 0 : index
    %153 = vector.load %arg19[%c224, %c0_42] : memref<400x256xf32, #tpu.memory_space<vmem>>, vector<8x256xf32>
    tpu.vector_store %arg19[%c224, %c0_42], %152 {strides = array<i32>} : memref<400x256xf32, #tpu.memory_space<vmem>>, vector<8x256xf32>,
    %154 = vector.extract_strided_slice %4 {offsets = [0, 98], sizes = [8, 256], strides = [1, 1]} : vector<8x512xf32> to vector<8x256xf32>
    %155 = vector.extract_strided_slice %0 {offsets = [4, 0], sizes = [1, 256], strides = [1, 1]} : vector<5x256xf32> to vector<1x256xf32>
    %156 = vector.broadcast %155 : vector<1x256xf32> to vector<8x256xf32>
    %157 = arith.mulf %154, %156 : vector<8x256xf32>
    %c232 = arith.constant 232 : index
    %c0_43 = arith.constant 0 : index
    %158 = vector.load %arg19[%c232, %c0_43] : memref<400x256xf32, #tpu.memory_space<vmem>>, vector<8x256xf32>
    tpu.vector_store %arg19[%c232, %c0_43], %157 {strides = array<i32>} : memref<400x256xf32, #tpu.memory_space<vmem>>, vector<8x256xf32>,
    %159 = vector.extract_strided_slice %4 {offsets = [0, 110], sizes = [8, 256], strides = [1, 1]} : vector<8x512xf32> to vector<8x256xf32>
    %160 = vector.extract_strided_slice %0 {offsets = [0, 0], sizes = [1, 256], strides = [1, 1]} : vector<5x256xf32> to vector<1x256xf32>
    %161 = vector.broadcast %160 : vector<1x256xf32> to vector<8x256xf32>
    %162 = arith.mulf %159, %161 : vector<8x256xf32>
    %c240 = arith.constant 240 : index
    %c0_44 = arith.constant 0 : index
    %163 = vector.load %arg19[%c240, %c0_44] : memref<400x256xf32, #tpu.memory_space<vmem>>, vector<8x256xf32>
    tpu.vector_store %arg19[%c240, %c0_44], %162 {strides = array<i32>} : memref<400x256xf32, #tpu.memory_space<vmem>>, vector<8x256xf32>,
    %164 = vector.extract_strided_slice %4 {offsets = [0, 111], sizes = [8, 256], strides = [1, 1]} : vector<8x512xf32> to vector<8x256xf32>
    %165 = vector.extract_strided_slice %0 {offsets = [1, 0], sizes = [1, 256], strides = [1, 1]} : vector<5x256xf32> to vector<1x256xf32>
    %166 = vector.broadcast %165 : vector<1x256xf32> to vector<8x256xf32>
    %167 = arith.mulf %164, %166 : vector<8x256xf32>
    %c248 = arith.constant 248 : index
    %c0_45 = arith.constant 0 : index
    %168 = vector.load %arg19[%c248, %c0_45] : memref<400x256xf32, #tpu.memory_space<vmem>>, vector<8x256xf32>
    tpu.vector_store %arg19[%c248, %c0_45], %167 {strides = array<i32>} : memref<400x256xf32, #tpu.memory_space<vmem>>, vector<8x256xf32>,
    %169 = vector.extract_strided_slice %4 {offsets = [0, 112], sizes = [8, 256], strides = [1, 1]} : vector<8x512xf32> to vector<8x256xf32>
    %170 = vector.extract_strided_slice %0 {offsets = [2, 0], sizes = [1, 256], strides = [1, 1]} : vector<5x256xf32> to vector<1x256xf32>
    %171 = vector.broadcast %170 : vector<1x256xf32> to vector<8x256xf32>
    %172 = arith.mulf %169, %171 : vector<8x256xf32>
    %c256 = arith.constant 256 : index
    %c0_46 = arith.constant 0 : index
    %173 = vector.load %arg19[%c256, %c0_46] : memref<400x256xf32, #tpu.memory_space<vmem>>, vector<8x256xf32>
    tpu.vector_store %arg19[%c256, %c0_46], %172 {strides = array<i32>} : memref<400x256xf32, #tpu.memory_space<vmem>>, vector<8x256xf32>,
    %174 = vector.extract_strided_slice %4 {offsets = [0, 113], sizes = [8, 256], strides = [1, 1]} : vector<8x512xf32> to vector<8x256xf32>
    %175 = vector.extract_strided_slice %0 {offsets = [3, 0], sizes = [1, 256], strides = [1, 1]} : vector<5x256xf32> to vector<1x256xf32>
    %176 = vector.broadcast %175 : vector<1x256xf32> to vector<8x256xf32>
    %177 = arith.mulf %174, %176 : vector<8x256xf32>
    %c264 = arith.constant 264 : index
    %c0_47 = arith.constant 0 : index
    %178 = vector.load %arg19[%c264, %c0_47] : memref<400x256xf32, #tpu.memory_space<vmem>>, vector<8x256xf32>
    tpu.vector_store %arg19[%c264, %c0_47], %177 {strides = array<i32>} : memref<400x256xf32, #tpu.memory_space<vmem>>, vector<8x256xf32>,
    %179 = vector.extract_strided_slice %4 {offsets = [0, 114], sizes = [8, 256], strides = [1, 1]} : vector<8x512xf32> to vector<8x256xf32>
    %180 = vector.extract_strided_slice %0 {offsets = [4, 0], sizes = [1, 256], strides = [1, 1]} : vector<5x256xf32> to vector<1x256xf32>
    %181 = vector.broadcast %180 : vector<1x256xf32> to vector<8x256xf32>
    %182 = arith.mulf %179, %181 : vector<8x256xf32>
    %c272 = arith.constant 272 : index
    %c0_48 = arith.constant 0 : index
    %183 = vector.load %arg19[%c272, %c0_48] : memref<400x256xf32, #tpu.memory_space<vmem>>, vector<8x256xf32>
    tpu.vector_store %arg19[%c272, %c0_48], %182 {strides = array<i32>} : memref<400x256xf32, #tpu.memory_space<vmem>>, vector<8x256xf32>,
    %184 = vector.extract_strided_slice %4 {offsets = [0, 126], sizes = [8, 256], strides = [1, 1]} : vector<8x512xf32> to vector<8x256xf32>
    %185 = vector.extract_strided_slice %0 {offsets = [0, 0], sizes = [1, 256], strides = [1, 1]} : vector<5x256xf32> to vector<1x256xf32>
    %186 = vector.broadcast %185 : vector<1x256xf32> to vector<8x256xf32>
    %187 = arith.mulf %184, %186 : vector<8x256xf32>
    %c280 = arith.constant 280 : index
    %c0_49 = arith.constant 0 : index
    %188 = vector.load %arg19[%c280, %c0_49] : memref<400x256xf32, #tpu.memory_space<vmem>>, vector<8x256xf32>
    tpu.vector_store %arg19[%c280, %c0_49], %187 {strides = array<i32>} : memref<400x256xf32, #tpu.memory_space<vmem>>, vector<8x256xf32>,
    %189 = vector.extract_strided_slice %4 {offsets = [0, 127], sizes = [8, 256], strides = [1, 1]} : vector<8x512xf32> to vector<8x256xf32>
    %190 = vector.extract_strided_slice %0 {offsets = [1, 0], sizes = [1, 256], strides = [1, 1]} : vector<5x256xf32> to vector<1x256xf32>
    %191 = vector.broadcast %190 : vector<1x256xf32> to vector<8x256xf32>
    %192 = arith.mulf %189, %191 : vector<8x256xf32>
    %c288 = arith.constant 288 : index
    %c0_50 = arith.constant 0 : index
    %193 = vector.load %arg19[%c288, %c0_50] : memref<400x256xf32, #tpu.memory_space<vmem>>, vector<8x256xf32>
    tpu.vector_store %arg19[%c288, %c0_50], %192 {strides = array<i32>} : memref<400x256xf32, #tpu.memory_space<vmem>>, vector<8x256xf32>,
    %194 = vector.extract_strided_slice %4 {offsets = [0, 128], sizes = [8, 256], strides = [1, 1]} : vector<8x512xf32> to vector<8x256xf32>
    %195 = vector.extract_strided_slice %0 {offsets = [2, 0], sizes = [1, 256], strides = [1, 1]} : vector<5x256xf32> to vector<1x256xf32>
    %196 = vector.broadcast %195 : vector<1x256xf32> to vector<8x256xf32>
    %197 = arith.mulf %194, %196 : vector<8x256xf32>
    %c296 = arith.constant 296 : index
    %c0_51 = arith.constant 0 : index
    %198 = vector.load %arg19[%c296, %c0_51] : memref<400x256xf32, #tpu.memory_space<vmem>>, vector<8x256xf32>
    tpu.vector_store %arg19[%c296, %c0_51], %197 {strides = array<i32>} : memref<400x256xf32, #tpu.memory_space<vmem>>, vector<8x256xf32>,
    %199 = vector.extract_strided_slice %4 {offsets = [0, 129], sizes = [8, 256], strides = [1, 1]} : vector<8x512xf32> to vector<8x256xf32>
    %200 = vector.extract_strided_slice %0 {offsets = [3, 0], sizes = [1, 256], strides = [1, 1]} : vector<5x256xf32> to vector<1x256xf32>
    %201 = vector.broadcast %200 : vector<1x256xf32> to vector<8x256xf32>
    %202 = arith.mulf %199, %201 : vector<8x256xf32>
    %c304 = arith.constant 304 : index
    %c0_52 = arith.constant 0 : index
    %203 = vector.load %arg19[%c304, %c0_52] : memref<400x256xf32, #tpu.memory_space<vmem>>, vector<8x256xf32>
    tpu.vector_store %arg19[%c304, %c0_52], %202 {strides = array<i32>} : memref<400x256xf32, #tpu.memory_space<vmem>>, vector<8x256xf32>,
    %204 = vector.extract_strided_slice %4 {offsets = [0, 130], sizes = [8, 256], strides = [1, 1]} : vector<8x512xf32> to vector<8x256xf32>
    %205 = vector.extract_strided_slice %0 {offsets = [4, 0], sizes = [1, 256], strides = [1, 1]} : vector<5x256xf32> to vector<1x256xf32>
    %206 = vector.broadcast %205 : vector<1x256xf32> to vector<8x256xf32>
    %207 = arith.mulf %204, %206 : vector<8x256xf32>
    %c312 = arith.constant 312 : index
    %c0_53 = arith.constant 0 : index
    %208 = vector.load %arg19[%c312, %c0_53] : memref<400x256xf32, #tpu.memory_space<vmem>>, vector<8x256xf32>
    tpu.vector_store %arg19[%c312, %c0_53], %207 {strides = array<i32>} : memref<400x256xf32, #tpu.memory_space<vmem>>, vector<8x256xf32>,
    %209 = vector.extract_strided_slice %4 {offsets = [0, 142], sizes = [8, 256], strides = [1, 1]} : vector<8x512xf32> to vector<8x256xf32>
    %210 = vector.extract_strided_slice %0 {offsets = [0, 0], sizes = [1, 256], strides = [1, 1]} : vector<5x256xf32> to vector<1x256xf32>
    %211 = vector.broadcast %210 : vector<1x256xf32> to vector<8x256xf32>
    %212 = arith.mulf %209, %211 : vector<8x256xf32>
    %c320 = arith.constant 320 : index
    %c0_54 = arith.constant 0 : index
    %213 = vector.load %arg19[%c320, %c0_54] : memref<400x256xf32, #tpu.memory_space<vmem>>, vector<8x256xf32>
    tpu.vector_store %arg19[%c320, %c0_54], %212 {strides = array<i32>} : memref<400x256xf32, #tpu.memory_space<vmem>>, vector<8x256xf32>,
    %214 = vector.extract_strided_slice %4 {offsets = [0, 143], sizes = [8, 256], strides = [1, 1]} : vector<8x512xf32> to vector<8x256xf32>
    %215 = vector.extract_strided_slice %0 {offsets = [1, 0], sizes = [1, 256], strides = [1, 1]} : vector<5x256xf32> to vector<1x256xf32>
    %216 = vector.broadcast %215 : vector<1x256xf32> to vector<8x256xf32>
    %217 = arith.mulf %214, %216 : vector<8x256xf32>
    %c328 = arith.constant 328 : index
    %c0_55 = arith.constant 0 : index
    %218 = vector.load %arg19[%c328, %c0_55] : memref<400x256xf32, #tpu.memory_space<vmem>>, vector<8x256xf32>
    tpu.vector_store %arg19[%c328, %c0_55], %217 {strides = array<i32>} : memref<400x256xf32, #tpu.memory_space<vmem>>, vector<8x256xf32>,
    %219 = vector.extract_strided_slice %4 {offsets = [0, 144], sizes = [8, 256], strides = [1, 1]} : vector<8x512xf32> to vector<8x256xf32>
    %220 = vector.extract_strided_slice %0 {offsets = [2, 0], sizes = [1, 256], strides = [1, 1]} : vector<5x256xf32> to vector<1x256xf32>
    %221 = vector.broadcast %220 : vector<1x256xf32> to vector<8x256xf32>
    %222 = arith.mulf %219, %221 : vector<8x256xf32>
    %c336 = arith.constant 336 : index
    %c0_56 = arith.constant 0 : index
    %223 = vector.load %arg19[%c336, %c0_56] : memref<400x256xf32, #tpu.memory_space<vmem>>, vector<8x256xf32>
    tpu.vector_store %arg19[%c336, %c0_56], %222 {strides = array<i32>} : memref<400x256xf32, #tpu.memory_space<vmem>>, vector<8x256xf32>,
    %224 = vector.extract_strided_slice %4 {offsets = [0, 145], sizes = [8, 256], strides = [1, 1]} : vector<8x512xf32> to vector<8x256xf32>
    %225 = vector.extract_strided_slice %0 {offsets = [3, 0], sizes = [1, 256], strides = [1, 1]} : vector<5x256xf32> to vector<1x256xf32>
    %226 = vector.broadcast %225 : vector<1x256xf32> to vector<8x256xf32>
    %227 = arith.mulf %224, %226 : vector<8x256xf32>
    %c344 = arith.constant 344 : index
    %c0_57 = arith.constant 0 : index
    %228 = vector.load %arg19[%c344, %c0_57] : memref<400x256xf32, #tpu.memory_space<vmem>>, vector<8x256xf32>
    tpu.vector_store %arg19[%c344, %c0_57], %227 {strides = array<i32>} : memref<400x256xf32, #tpu.memory_space<vmem>>, vector<8x256xf32>,
    %229 = vector.extract_strided_slice %4 {offsets = [0, 146], sizes = [8, 256], strides = [1, 1]} : vector<8x512xf32> to vector<8x256xf32>
    %230 = vector.extract_strided_slice %0 {offsets = [4, 0], sizes = [1, 256], strides = [1, 1]} : vector<5x256xf32> to vector<1x256xf32>
    %231 = vector.broadcast %230 : vector<1x256xf32> to vector<8x256xf32>
    %232 = arith.mulf %229, %231 : vector<8x256xf32>
    %c352 = arith.constant 352 : index
    %c0_58 = arith.constant 0 : index
    %233 = vector.load %arg19[%c352, %c0_58] : memref<400x256xf32, #tpu.memory_space<vmem>>, vector<8x256xf32>
    tpu.vector_store %arg19[%c352, %c0_58], %232 {strides = array<i32>} : memref<400x256xf32, #tpu.memory_space<vmem>>, vector<8x256xf32>,
    %234 = vector.extract_strided_slice %4 {offsets = [0, 158], sizes = [8, 256], strides = [1, 1]} : vector<8x512xf32> to vector<8x256xf32>
    %235 = vector.extract_strided_slice %0 {offsets = [0, 0], sizes = [1, 256], strides = [1, 1]} : vector<5x256xf32> to vector<1x256xf32>
    %236 = vector.broadcast %235 : vector<1x256xf32> to vector<8x256xf32>
    %237 = arith.mulf %234, %236 : vector<8x256xf32>
    %c360 = arith.constant 360 : index
    %c0_59 = arith.constant 0 : index
    %238 = vector.load %arg19[%c360, %c0_59] : memref<400x256xf32, #tpu.memory_space<vmem>>, vector<8x256xf32>
    tpu.vector_store %arg19[%c360, %c0_59], %237 {strides = array<i32>} : memref<400x256xf32, #tpu.memory_space<vmem>>, vector<8x256xf32>,
    %239 = vector.extract_strided_slice %4 {offsets = [0, 159], sizes = [8, 256], strides = [1, 1]} : vector<8x512xf32> to vector<8x256xf32>
    %240 = vector.extract_strided_slice %0 {offsets = [1, 0], sizes = [1, 256], strides = [1, 1]} : vector<5x256xf32> to vector<1x256xf32>
    %241 = vector.broadcast %240 : vector<1x256xf32> to vector<8x256xf32>
    %242 = arith.mulf %239, %241 : vector<8x256xf32>
    %c368 = arith.constant 368 : index
    %c0_60 = arith.constant 0 : index
    %243 = vector.load %arg19[%c368, %c0_60] : memref<400x256xf32, #tpu.memory_space<vmem>>, vector<8x256xf32>
    tpu.vector_store %arg19[%c368, %c0_60], %242 {strides = array<i32>} : memref<400x256xf32, #tpu.memory_space<vmem>>, vector<8x256xf32>,
    %244 = vector.extract_strided_slice %4 {offsets = [0, 160], sizes = [8, 256], strides = [1, 1]} : vector<8x512xf32> to vector<8x256xf32>
    %245 = vector.extract_strided_slice %0 {offsets = [2, 0], sizes = [1, 256], strides = [1, 1]} : vector<5x256xf32> to vector<1x256xf32>
    %246 = vector.broadcast %245 : vector<1x256xf32> to vector<8x256xf32>
    %247 = arith.mulf %244, %246 : vector<8x256xf32>
    %c376 = arith.constant 376 : index
    %c0_61 = arith.constant 0 : index
    %248 = vector.load %arg19[%c376, %c0_61] : memref<400x256xf32, #tpu.memory_space<vmem>>, vector<8x256xf32>
    tpu.vector_store %arg19[%c376, %c0_61], %247 {strides = array<i32>} : memref<400x256xf32, #tpu.memory_space<vmem>>, vector<8x256xf32>,
    %249 = vector.extract_strided_slice %4 {offsets = [0, 161], sizes = [8, 256], strides = [1, 1]} : vector<8x512xf32> to vector<8x256xf32>
    %250 = vector.extract_strided_slice %0 {offsets = [3, 0], sizes = [1, 256], strides = [1, 1]} : vector<5x256xf32> to vector<1x256xf32>
    %251 = vector.broadcast %250 : vector<1x256xf32> to vector<8x256xf32>
    %252 = arith.mulf %249, %251 : vector<8x256xf32>
    %c384 = arith.constant 384 : index
    %c0_62 = arith.constant 0 : index
    %253 = vector.load %arg19[%c384, %c0_62] : memref<400x256xf32, #tpu.memory_space<vmem>>, vector<8x256xf32>
    tpu.vector_store %arg19[%c384, %c0_62], %252 {strides = array<i32>} : memref<400x256xf32, #tpu.memory_space<vmem>>, vector<8x256xf32>,
    %254 = vector.extract_strided_slice %4 {offsets = [0, 162], sizes = [8, 256], strides = [1, 1]} : vector<8x512xf32> to vector<8x256xf32>
    %255 = vector.extract_strided_slice %0 {offsets = [4, 0], sizes = [1, 256], strides = [1, 1]} : vector<5x256xf32> to vector<1x256xf32>
    %256 = vector.broadcast %255 : vector<1x256xf32> to vector<8x256xf32>
    %257 = arith.mulf %254, %256 : vector<8x256xf32>
    %c392 = arith.constant 392 : index
    %c0_63 = arith.constant 0 : index
    %258 = vector.load %arg19[%c392, %c0_63] : memref<400x256xf32, #tpu.memory_space<vmem>>, vector<8x256xf32>
    tpu.vector_store %arg19[%c392, %c0_63], %257 {strides = array<i32>} : memref<400x256xf32, #tpu.memory_space<vmem>>, vector<8x256xf32>,
    %c0_64 = arith.constant 0 : index
    %c0_65 = arith.constant 0 : index
    %259 = vector.load %arg6[%c0_64, %c0_65] : memref<40x400xf32, #tpu.memory_space<vmem>>, vector<40x400xf32>
    %c0_66 = arith.constant 0 : index
    %c0_67 = arith.constant 0 : index
    %260 = vector.load %arg19[%c0_66, %c0_67] : memref<400x256xf32, #tpu.memory_space<vmem>>, vector<400x256xf32>
    %cst = arith.constant dense<0.000000e+00> : vector<40x256xf32>
    %261 = tpu.matmul %259, %260, %cst {dimension_numbers = #tpu.dot_dimension_numbers<[1], [0], [0], [1], [0, 0, 1, 1], [], []>} : vector<40x400xf32>, vector<400x256xf32>, vector<40x256xf32> -> vector<40x256xf32>
    %c0_68 = arith.constant 0 : index
    %c0_69 = arith.constant 0 : index
    %262 = vector.load %arg7[%c0_68, %c0_69] : memref<40x1xf32, #tpu.memory_space<vmem>>, vector<40x1xf32>
    %263 = vector.broadcast %262 : vector<40x1xf32> to vector<40x256xf32>
    %264 = arith.addf %261, %263 : vector<40x256xf32>
    %c0_70 = arith.constant 0 : index
    %c0_71 = arith.constant 0 : index
    %265 = vector.load %arg8[%c0_70, %c0_71] : memref<40x1xf32, #tpu.memory_space<vmem>>, vector<40x1xf32>
    %c0_72 = arith.constant 0 : index
    %c0_73 = arith.constant 0 : index
    %266 = vector.load %arg9[%c0_72, %c0_73] : memref<40x1xf32, #tpu.memory_space<vmem>>, vector<40x1xf32>
    %c0_74 = arith.constant 0 : index
    %c0_75 = arith.constant 0 : index
    %267 = vector.load %arg10[%c0_74, %c0_75] : memref<40x40xf32, #tpu.memory_space<vmem>>, vector<40x40xf32>
    %cst_76 = arith.constant dense<0.000000e+00> : vector<40xf32>
    %268 = vector.multi_reduction <add>, %264, %cst_76 [1] : vector<40x256xf32> to vector<40xf32>
    %269 = vector.shape_cast %268 : vector<40xf32> to vector<40x1xf32>
    %cst_77 = arith.constant 3.906250e-03 : f32
    %270 = vector.broadcast %cst_77 : f32 to vector<40x1xf32>
    %271 = arith.mulf %269, %270 : vector<40x1xf32>
    %cst_78 = arith.constant dense<0.000000e+00> : vector<40x1xf32>
    %272 = tpu.matmul %267, %271, %cst_78 {dimension_numbers = #tpu.dot_dimension_numbers<[1], [0], [0], [1], [0, 0, 1, 1], [], []>} : vector<40x40xf32>, vector<40x1xf32>, vector<40x1xf32> -> vector<40x1xf32>
    %273 = vector.broadcast %272 : vector<40x1xf32> to vector<40x256xf32>
    %274 = arith.subf %264, %273 : vector<40x256xf32>
    %275 = arith.mulf %274, %274 : vector<40x256xf32>
    %cst_79 = arith.constant dense<0.000000e+00> : vector<40xf32>
    %276 = vector.multi_reduction <add>, %275, %cst_79 [1] : vector<40x256xf32> to vector<40xf32>
    %277 = vector.shape_cast %276 : vector<40xf32> to vector<40x1xf32>
    %cst_80 = arith.constant 3.906250e-03 : f32
    %278 = vector.broadcast %cst_80 : f32 to vector<40x1xf32>
    %279 = arith.mulf %277, %278 : vector<40x1xf32>
    %cst_81 = arith.constant dense<0.000000e+00> : vector<40x1xf32>
    %280 = tpu.matmul %267, %279, %cst_81 {dimension_numbers = #tpu.dot_dimension_numbers<[1], [0], [0], [1], [0, 0, 1, 1], [], []>} : vector<40x40xf32>, vector<40x1xf32>, vector<40x1xf32> -> vector<40x1xf32>
    %cst_82 = arith.constant 9.99999974E-6 : f32
    %281 = vector.broadcast %cst_82 : f32 to vector<40x1xf32>
    %282 = arith.addf %280, %281 : vector<40x1xf32>
    %283 = math.rsqrt %282 : vector<40x1xf32>
    %284 = vector.broadcast %283 : vector<40x1xf32> to vector<40x256xf32>
    %285 = arith.mulf %274, %284 : vector<40x256xf32>
    %286 = vector.broadcast %265 : vector<40x1xf32> to vector<40x256xf32>
    %287 = arith.mulf %285, %286 : vector<40x256xf32>
    %288 = vector.broadcast %266 : vector<40x1xf32> to vector<40x256xf32>
    %289 = arith.addf %287, %288 : vector<40x256xf32>
    %290 = vector.extract_strided_slice %289 {offsets = [32, 0], sizes = [8, 256], strides = [1, 1]} : vector<40x256xf32> to vector<8x256xf32>
    %291 = vector.extract_strided_slice %6 {offsets = [0, 94], sizes = [8, 256], strides = [1, 1]} : vector<8x512xf32> to vector<8x256xf32>
    %292 = vector.extract_strided_slice %0 {offsets = [0, 0], sizes = [1, 256], strides = [1, 1]} : vector<5x256xf32> to vector<1x256xf32>
    %293 = vector.broadcast %292 : vector<1x256xf32> to vector<8x256xf32>
    %294 = arith.mulf %291, %293 : vector<8x256xf32>
    %c0_83 = arith.constant 0 : index
    %c0_84 = arith.constant 0 : index
    %295 = vector.load %arg20[%c0_83, %c0_84] : memref<200x256xf32, #tpu.memory_space<vmem>>, vector<8x256xf32>
    tpu.vector_store %arg20[%c0_83, %c0_84], %294 {strides = array<i32>} : memref<200x256xf32, #tpu.memory_space<vmem>>, vector<8x256xf32>,
    %296 = vector.extract_strided_slice %6 {offsets = [0, 95], sizes = [8, 256], strides = [1, 1]} : vector<8x512xf32> to vector<8x256xf32>
    %297 = vector.extract_strided_slice %0 {offsets = [1, 0], sizes = [1, 256], strides = [1, 1]} : vector<5x256xf32> to vector<1x256xf32>
    %298 = vector.broadcast %297 : vector<1x256xf32> to vector<8x256xf32>
    %299 = arith.mulf %296, %298 : vector<8x256xf32>
    %c8_85 = arith.constant 8 : index
    %c0_86 = arith.constant 0 : index
    %300 = vector.load %arg20[%c8_85, %c0_86] : memref<200x256xf32, #tpu.memory_space<vmem>>, vector<8x256xf32>
    tpu.vector_store %arg20[%c8_85, %c0_86], %299 {strides = array<i32>} : memref<200x256xf32, #tpu.memory_space<vmem>>, vector<8x256xf32>,
    %301 = vector.extract_strided_slice %6 {offsets = [0, 96], sizes = [8, 256], strides = [1, 1]} : vector<8x512xf32> to vector<8x256xf32>
    %302 = vector.extract_strided_slice %0 {offsets = [2, 0], sizes = [1, 256], strides = [1, 1]} : vector<5x256xf32> to vector<1x256xf32>
    %303 = vector.broadcast %302 : vector<1x256xf32> to vector<8x256xf32>
    %304 = arith.mulf %301, %303 : vector<8x256xf32>
    %c16_87 = arith.constant 16 : index
    %c0_88 = arith.constant 0 : index
    %305 = vector.load %arg20[%c16_87, %c0_88] : memref<200x256xf32, #tpu.memory_space<vmem>>, vector<8x256xf32>
    tpu.vector_store %arg20[%c16_87, %c0_88], %304 {strides = array<i32>} : memref<200x256xf32, #tpu.memory_space<vmem>>, vector<8x256xf32>,
    %306 = vector.extract_strided_slice %6 {offsets = [0, 97], sizes = [8, 256], strides = [1, 1]} : vector<8x512xf32> to vector<8x256xf32>
    %307 = vector.extract_strided_slice %0 {offsets = [3, 0], sizes = [1, 256], strides = [1, 1]} : vector<5x256xf32> to vector<1x256xf32>
    %308 = vector.broadcast %307 : vector<1x256xf32> to vector<8x256xf32>
    %309 = arith.mulf %306, %308 : vector<8x256xf32>
    %c24_89 = arith.constant 24 : index
    %c0_90 = arith.constant 0 : index
    %310 = vector.load %arg20[%c24_89, %c0_90] : memref<200x256xf32, #tpu.memory_space<vmem>>, vector<8x256xf32>
    tpu.vector_store %arg20[%c24_89, %c0_90], %309 {strides = array<i32>} : memref<200x256xf32, #tpu.memory_space<vmem>>, vector<8x256xf32>,
    %311 = vector.extract_strided_slice %6 {offsets = [0, 98], sizes = [8, 256], strides = [1, 1]} : vector<8x512xf32> to vector<8x256xf32>
    %312 = vector.extract_strided_slice %0 {offsets = [4, 0], sizes = [1, 256], strides = [1, 1]} : vector<5x256xf32> to vector<1x256xf32>
    %313 = vector.broadcast %312 : vector<1x256xf32> to vector<8x256xf32>
    %314 = arith.mulf %311, %313 : vector<8x256xf32>
    %c32_91 = arith.constant 32 : index
    %c0_92 = arith.constant 0 : index
    %315 = vector.load %arg20[%c32_91, %c0_92] : memref<200x256xf32, #tpu.memory_space<vmem>>, vector<8x256xf32>
    tpu.vector_store %arg20[%c32_91, %c0_92], %314 {strides = array<i32>} : memref<200x256xf32, #tpu.memory_space<vmem>>, vector<8x256xf32>,
    %316 = vector.extract_strided_slice %6 {offsets = [0, 110], sizes = [8, 256], strides = [1, 1]} : vector<8x512xf32> to vector<8x256xf32>
    %317 = vector.extract_strided_slice %0 {offsets = [0, 0], sizes = [1, 256], strides = [1, 1]} : vector<5x256xf32> to vector<1x256xf32>
    %318 = vector.broadcast %317 : vector<1x256xf32> to vector<8x256xf32>
    %319 = arith.mulf %316, %318 : vector<8x256xf32>
    %c40_93 = arith.constant 40 : index
    %c0_94 = arith.constant 0 : index
    %320 = vector.load %arg20[%c40_93, %c0_94] : memref<200x256xf32, #tpu.memory_space<vmem>>, vector<8x256xf32>
    tpu.vector_store %arg20[%c40_93, %c0_94], %319 {strides = array<i32>} : memref<200x256xf32, #tpu.memory_space<vmem>>, vector<8x256xf32>,
    %321 = vector.extract_strided_slice %6 {offsets = [0, 111], sizes = [8, 256], strides = [1, 1]} : vector<8x512xf32> to vector<8x256xf32>
    %322 = vector.extract_strided_slice %0 {offsets = [1, 0], sizes = [1, 256], strides = [1, 1]} : vector<5x256xf32> to vector<1x256xf32>
    %323 = vector.broadcast %322 : vector<1x256xf32> to vector<8x256xf32>
    %324 = arith.mulf %321, %323 : vector<8x256xf32>
    %c48_95 = arith.constant 48 : index
    %c0_96 = arith.constant 0 : index
    %325 = vector.load %arg20[%c48_95, %c0_96] : memref<200x256xf32, #tpu.memory_space<vmem>>, vector<8x256xf32>
    tpu.vector_store %arg20[%c48_95, %c0_96], %324 {strides = array<i32>} : memref<200x256xf32, #tpu.memory_space<vmem>>, vector<8x256xf32>,
    %326 = vector.extract_strided_slice %6 {offsets = [0, 112], sizes = [8, 256], strides = [1, 1]} : vector<8x512xf32> to vector<8x256xf32>
    %327 = vector.extract_strided_slice %0 {offsets = [2, 0], sizes = [1, 256], strides = [1, 1]} : vector<5x256xf32> to vector<1x256xf32>
    %328 = vector.broadcast %327 : vector<1x256xf32> to vector<8x256xf32>
    %329 = arith.mulf %326, %328 : vector<8x256xf32>
    %c56_97 = arith.constant 56 : index
    %c0_98 = arith.constant 0 : index
    %330 = vector.load %arg20[%c56_97, %c0_98] : memref<200x256xf32, #tpu.memory_space<vmem>>, vector<8x256xf32>
    tpu.vector_store %arg20[%c56_97, %c0_98], %329 {strides = array<i32>} : memref<200x256xf32, #tpu.memory_space<vmem>>, vector<8x256xf32>,
    %331 = vector.extract_strided_slice %6 {offsets = [0, 113], sizes = [8, 256], strides = [1, 1]} : vector<8x512xf32> to vector<8x256xf32>
    %332 = vector.extract_strided_slice %0 {offsets = [3, 0], sizes = [1, 256], strides = [1, 1]} : vector<5x256xf32> to vector<1x256xf32>
    %333 = vector.broadcast %332 : vector<1x256xf32> to vector<8x256xf32>
    %334 = arith.mulf %331, %333 : vector<8x256xf32>
    %c64_99 = arith.constant 64 : index
    %c0_100 = arith.constant 0 : index
    %335 = vector.load %arg20[%c64_99, %c0_100] : memref<200x256xf32, #tpu.memory_space<vmem>>, vector<8x256xf32>
    tpu.vector_store %arg20[%c64_99, %c0_100], %334 {strides = array<i32>} : memref<200x256xf32, #tpu.memory_space<vmem>>, vector<8x256xf32>,
    %336 = vector.extract_strided_slice %6 {offsets = [0, 114], sizes = [8, 256], strides = [1, 1]} : vector<8x512xf32> to vector<8x256xf32>
    %337 = vector.extract_strided_slice %0 {offsets = [4, 0], sizes = [1, 256], strides = [1, 1]} : vector<5x256xf32> to vector<1x256xf32>
    %338 = vector.broadcast %337 : vector<1x256xf32> to vector<8x256xf32>
    %339 = arith.mulf %336, %338 : vector<8x256xf32>
    %c72_101 = arith.constant 72 : index
    %c0_102 = arith.constant 0 : index
    %340 = vector.load %arg20[%c72_101, %c0_102] : memref<200x256xf32, #tpu.memory_space<vmem>>, vector<8x256xf32>
    tpu.vector_store %arg20[%c72_101, %c0_102], %339 {strides = array<i32>} : memref<200x256xf32, #tpu.memory_space<vmem>>, vector<8x256xf32>,
    %341 = vector.extract_strided_slice %6 {offsets = [0, 126], sizes = [8, 256], strides = [1, 1]} : vector<8x512xf32> to vector<8x256xf32>
    %342 = vector.extract_strided_slice %0 {offsets = [0, 0], sizes = [1, 256], strides = [1, 1]} : vector<5x256xf32> to vector<1x256xf32>
    %343 = vector.broadcast %342 : vector<1x256xf32> to vector<8x256xf32>
    %344 = arith.mulf %341, %343 : vector<8x256xf32>
    %c80_103 = arith.constant 80 : index
    %c0_104 = arith.constant 0 : index
    %345 = vector.load %arg20[%c80_103, %c0_104] : memref<200x256xf32, #tpu.memory_space<vmem>>, vector<8x256xf32>
    tpu.vector_store %arg20[%c80_103, %c0_104], %344 {strides = array<i32>} : memref<200x256xf32, #tpu.memory_space<vmem>>, vector<8x256xf32>,
    %346 = vector.extract_strided_slice %6 {offsets = [0, 127], sizes = [8, 256], strides = [1, 1]} : vector<8x512xf32> to vector<8x256xf32>
    %347 = vector.extract_strided_slice %0 {offsets = [1, 0], sizes = [1, 256], strides = [1, 1]} : vector<5x256xf32> to vector<1x256xf32>
    %348 = vector.broadcast %347 : vector<1x256xf32> to vector<8x256xf32>
    %349 = arith.mulf %346, %348 : vector<8x256xf32>
    %c88_105 = arith.constant 88 : index
    %c0_106 = arith.constant 0 : index
    %350 = vector.load %arg20[%c88_105, %c0_106] : memref<200x256xf32, #tpu.memory_space<vmem>>, vector<8x256xf32>
    tpu.vector_store %arg20[%c88_105, %c0_106], %349 {strides = array<i32>} : memref<200x256xf32, #tpu.memory_space<vmem>>, vector<8x256xf32>,
    %351 = vector.extract_strided_slice %6 {offsets = [0, 128], sizes = [8, 256], strides = [1, 1]} : vector<8x512xf32> to vector<8x256xf32>
    %352 = vector.extract_strided_slice %0 {offsets = [2, 0], sizes = [1, 256], strides = [1, 1]} : vector<5x256xf32> to vector<1x256xf32>
    %353 = vector.broadcast %352 : vector<1x256xf32> to vector<8x256xf32>
    %354 = arith.mulf %351, %353 : vector<8x256xf32>
    %c96_107 = arith.constant 96 : index
    %c0_108 = arith.constant 0 : index
    %355 = vector.load %arg20[%c96_107, %c0_108] : memref<200x256xf32, #tpu.memory_space<vmem>>, vector<8x256xf32>
    tpu.vector_store %arg20[%c96_107, %c0_108], %354 {strides = array<i32>} : memref<200x256xf32, #tpu.memory_space<vmem>>, vector<8x256xf32>,
    %356 = vector.extract_strided_slice %6 {offsets = [0, 129], sizes = [8, 256], strides = [1, 1]} : vector<8x512xf32> to vector<8x256xf32>
    %357 = vector.extract_strided_slice %0 {offsets = [3, 0], sizes = [1, 256], strides = [1, 1]} : vector<5x256xf32> to vector<1x256xf32>
    %358 = vector.broadcast %357 : vector<1x256xf32> to vector<8x256xf32>
    %359 = arith.mulf %356, %358 : vector<8x256xf32>
    %c104_109 = arith.constant 104 : index
    %c0_110 = arith.constant 0 : index
    %360 = vector.load %arg20[%c104_109, %c0_110] : memref<200x256xf32, #tpu.memory_space<vmem>>, vector<8x256xf32>
    tpu.vector_store %arg20[%c104_109, %c0_110], %359 {strides = array<i32>} : memref<200x256xf32, #tpu.memory_space<vmem>>, vector<8x256xf32>,
    %361 = vector.extract_strided_slice %6 {offsets = [0, 130], sizes = [8, 256], strides = [1, 1]} : vector<8x512xf32> to vector<8x256xf32>
    %362 = vector.extract_strided_slice %0 {offsets = [4, 0], sizes = [1, 256], strides = [1, 1]} : vector<5x256xf32> to vector<1x256xf32>
    %363 = vector.broadcast %362 : vector<1x256xf32> to vector<8x256xf32>
    %364 = arith.mulf %361, %363 : vector<8x256xf32>
    %c112_111 = arith.constant 112 : index
    %c0_112 = arith.constant 0 : index
    %365 = vector.load %arg20[%c112_111, %c0_112] : memref<200x256xf32, #tpu.memory_space<vmem>>, vector<8x256xf32>
    tpu.vector_store %arg20[%c112_111, %c0_112], %364 {strides = array<i32>} : memref<200x256xf32, #tpu.memory_space<vmem>>, vector<8x256xf32>,
    %366 = vector.extract_strided_slice %6 {offsets = [0, 142], sizes = [8, 256], strides = [1, 1]} : vector<8x512xf32> to vector<8x256xf32>
    %367 = vector.extract_strided_slice %0 {offsets = [0, 0], sizes = [1, 256], strides = [1, 1]} : vector<5x256xf32> to vector<1x256xf32>
    %368 = vector.broadcast %367 : vector<1x256xf32> to vector<8x256xf32>
    %369 = arith.mulf %366, %368 : vector<8x256xf32>
    %c120_113 = arith.constant 120 : index
    %c0_114 = arith.constant 0 : index
    %370 = vector.load %arg20[%c120_113, %c0_114] : memref<200x256xf32, #tpu.memory_space<vmem>>, vector<8x256xf32>
    tpu.vector_store %arg20[%c120_113, %c0_114], %369 {strides = array<i32>} : memref<200x256xf32, #tpu.memory_space<vmem>>, vector<8x256xf32>,
    %371 = vector.extract_strided_slice %6 {offsets = [0, 143], sizes = [8, 256], strides = [1, 1]} : vector<8x512xf32> to vector<8x256xf32>
    %372 = vector.extract_strided_slice %0 {offsets = [1, 0], sizes = [1, 256], strides = [1, 1]} : vector<5x256xf32> to vector<1x256xf32>
    %373 = vector.broadcast %372 : vector<1x256xf32> to vector<8x256xf32>
    %374 = arith.mulf %371, %373 : vector<8x256xf32>
    %c128_115 = arith.constant 128 : index
    %c0_116 = arith.constant 0 : index
    %375 = vector.load %arg20[%c128_115, %c0_116] : memref<200x256xf32, #tpu.memory_space<vmem>>, vector<8x256xf32>
    tpu.vector_store %arg20[%c128_115, %c0_116], %374 {strides = array<i32>} : memref<200x256xf32, #tpu.memory_space<vmem>>, vector<8x256xf32>,
    %376 = vector.extract_strided_slice %6 {offsets = [0, 144], sizes = [8, 256], strides = [1, 1]} : vector<8x512xf32> to vector<8x256xf32>
    %377 = vector.extract_strided_slice %0 {offsets = [2, 0], sizes = [1, 256], strides = [1, 1]} : vector<5x256xf32> to vector<1x256xf32>
    %378 = vector.broadcast %377 : vector<1x256xf32> to vector<8x256xf32>
    %379 = arith.mulf %376, %378 : vector<8x256xf32>
    %c136_117 = arith.constant 136 : index
    %c0_118 = arith.constant 0 : index
    %380 = vector.load %arg20[%c136_117, %c0_118] : memref<200x256xf32, #tpu.memory_space<vmem>>, vector<8x256xf32>
    tpu.vector_store %arg20[%c136_117, %c0_118], %379 {strides = array<i32>} : memref<200x256xf32, #tpu.memory_space<vmem>>, vector<8x256xf32>,
    %381 = vector.extract_strided_slice %6 {offsets = [0, 145], sizes = [8, 256], strides = [1, 1]} : vector<8x512xf32> to vector<8x256xf32>
    %382 = vector.extract_strided_slice %0 {offsets = [3, 0], sizes = [1, 256], strides = [1, 1]} : vector<5x256xf32> to vector<1x256xf32>
    %383 = vector.broadcast %382 : vector<1x256xf32> to vector<8x256xf32>
    %384 = arith.mulf %381, %383 : vector<8x256xf32>
    %c144_119 = arith.constant 144 : index
    %c0_120 = arith.constant 0 : index
    %385 = vector.load %arg20[%c144_119, %c0_120] : memref<200x256xf32, #tpu.memory_space<vmem>>, vector<8x256xf32>
    tpu.vector_store %arg20[%c144_119, %c0_120], %384 {strides = array<i32>} : memref<200x256xf32, #tpu.memory_space<vmem>>, vector<8x256xf32>,
    %386 = vector.extract_strided_slice %6 {offsets = [0, 146], sizes = [8, 256], strides = [1, 1]} : vector<8x512xf32> to vector<8x256xf32>
    %387 = vector.extract_strided_slice %0 {offsets = [4, 0], sizes = [1, 256], strides = [1, 1]} : vector<5x256xf32> to vector<1x256xf32>
    %388 = vector.broadcast %387 : vector<1x256xf32> to vector<8x256xf32>
    %389 = arith.mulf %386, %388 : vector<8x256xf32>
    %c152_121 = arith.constant 152 : index
    %c0_122 = arith.constant 0 : index
    %390 = vector.load %arg20[%c152_121, %c0_122] : memref<200x256xf32, #tpu.memory_space<vmem>>, vector<8x256xf32>
    tpu.vector_store %arg20[%c152_121, %c0_122], %389 {strides = array<i32>} : memref<200x256xf32, #tpu.memory_space<vmem>>, vector<8x256xf32>,
    %391 = vector.extract_strided_slice %6 {offsets = [0, 158], sizes = [8, 256], strides = [1, 1]} : vector<8x512xf32> to vector<8x256xf32>
    %392 = vector.extract_strided_slice %0 {offsets = [0, 0], sizes = [1, 256], strides = [1, 1]} : vector<5x256xf32> to vector<1x256xf32>
    %393 = vector.broadcast %392 : vector<1x256xf32> to vector<8x256xf32>
    %394 = arith.mulf %391, %393 : vector<8x256xf32>
    %c160_123 = arith.constant 160 : index
    %c0_124 = arith.constant 0 : index
    %395 = vector.load %arg20[%c160_123, %c0_124] : memref<200x256xf32, #tpu.memory_space<vmem>>, vector<8x256xf32>
    tpu.vector_store %arg20[%c160_123, %c0_124], %394 {strides = array<i32>} : memref<200x256xf32, #tpu.memory_space<vmem>>, vector<8x256xf32>,
    %396 = vector.extract_strided_slice %6 {offsets = [0, 159], sizes = [8, 256], strides = [1, 1]} : vector<8x512xf32> to vector<8x256xf32>
    %397 = vector.extract_strided_slice %0 {offsets = [1, 0], sizes = [1, 256], strides = [1, 1]} : vector<5x256xf32> to vector<1x256xf32>
    %398 = vector.broadcast %397 : vector<1x256xf32> to vector<8x256xf32>
    %399 = arith.mulf %396, %398 : vector<8x256xf32>
    %c168_125 = arith.constant 168 : index
    %c0_126 = arith.constant 0 : index
    %400 = vector.load %arg20[%c168_125, %c0_126] : memref<200x256xf32, #tpu.memory_space<vmem>>, vector<8x256xf32>
    tpu.vector_store %arg20[%c168_125, %c0_126], %399 {strides = array<i32>} : memref<200x256xf32, #tpu.memory_space<vmem>>, vector<8x256xf32>,
    %401 = vector.extract_strided_slice %6 {offsets = [0, 160], sizes = [8, 256], strides = [1, 1]} : vector<8x512xf32> to vector<8x256xf32>
    %402 = vector.extract_strided_slice %0 {offsets = [2, 0], sizes = [1, 256], strides = [1, 1]} : vector<5x256xf32> to vector<1x256xf32>
    %403 = vector.broadcast %402 : vector<1x256xf32> to vector<8x256xf32>
    %404 = arith.mulf %401, %403 : vector<8x256xf32>
    %c176_127 = arith.constant 176 : index
    %c0_128 = arith.constant 0 : index
    %405 = vector.load %arg20[%c176_127, %c0_128] : memref<200x256xf32, #tpu.memory_space<vmem>>, vector<8x256xf32>
    tpu.vector_store %arg20[%c176_127, %c0_128], %404 {strides = array<i32>} : memref<200x256xf32, #tpu.memory_space<vmem>>, vector<8x256xf32>,
    %406 = vector.extract_strided_slice %6 {offsets = [0, 161], sizes = [8, 256], strides = [1, 1]} : vector<8x512xf32> to vector<8x256xf32>
    %407 = vector.extract_strided_slice %0 {offsets = [3, 0], sizes = [1, 256], strides = [1, 1]} : vector<5x256xf32> to vector<1x256xf32>
    %408 = vector.broadcast %407 : vector<1x256xf32> to vector<8x256xf32>
    %409 = arith.mulf %406, %408 : vector<8x256xf32>
    %c184_129 = arith.constant 184 : index
    %c0_130 = arith.constant 0 : index
    %410 = vector.load %arg20[%c184_129, %c0_130] : memref<200x256xf32, #tpu.memory_space<vmem>>, vector<8x256xf32>
    tpu.vector_store %arg20[%c184_129, %c0_130], %409 {strides = array<i32>} : memref<200x256xf32, #tpu.memory_space<vmem>>, vector<8x256xf32>,
    %411 = vector.extract_strided_slice %6 {offsets = [0, 162], sizes = [8, 256], strides = [1, 1]} : vector<8x512xf32> to vector<8x256xf32>
    %412 = vector.extract_strided_slice %0 {offsets = [4, 0], sizes = [1, 256], strides = [1, 1]} : vector<5x256xf32> to vector<1x256xf32>
    %413 = vector.broadcast %412 : vector<1x256xf32> to vector<8x256xf32>
    %414 = arith.mulf %411, %413 : vector<8x256xf32>
    %c192_131 = arith.constant 192 : index
    %c0_132 = arith.constant 0 : index
    %415 = vector.load %arg20[%c192_131, %c0_132] : memref<200x256xf32, #tpu.memory_space<vmem>>, vector<8x256xf32>
    tpu.vector_store %arg20[%c192_131, %c0_132], %414 {strides = array<i32>} : memref<200x256xf32, #tpu.memory_space<vmem>>, vector<8x256xf32>,
    %c0_133 = arith.constant 0 : index
    %c0_134 = arith.constant 0 : index
    %416 = vector.load %arg11[%c0_133, %c0_134] : memref<8x200xf32, #tpu.memory_space<vmem>>, vector<8x200xf32>
    %c0_135 = arith.constant 0 : index
    %c0_136 = arith.constant 0 : index
    %417 = vector.load %arg20[%c0_135, %c0_136] : memref<200x256xf32, #tpu.memory_space<vmem>>, vector<200x256xf32>
    %cst_137 = arith.constant dense<0.000000e+00> : vector<8x256xf32>
    %418 = tpu.matmul %416, %417, %cst_137 {dimension_numbers = #tpu.dot_dimension_numbers<[1], [0], [0], [1], [0, 0, 1, 1], [], []>} : vector<8x200xf32>, vector<200x256xf32>, vector<8x256xf32> -> vector<8x256xf32>
    %c0_138 = arith.constant 0 : index
    %c0_139 = arith.constant 0 : index
    %419 = vector.load %arg12[%c0_138, %c0_139] : memref<8x1xf32, #tpu.memory_space<vmem>>, vector<8x1xf32>
    %420 = vector.broadcast %419 : vector<8x1xf32> to vector<8x256xf32>
    %421 = arith.addf %418, %420 : vector<8x256xf32>
    %c0_140 = arith.constant 0 : index
    %c0_141 = arith.constant 0 : index
    %422 = vector.load %arg13[%c0_140, %c0_141] : memref<8x1xf32, #tpu.memory_space<vmem>>, vector<8x1xf32>
    %c0_142 = arith.constant 0 : index
    %c0_143 = arith.constant 0 : index
    %423 = vector.load %arg14[%c0_142, %c0_143] : memref<8x1xf32, #tpu.memory_space<vmem>>, vector<8x1xf32>
    %c0_144 = arith.constant 0 : index
    %c0_145 = arith.constant 0 : index
    %424 = vector.load %arg15[%c0_144, %c0_145] : memref<8x8xf32, #tpu.memory_space<vmem>>, vector<8x8xf32>
    %cst_146 = arith.constant dense<0.000000e+00> : vector<8xf32>
    %425 = vector.multi_reduction <add>, %421, %cst_146 [1] : vector<8x256xf32> to vector<8xf32>
    %426 = vector.shape_cast %425 : vector<8xf32> to vector<8x1xf32>
    %cst_147 = arith.constant 3.906250e-03 : f32
    %427 = vector.broadcast %cst_147 : f32 to vector<8x1xf32>
    %428 = arith.mulf %426, %427 : vector<8x1xf32>
    %cst_148 = arith.constant dense<0.000000e+00> : vector<8x1xf32>
    %429 = tpu.matmul %424, %428, %cst_148 {dimension_numbers = #tpu.dot_dimension_numbers<[1], [0], [0], [1], [0, 0, 1, 1], [], []>} : vector<8x8xf32>, vector<8x1xf32>, vector<8x1xf32> -> vector<8x1xf32>
    %430 = vector.broadcast %429 : vector<8x1xf32> to vector<8x256xf32>
    %431 = arith.subf %421, %430 : vector<8x256xf32>
    %432 = arith.mulf %431, %431 : vector<8x256xf32>
    %cst_149 = arith.constant dense<0.000000e+00> : vector<8xf32>
    %433 = vector.multi_reduction <add>, %432, %cst_149 [1] : vector<8x256xf32> to vector<8xf32>
    %434 = vector.shape_cast %433 : vector<8xf32> to vector<8x1xf32>
    %cst_150 = arith.constant 3.906250e-03 : f32
    %435 = vector.broadcast %cst_150 : f32 to vector<8x1xf32>
    %436 = arith.mulf %434, %435 : vector<8x1xf32>
    %cst_151 = arith.constant dense<0.000000e+00> : vector<8x1xf32>
    %437 = tpu.matmul %424, %436, %cst_151 {dimension_numbers = #tpu.dot_dimension_numbers<[1], [0], [0], [1], [0, 0, 1, 1], [], []>} : vector<8x8xf32>, vector<8x1xf32>, vector<8x1xf32> -> vector<8x1xf32>
    %cst_152 = arith.constant 9.99999974E-6 : f32
    %438 = vector.broadcast %cst_152 : f32 to vector<8x1xf32>
    %439 = arith.addf %437, %438 : vector<8x1xf32>
    %440 = math.rsqrt %439 : vector<8x1xf32>
    %441 = vector.broadcast %440 : vector<8x1xf32> to vector<8x256xf32>
    %442 = arith.mulf %431, %441 : vector<8x256xf32>
    %443 = vector.broadcast %422 : vector<8x1xf32> to vector<8x256xf32>
    %444 = arith.mulf %442, %443 : vector<8x256xf32>
    %445 = vector.broadcast %423 : vector<8x1xf32> to vector<8x256xf32>
    %446 = arith.addf %444, %445 : vector<8x256xf32>
    %447 = math.tanh %446 : vector<8x256xf32>
    %448 = vector.extract_strided_slice %289 {offsets = [0, 0], sizes = [8, 256], strides = [1, 1]} : vector<40x256xf32> to vector<8x256xf32>
    %449 = arith.negf %448 : vector<8x256xf32>
    %450 = math.exp %449 : vector<8x256xf32>
    %cst_153 = arith.constant 1.000000e+00 : f32
    %451 = vector.broadcast %cst_153 : f32 to vector<8x256xf32>
    %452 = arith.addf %451, %450 : vector<8x256xf32>
    %453 = arith.divf %451, %452 : vector<8x256xf32>
    %454 = vector.extract_strided_slice %289 {offsets = [8, 0], sizes = [8, 256], strides = [1, 1]} : vector<40x256xf32> to vector<8x256xf32>
    %455 = arith.negf %454 : vector<8x256xf32>
    %456 = math.exp %455 : vector<8x256xf32>
    %cst_154 = arith.constant 1.000000e+00 : f32
    %457 = vector.broadcast %cst_154 : f32 to vector<8x256xf32>
    %458 = arith.addf %457, %456 : vector<8x256xf32>
    %459 = arith.divf %457, %458 : vector<8x256xf32>
    %460 = vector.extract_strided_slice %289 {offsets = [16, 0], sizes = [8, 256], strides = [1, 1]} : vector<40x256xf32> to vector<8x256xf32>
    %461 = math.tanh %460 : vector<8x256xf32>
    %462 = vector.extract_strided_slice %289 {offsets = [24, 0], sizes = [8, 256], strides = [1, 1]} : vector<40x256xf32> to vector<8x256xf32>
    %463 = arith.negf %462 : vector<8x256xf32>
    %464 = math.exp %463 : vector<8x256xf32>
    %cst_155 = arith.constant 1.000000e+00 : f32
    %465 = vector.broadcast %cst_155 : f32 to vector<8x256xf32>
    %466 = arith.addf %465, %464 : vector<8x256xf32>
    %467 = arith.divf %465, %466 : vector<8x256xf32>
    %468 = arith.mulf %459, %8 : vector<8x256xf32>
    %469 = arith.mulf %453, %461 : vector<8x256xf32>
    %470 = arith.addf %468, %469 : vector<8x256xf32>
    %471 = arith.addf %470, %447 : vector<8x256xf32>
    %472 = math.tanh %471 : vector<8x256xf32>
    %473 = arith.mulf %467, %472 : vector<8x256xf32>
    %474 = arith.addf %473, %290 : vector<8x256xf32>
    %cst_156 = arith.constant 0.000000e+00 : f32
    %475 = vector.broadcast %cst_156 : f32 to vector<8x128xf32>
    %c0_157 = arith.constant 0 : index
    %c0_158 = arith.constant 0 : index
    %476 = vector.load %arg21[%c0_157, %c0_158] : memref<8x512xf32, #tpu.memory_space<vmem>>, vector<8x128xf32>
    tpu.vector_store %arg21[%c0_157, %c0_158], %475 {strides = array<i32>} : memref<8x512xf32, #tpu.memory_space<vmem>>, vector<8x128xf32>,
    %cst_159 = arith.constant 0.000000e+00 : f32
    %477 = vector.broadcast %cst_159 : f32 to vector<8x128xf32>
    %c0_160 = arith.constant 0 : index
    %c384_161 = arith.constant 384 : index
    %478 = vector.load %arg21[%c0_160, %c384_161] : memref<8x512xf32, #tpu.memory_space<vmem>>, vector<8x128xf32>
    tpu.vector_store %arg21[%c0_160, %c384_161], %477 {strides = array<i32>} : memref<8x512xf32, #tpu.memory_space<vmem>>, vector<8x128xf32>,
    %c0_162 = arith.constant 0 : index
    %c128_163 = arith.constant 128 : index
    %479 = vector.load %arg21[%c0_162, %c128_163] : memref<8x512xf32, #tpu.memory_space<vmem>>, vector<8x256xf32>
    tpu.vector_store %arg21[%c0_162, %c128_163], %474 {strides = array<i32>} : memref<8x512xf32, #tpu.memory_space<vmem>>, vector<8x256xf32>,
    %c0_164 = arith.constant 0 : index
    %c0_165 = arith.constant 0 : index
    %480 = vector.load %arg21[%c0_164, %c0_165] : memref<8x512xf32, #tpu.memory_space<vmem>>, vector<8x512xf32>
    %481 = vector.extract_strided_slice %480 {offsets = [0, 94], sizes = [8, 256], strides = [1, 1]} : vector<8x512xf32> to vector<8x256xf32>
    %482 = vector.extract_strided_slice %0 {offsets = [0, 0], sizes = [1, 256], strides = [1, 1]} : vector<5x256xf32> to vector<1x256xf32>
    %483 = vector.broadcast %482 : vector<1x256xf32> to vector<8x256xf32>
    %484 = arith.mulf %481, %483 : vector<8x256xf32>
    %c0_166 = arith.constant 0 : index
    %c0_167 = arith.constant 0 : index
    %485 = vector.load %arg20[%c0_166, %c0_167] : memref<200x256xf32, #tpu.memory_space<vmem>>, vector<8x256xf32>
    tpu.vector_store %arg20[%c0_166, %c0_167], %484 {strides = array<i32>} : memref<200x256xf32, #tpu.memory_space<vmem>>, vector<8x256xf32>,
    %486 = vector.extract_strided_slice %480 {offsets = [0, 95], sizes = [8, 256], strides = [1, 1]} : vector<8x512xf32> to vector<8x256xf32>
    %487 = vector.extract_strided_slice %0 {offsets = [1, 0], sizes = [1, 256], strides = [1, 1]} : vector<5x256xf32> to vector<1x256xf32>
    %488 = vector.broadcast %487 : vector<1x256xf32> to vector<8x256xf32>
    %489 = arith.mulf %486, %488 : vector<8x256xf32>
    %c8_168 = arith.constant 8 : index
    %c0_169 = arith.constant 0 : index
    %490 = vector.load %arg20[%c8_168, %c0_169] : memref<200x256xf32, #tpu.memory_space<vmem>>, vector<8x256xf32>
    tpu.vector_store %arg20[%c8_168, %c0_169], %489 {strides = array<i32>} : memref<200x256xf32, #tpu.memory_space<vmem>>, vector<8x256xf32>,
    %491 = vector.extract_strided_slice %480 {offsets = [0, 96], sizes = [8, 256], strides = [1, 1]} : vector<8x512xf32> to vector<8x256xf32>
    %492 = vector.extract_strided_slice %0 {offsets = [2, 0], sizes = [1, 256], strides = [1, 1]} : vector<5x256xf32> to vector<1x256xf32>
    %493 = vector.broadcast %492 : vector<1x256xf32> to vector<8x256xf32>
    %494 = arith.mulf %491, %493 : vector<8x256xf32>
    %c16_170 = arith.constant 16 : index
    %c0_171 = arith.constant 0 : index
    %495 = vector.load %arg20[%c16_170, %c0_171] : memref<200x256xf32, #tpu.memory_space<vmem>>, vector<8x256xf32>
    tpu.vector_store %arg20[%c16_170, %c0_171], %494 {strides = array<i32>} : memref<200x256xf32, #tpu.memory_space<vmem>>, vector<8x256xf32>,
    %496 = vector.extract_strided_slice %480 {offsets = [0, 97], sizes = [8, 256], strides = [1, 1]} : vector<8x512xf32> to vector<8x256xf32>
    %497 = vector.extract_strided_slice %0 {offsets = [3, 0], sizes = [1, 256], strides = [1, 1]} : vector<5x256xf32> to vector<1x256xf32>
    %498 = vector.broadcast %497 : vector<1x256xf32> to vector<8x256xf32>
    %499 = arith.mulf %496, %498 : vector<8x256xf32>
    %c24_172 = arith.constant 24 : index
    %c0_173 = arith.constant 0 : index
    %500 = vector.load %arg20[%c24_172, %c0_173] : memref<200x256xf32, #tpu.memory_space<vmem>>, vector<8x256xf32>
    tpu.vector_store %arg20[%c24_172, %c0_173], %499 {strides = array<i32>} : memref<200x256xf32, #tpu.memory_space<vmem>>, vector<8x256xf32>,
    %501 = vector.extract_strided_slice %480 {offsets = [0, 98], sizes = [8, 256], strides = [1, 1]} : vector<8x512xf32> to vector<8x256xf32>
    %502 = vector.extract_strided_slice %0 {offsets = [4, 0], sizes = [1, 256], strides = [1, 1]} : vector<5x256xf32> to vector<1x256xf32>
    %503 = vector.broadcast %502 : vector<1x256xf32> to vector<8x256xf32>
    %504 = arith.mulf %501, %503 : vector<8x256xf32>
    %c32_174 = arith.constant 32 : index
    %c0_175 = arith.constant 0 : index
    %505 = vector.load %arg20[%c32_174, %c0_175] : memref<200x256xf32, #tpu.memory_space<vmem>>, vector<8x256xf32>
    tpu.vector_store %arg20[%c32_174, %c0_175], %504 {strides = array<i32>} : memref<200x256xf32, #tpu.memory_space<vmem>>, vector<8x256xf32>,
    %506 = vector.extract_strided_slice %480 {offsets = [0, 110], sizes = [8, 256], strides = [1, 1]} : vector<8x512xf32> to vector<8x256xf32>
    %507 = vector.extract_strided_slice %0 {offsets = [0, 0], sizes = [1, 256], strides = [1, 1]} : vector<5x256xf32> to vector<1x256xf32>
    %508 = vector.broadcast %507 : vector<1x256xf32> to vector<8x256xf32>
    %509 = arith.mulf %506, %508 : vector<8x256xf32>
    %c40_176 = arith.constant 40 : index
    %c0_177 = arith.constant 0 : index
    %510 = vector.load %arg20[%c40_176, %c0_177] : memref<200x256xf32, #tpu.memory_space<vmem>>, vector<8x256xf32>
    tpu.vector_store %arg20[%c40_176, %c0_177], %509 {strides = array<i32>} : memref<200x256xf32, #tpu.memory_space<vmem>>, vector<8x256xf32>,
    %511 = vector.extract_strided_slice %480 {offsets = [0, 111], sizes = [8, 256], strides = [1, 1]} : vector<8x512xf32> to vector<8x256xf32>
    %512 = vector.extract_strided_slice %0 {offsets = [1, 0], sizes = [1, 256], strides = [1, 1]} : vector<5x256xf32> to vector<1x256xf32>
    %513 = vector.broadcast %512 : vector<1x256xf32> to vector<8x256xf32>
    %514 = arith.mulf %511, %513 : vector<8x256xf32>
    %c48_178 = arith.constant 48 : index
    %c0_179 = arith.constant 0 : index
    %515 = vector.load %arg20[%c48_178, %c0_179] : memref<200x256xf32, #tpu.memory_space<vmem>>, vector<8x256xf32>
    tpu.vector_store %arg20[%c48_178, %c0_179], %514 {strides = array<i32>} : memref<200x256xf32, #tpu.memory_space<vmem>>, vector<8x256xf32>,
    %516 = vector.extract_strided_slice %480 {offsets = [0, 112], sizes = [8, 256], strides = [1, 1]} : vector<8x512xf32> to vector<8x256xf32>
    %517 = vector.extract_strided_slice %0 {offsets = [2, 0], sizes = [1, 256], strides = [1, 1]} : vector<5x256xf32> to vector<1x256xf32>
    %518 = vector.broadcast %517 : vector<1x256xf32> to vector<8x256xf32>
    %519 = arith.mulf %516, %518 : vector<8x256xf32>
    %c56_180 = arith.constant 56 : index
    %c0_181 = arith.constant 0 : index
    %520 = vector.load %arg20[%c56_180, %c0_181] : memref<200x256xf32, #tpu.memory_space<vmem>>, vector<8x256xf32>
    tpu.vector_store %arg20[%c56_180, %c0_181], %519 {strides = array<i32>} : memref<200x256xf32, #tpu.memory_space<vmem>>, vector<8x256xf32>,
    %521 = vector.extract_strided_slice %480 {offsets = [0, 113], sizes = [8, 256], strides = [1, 1]} : vector<8x512xf32> to vector<8x256xf32>
    %522 = vector.extract_strided_slice %0 {offsets = [3, 0], sizes = [1, 256], strides = [1, 1]} : vector<5x256xf32> to vector<1x256xf32>
    %523 = vector.broadcast %522 : vector<1x256xf32> to vector<8x256xf32>
    %524 = arith.mulf %521, %523 : vector<8x256xf32>
    %c64_182 = arith.constant 64 : index
    %c0_183 = arith.constant 0 : index
    %525 = vector.load %arg20[%c64_182, %c0_183] : memref<200x256xf32, #tpu.memory_space<vmem>>, vector<8x256xf32>
    tpu.vector_store %arg20[%c64_182, %c0_183], %524 {strides = array<i32>} : memref<200x256xf32, #tpu.memory_space<vmem>>, vector<8x256xf32>,
    %526 = vector.extract_strided_slice %480 {offsets = [0, 114], sizes = [8, 256], strides = [1, 1]} : vector<8x512xf32> to vector<8x256xf32>
    %527 = vector.extract_strided_slice %0 {offsets = [4, 0], sizes = [1, 256], strides = [1, 1]} : vector<5x256xf32> to vector<1x256xf32>
    %528 = vector.broadcast %527 : vector<1x256xf32> to vector<8x256xf32>
    %529 = arith.mulf %526, %528 : vector<8x256xf32>
    %c72_184 = arith.constant 72 : index
    %c0_185 = arith.constant 0 : index
    %530 = vector.load %arg20[%c72_184, %c0_185] : memref<200x256xf32, #tpu.memory_space<vmem>>, vector<8x256xf32>
    tpu.vector_store %arg20[%c72_184, %c0_185], %529 {strides = array<i32>} : memref<200x256xf32, #tpu.memory_space<vmem>>, vector<8x256xf32>,
    %531 = vector.extract_strided_slice %480 {offsets = [0, 126], sizes = [8, 256], strides = [1, 1]} : vector<8x512xf32> to vector<8x256xf32>
    %532 = vector.extract_strided_slice %0 {offsets = [0, 0], sizes = [1, 256], strides = [1, 1]} : vector<5x256xf32> to vector<1x256xf32>
    %533 = vector.broadcast %532 : vector<1x256xf32> to vector<8x256xf32>
    %534 = arith.mulf %531, %533 : vector<8x256xf32>
    %c80_186 = arith.constant 80 : index
    %c0_187 = arith.constant 0 : index
    %535 = vector.load %arg20[%c80_186, %c0_187] : memref<200x256xf32, #tpu.memory_space<vmem>>, vector<8x256xf32>
    tpu.vector_store %arg20[%c80_186, %c0_187], %534 {strides = array<i32>} : memref<200x256xf32, #tpu.memory_space<vmem>>, vector<8x256xf32>,
    %536 = vector.extract_strided_slice %480 {offsets = [0, 127], sizes = [8, 256], strides = [1, 1]} : vector<8x512xf32> to vector<8x256xf32>
    %537 = vector.extract_strided_slice %0 {offsets = [1, 0], sizes = [1, 256], strides = [1, 1]} : vector<5x256xf32> to vector<1x256xf32>
    %538 = vector.broadcast %537 : vector<1x256xf32> to vector<8x256xf32>
    %539 = arith.mulf %536, %538 : vector<8x256xf32>
    %c88_188 = arith.constant 88 : index
    %c0_189 = arith.constant 0 : index
    %540 = vector.load %arg20[%c88_188, %c0_189] : memref<200x256xf32, #tpu.memory_space<vmem>>, vector<8x256xf32>
    tpu.vector_store %arg20[%c88_188, %c0_189], %539 {strides = array<i32>} : memref<200x256xf32, #tpu.memory_space<vmem>>, vector<8x256xf32>,
    %541 = vector.extract_strided_slice %480 {offsets = [0, 128], sizes = [8, 256], strides = [1, 1]} : vector<8x512xf32> to vector<8x256xf32>
    %542 = vector.extract_strided_slice %0 {offsets = [2, 0], sizes = [1, 256], strides = [1, 1]} : vector<5x256xf32> to vector<1x256xf32>
    %543 = vector.broadcast %542 : vector<1x256xf32> to vector<8x256xf32>
    %544 = arith.mulf %541, %543 : vector<8x256xf32>
    %c96_190 = arith.constant 96 : index
    %c0_191 = arith.constant 0 : index
    %545 = vector.load %arg20[%c96_190, %c0_191] : memref<200x256xf32, #tpu.memory_space<vmem>>, vector<8x256xf32>
    tpu.vector_store %arg20[%c96_190, %c0_191], %544 {strides = array<i32>} : memref<200x256xf32, #tpu.memory_space<vmem>>, vector<8x256xf32>,
    %546 = vector.extract_strided_slice %480 {offsets = [0, 129], sizes = [8, 256], strides = [1, 1]} : vector<8x512xf32> to vector<8x256xf32>
    %547 = vector.extract_strided_slice %0 {offsets = [3, 0], sizes = [1, 256], strides = [1, 1]} : vector<5x256xf32> to vector<1x256xf32>
    %548 = vector.broadcast %547 : vector<1x256xf32> to vector<8x256xf32>
    %549 = arith.mulf %546, %548 : vector<8x256xf32>
    %c104_192 = arith.constant 104 : index
    %c0_193 = arith.constant 0 : index
    %550 = vector.load %arg20[%c104_192, %c0_193] : memref<200x256xf32, #tpu.memory_space<vmem>>, vector<8x256xf32>
    tpu.vector_store %arg20[%c104_192, %c0_193], %549 {strides = array<i32>} : memref<200x256xf32, #tpu.memory_space<vmem>>, vector<8x256xf32>,
    %551 = vector.extract_strided_slice %480 {offsets = [0, 130], sizes = [8, 256], strides = [1, 1]} : vector<8x512xf32> to vector<8x256xf32>
    %552 = vector.extract_strided_slice %0 {offsets = [4, 0], sizes = [1, 256], strides = [1, 1]} : vector<5x256xf32> to vector<1x256xf32>
    %553 = vector.broadcast %552 : vector<1x256xf32> to vector<8x256xf32>
    %554 = arith.mulf %551, %553 : vector<8x256xf32>
    %c112_194 = arith.constant 112 : index
    %c0_195 = arith.constant 0 : index
    %555 = vector.load %arg20[%c112_194, %c0_195] : memref<200x256xf32, #tpu.memory_space<vmem>>, vector<8x256xf32>
    tpu.vector_store %arg20[%c112_194, %c0_195], %554 {strides = array<i32>} : memref<200x256xf32, #tpu.memory_space<vmem>>, vector<8x256xf32>,
    %556 = vector.extract_strided_slice %480 {offsets = [0, 142], sizes = [8, 256], strides = [1, 1]} : vector<8x512xf32> to vector<8x256xf32>
    %557 = vector.extract_strided_slice %0 {offsets = [0, 0], sizes = [1, 256], strides = [1, 1]} : vector<5x256xf32> to vector<1x256xf32>
    %558 = vector.broadcast %557 : vector<1x256xf32> to vector<8x256xf32>
    %559 = arith.mulf %556, %558 : vector<8x256xf32>
    %c120_196 = arith.constant 120 : index
    %c0_197 = arith.constant 0 : index
    %560 = vector.load %arg20[%c120_196, %c0_197] : memref<200x256xf32, #tpu.memory_space<vmem>>, vector<8x256xf32>
    tpu.vector_store %arg20[%c120_196, %c0_197], %559 {strides = array<i32>} : memref<200x256xf32, #tpu.memory_space<vmem>>, vector<8x256xf32>,
    %561 = vector.extract_strided_slice %480 {offsets = [0, 143], sizes = [8, 256], strides = [1, 1]} : vector<8x512xf32> to vector<8x256xf32>
    %562 = vector.extract_strided_slice %0 {offsets = [1, 0], sizes = [1, 256], strides = [1, 1]} : vector<5x256xf32> to vector<1x256xf32>
    %563 = vector.broadcast %562 : vector<1x256xf32> to vector<8x256xf32>
    %564 = arith.mulf %561, %563 : vector<8x256xf32>
    %c128_198 = arith.constant 128 : index
    %c0_199 = arith.constant 0 : index
    %565 = vector.load %arg20[%c128_198, %c0_199] : memref<200x256xf32, #tpu.memory_space<vmem>>, vector<8x256xf32>
    tpu.vector_store %arg20[%c128_198, %c0_199], %564 {strides = array<i32>} : memref<200x256xf32, #tpu.memory_space<vmem>>, vector<8x256xf32>,
    %566 = vector.extract_strided_slice %480 {offsets = [0, 144], sizes = [8, 256], strides = [1, 1]} : vector<8x512xf32> to vector<8x256xf32>
    %567 = vector.extract_strided_slice %0 {offsets = [2, 0], sizes = [1, 256], strides = [1, 1]} : vector<5x256xf32> to vector<1x256xf32>
    %568 = vector.broadcast %567 : vector<1x256xf32> to vector<8x256xf32>
    %569 = arith.mulf %566, %568 : vector<8x256xf32>
    %c136_200 = arith.constant 136 : index
    %c0_201 = arith.constant 0 : index
    %570 = vector.load %arg20[%c136_200, %c0_201] : memref<200x256xf32, #tpu.memory_space<vmem>>, vector<8x256xf32>
    tpu.vector_store %arg20[%c136_200, %c0_201], %569 {strides = array<i32>} : memref<200x256xf32, #tpu.memory_space<vmem>>, vector<8x256xf32>,
    %571 = vector.extract_strided_slice %480 {offsets = [0, 145], sizes = [8, 256], strides = [1, 1]} : vector<8x512xf32> to vector<8x256xf32>
    %572 = vector.extract_strided_slice %0 {offsets = [3, 0], sizes = [1, 256], strides = [1, 1]} : vector<5x256xf32> to vector<1x256xf32>
    %573 = vector.broadcast %572 : vector<1x256xf32> to vector<8x256xf32>
    %574 = arith.mulf %571, %573 : vector<8x256xf32>
    %c144_202 = arith.constant 144 : index
    %c0_203 = arith.constant 0 : index
    %575 = vector.load %arg20[%c144_202, %c0_203] : memref<200x256xf32, #tpu.memory_space<vmem>>, vector<8x256xf32>
    tpu.vector_store %arg20[%c144_202, %c0_203], %574 {strides = array<i32>} : memref<200x256xf32, #tpu.memory_space<vmem>>, vector<8x256xf32>,
    %576 = vector.extract_strided_slice %480 {offsets = [0, 146], sizes = [8, 256], strides = [1, 1]} : vector<8x512xf32> to vector<8x256xf32>
    %577 = vector.extract_strided_slice %0 {offsets = [4, 0], sizes = [1, 256], strides = [1, 1]} : vector<5x256xf32> to vector<1x256xf32>
    %578 = vector.broadcast %577 : vector<1x256xf32> to vector<8x256xf32>
    %579 = arith.mulf %576, %578 : vector<8x256xf32>
    %c152_204 = arith.constant 152 : index
    %c0_205 = arith.constant 0 : index
    %580 = vector.load %arg20[%c152_204, %c0_205] : memref<200x256xf32, #tpu.memory_space<vmem>>, vector<8x256xf32>
    tpu.vector_store %arg20[%c152_204, %c0_205], %579 {strides = array<i32>} : memref<200x256xf32, #tpu.memory_space<vmem>>, vector<8x256xf32>,
    %581 = vector.extract_strided_slice %480 {offsets = [0, 158], sizes = [8, 256], strides = [1, 1]} : vector<8x512xf32> to vector<8x256xf32>
    %582 = vector.extract_strided_slice %0 {offsets = [0, 0], sizes = [1, 256], strides = [1, 1]} : vector<5x256xf32> to vector<1x256xf32>
    %583 = vector.broadcast %582 : vector<1x256xf32> to vector<8x256xf32>
    %584 = arith.mulf %581, %583 : vector<8x256xf32>
    %c160_206 = arith.constant 160 : index
    %c0_207 = arith.constant 0 : index
    %585 = vector.load %arg20[%c160_206, %c0_207] : memref<200x256xf32, #tpu.memory_space<vmem>>, vector<8x256xf32>
    tpu.vector_store %arg20[%c160_206, %c0_207], %584 {strides = array<i32>} : memref<200x256xf32, #tpu.memory_space<vmem>>, vector<8x256xf32>,
    %586 = vector.extract_strided_slice %480 {offsets = [0, 159], sizes = [8, 256], strides = [1, 1]} : vector<8x512xf32> to vector<8x256xf32>
    %587 = vector.extract_strided_slice %0 {offsets = [1, 0], sizes = [1, 256], strides = [1, 1]} : vector<5x256xf32> to vector<1x256xf32>
    %588 = vector.broadcast %587 : vector<1x256xf32> to vector<8x256xf32>
    %589 = arith.mulf %586, %588 : vector<8x256xf32>
    %c168_208 = arith.constant 168 : index
    %c0_209 = arith.constant 0 : index
    %590 = vector.load %arg20[%c168_208, %c0_209] : memref<200x256xf32, #tpu.memory_space<vmem>>, vector<8x256xf32>
    tpu.vector_store %arg20[%c168_208, %c0_209], %589 {strides = array<i32>} : memref<200x256xf32, #tpu.memory_space<vmem>>, vector<8x256xf32>,
    %591 = vector.extract_strided_slice %480 {offsets = [0, 160], sizes = [8, 256], strides = [1, 1]} : vector<8x512xf32> to vector<8x256xf32>
    %592 = vector.extract_strided_slice %0 {offsets = [2, 0], sizes = [1, 256], strides = [1, 1]} : vector<5x256xf32> to vector<1x256xf32>
    %593 = vector.broadcast %592 : vector<1x256xf32> to vector<8x256xf32>
    %594 = arith.mulf %591, %593 : vector<8x256xf32>
    %c176_210 = arith.constant 176 : index
    %c0_211 = arith.constant 0 : index
    %595 = vector.load %arg20[%c176_210, %c0_211] : memref<200x256xf32, #tpu.memory_space<vmem>>, vector<8x256xf32>
    tpu.vector_store %arg20[%c176_210, %c0_211], %594 {strides = array<i32>} : memref<200x256xf32, #tpu.memory_space<vmem>>, vector<8x256xf32>,
    %596 = vector.extract_strided_slice %480 {offsets = [0, 161], sizes = [8, 256], strides = [1, 1]} : vector<8x512xf32> to vector<8x256xf32>
    %597 = vector.extract_strided_slice %0 {offsets = [3, 0], sizes = [1, 256], strides = [1, 1]} : vector<5x256xf32> to vector<1x256xf32>
    %598 = vector.broadcast %597 : vector<1x256xf32> to vector<8x256xf32>
    %599 = arith.mulf %596, %598 : vector<8x256xf32>
    %c184_212 = arith.constant 184 : index
    %c0_213 = arith.constant 0 : index
    %600 = vector.load %arg20[%c184_212, %c0_213] : memref<200x256xf32, #tpu.memory_space<vmem>>, vector<8x256xf32>
    tpu.vector_store %arg20[%c184_212, %c0_213], %599 {strides = array<i32>} : memref<200x256xf32, #tpu.memory_space<vmem>>, vector<8x256xf32>,
    %601 = vector.extract_strided_slice %480 {offsets = [0, 162], sizes = [8, 256], strides = [1, 1]} : vector<8x512xf32> to vector<8x256xf32>
    %602 = vector.extract_strided_slice %0 {offsets = [4, 0], sizes = [1, 256], strides = [1, 1]} : vector<5x256xf32> to vector<1x256xf32>
    %603 = vector.broadcast %602 : vector<1x256xf32> to vector<8x256xf32>
    %604 = arith.mulf %601, %603 : vector<8x256xf32>
    %c192_214 = arith.constant 192 : index
    %c0_215 = arith.constant 0 : index
    %605 = vector.load %arg20[%c192_214, %c0_215] : memref<200x256xf32, #tpu.memory_space<vmem>>, vector<8x256xf32>
    tpu.vector_store %arg20[%c192_214, %c0_215], %604 {strides = array<i32>} : memref<200x256xf32, #tpu.memory_space<vmem>>, vector<8x256xf32>,
    %c0_216 = arith.constant 0 : index
    %c0_217 = arith.constant 0 : index
    %606 = vector.load %arg11[%c0_216, %c0_217] : memref<8x200xf32, #tpu.memory_space<vmem>>, vector<8x200xf32>
    %c0_218 = arith.constant 0 : index
    %c0_219 = arith.constant 0 : index
    %607 = vector.load %arg20[%c0_218, %c0_219] : memref<200x256xf32, #tpu.memory_space<vmem>>, vector<200x256xf32>
    %cst_220 = arith.constant dense<0.000000e+00> : vector<8x256xf32>
    %608 = tpu.matmul %606, %607, %cst_220 {dimension_numbers = #tpu.dot_dimension_numbers<[1], [0], [0], [1], [0, 0, 1, 1], [], []>} : vector<8x200xf32>, vector<200x256xf32>, vector<8x256xf32> -> vector<8x256xf32>
    %c0_221 = arith.constant 0 : index
    %c0_222 = arith.constant 0 : index
    %609 = vector.load %arg12[%c0_221, %c0_222] : memref<8x1xf32, #tpu.memory_space<vmem>>, vector<8x1xf32>
    %610 = vector.broadcast %609 : vector<8x1xf32> to vector<8x256xf32>
    %611 = arith.addf %608, %610 : vector<8x256xf32>
    %c0_223 = arith.constant 0 : index
    %c0_224 = arith.constant 0 : index
    %612 = vector.load %arg13[%c0_223, %c0_224] : memref<8x1xf32, #tpu.memory_space<vmem>>, vector<8x1xf32>
    %c0_225 = arith.constant 0 : index
    %c0_226 = arith.constant 0 : index
    %613 = vector.load %arg14[%c0_225, %c0_226] : memref<8x1xf32, #tpu.memory_space<vmem>>, vector<8x1xf32>
    %c0_227 = arith.constant 0 : index
    %c0_228 = arith.constant 0 : index
    %614 = vector.load %arg15[%c0_227, %c0_228] : memref<8x8xf32, #tpu.memory_space<vmem>>, vector<8x8xf32>
    %cst_229 = arith.constant dense<0.000000e+00> : vector<8xf32>
    %615 = vector.multi_reduction <add>, %611, %cst_229 [1] : vector<8x256xf32> to vector<8xf32>
    %616 = vector.shape_cast %615 : vector<8xf32> to vector<8x1xf32>
    %cst_230 = arith.constant 3.906250e-03 : f32
    %617 = vector.broadcast %cst_230 : f32 to vector<8x1xf32>
    %618 = arith.mulf %616, %617 : vector<8x1xf32>
    %cst_231 = arith.constant dense<0.000000e+00> : vector<8x1xf32>
    %619 = tpu.matmul %614, %618, %cst_231 {dimension_numbers = #tpu.dot_dimension_numbers<[1], [0], [0], [1], [0, 0, 1, 1], [], []>} : vector<8x8xf32>, vector<8x1xf32>, vector<8x1xf32> -> vector<8x1xf32>
    %620 = vector.broadcast %619 : vector<8x1xf32> to vector<8x256xf32>
    %621 = arith.subf %611, %620 : vector<8x256xf32>
    %622 = arith.mulf %621, %621 : vector<8x256xf32>
    %cst_232 = arith.constant dense<0.000000e+00> : vector<8xf32>
    %623 = vector.multi_reduction <add>, %622, %cst_232 [1] : vector<8x256xf32> to vector<8xf32>
    %624 = vector.shape_cast %623 : vector<8xf32> to vector<8x1xf32>
    %cst_233 = arith.constant 3.906250e-03 : f32
    %625 = vector.broadcast %cst_233 : f32 to vector<8x1xf32>
    %626 = arith.mulf %624, %625 : vector<8x1xf32>
    %cst_234 = arith.constant dense<0.000000e+00> : vector<8x1xf32>
    %627 = tpu.matmul %614, %626, %cst_234 {dimension_numbers = #tpu.dot_dimension_numbers<[1], [0], [0], [1], [0, 0, 1, 1], [], []>} : vector<8x8xf32>, vector<8x1xf32>, vector<8x1xf32> -> vector<8x1xf32>
    %cst_235 = arith.constant 9.99999974E-6 : f32
    %628 = vector.broadcast %cst_235 : f32 to vector<8x1xf32>
    %629 = arith.addf %627, %628 : vector<8x1xf32>
    %630 = math.rsqrt %629 : vector<8x1xf32>
    %631 = vector.broadcast %630 : vector<8x1xf32> to vector<8x256xf32>
    %632 = arith.mulf %621, %631 : vector<8x256xf32>
    %633 = vector.broadcast %612 : vector<8x1xf32> to vector<8x256xf32>
    %634 = arith.mulf %632, %633 : vector<8x256xf32>
    %635 = vector.broadcast %613 : vector<8x1xf32> to vector<8x256xf32>
    %636 = arith.addf %634, %635 : vector<8x256xf32>
    %c0_236 = arith.constant 0 : index
    %c0_237 = arith.constant 0 : index
    %c0_238 = arith.constant 0 : index
    %637 = vector.load %arg16[%c0_236, %c0_237, %c0_238] : memref<1x8x256xf32, #tpu.memory_space<vmem>>, vector<1x8x256xf32>
    %638 = vector.shape_cast %637 : vector<1x8x256xf32> to vector<8x256xf32>
    %639 = vector.shape_cast %474 : vector<8x256xf32> to vector<1x8x256xf32>
    tpu.vector_store %arg16[%c0_236, %c0_237, %c0_238], %639 {strides = array<i32>} : memref<1x8x256xf32, #tpu.memory_space<vmem>>, vector<1x8x256xf32>,
    %c0_239 = arith.constant 0 : index
    %c0_240 = arith.constant 0 : index
    %c0_241 = arith.constant 0 : index
    %640 = vector.load %arg17[%c0_239, %c0_240, %c0_241] : memref<1x8x256xf32, #tpu.memory_space<vmem>>, vector<1x8x256xf32>
    %641 = vector.shape_cast %640 : vector<1x8x256xf32> to vector<8x256xf32>
    %642 = vector.shape_cast %471 : vector<8x256xf32> to vector<1x8x256xf32>
    tpu.vector_store %arg17[%c0_239, %c0_240, %c0_241], %642 {strides = array<i32>} : memref<1x8x256xf32, #tpu.memory_space<vmem>>, vector<1x8x256xf32>,
    %643 = math.tanh %636 : vector<8x256xf32>
    %c0_242 = arith.constant 0 : index
    %c0_243 = arith.constant 0 : index
    %c0_244 = arith.constant 0 : index
    %644 = vector.load %arg18[%c0_242, %c0_243, %c0_244] : memref<1x8x256xf32, #tpu.memory_space<vmem>>, vector<1x8x256xf32>
    %645 = vector.shape_cast %644 : vector<1x8x256xf32> to vector<8x256xf32>
    %646 = vector.shape_cast %643 : vector<8x256xf32> to vector<1x8x256xf32>
    tpu.vector_store %arg18[%c0_242, %c0_243, %c0_244], %646 {strides = array<i32>} : memref<1x8x256xf32, #tpu.memory_space<vmem>>, vector<1x8x256xf32>,
    return
  }
  func.func @transform_0(%arg0: i32) -> (i32, i32, i32) {
    %c0_i32 = arith.constant 0 : i32
    %c0_i32_0 = arith.constant 0 : i32
    %c0_i32_1 = arith.constant 0 : i32
    return %arg0, %c0_i32, %c0_i32_0 : i32, i32, i32
  }
  func.func @transform_1(%arg0: i32) -> (i32, i32, i32) {
    %c0_i32 = arith.constant 0 : i32
    %c0_i32_0 = arith.constant 0 : i32
    %c0_i32_1 = arith.constant 0 : i32
    return %arg0, %c0_i32, %c0_i32_0 : i32, i32, i32
  }
  func.func @transform_2(%arg0: i32) -> (i32, i32, i32) {
    %c0_i32 = arith.constant 0 : i32
    %c0_i32_0 = arith.constant 0 : i32
    %c0_i32_1 = arith.constant 0 : i32
    return %arg0, %c0_i32, %c0_i32_0 : i32, i32, i32
  }
  func.func @transform_3(%arg0: i32) -> (i32, i32, i32) {
    %c0_i32 = arith.constant 0 : i32
    %c0_i32_0 = arith.constant 0 : i32
    %c0_i32_1 = arith.constant 0 : i32
    return %arg0, %c0_i32, %c0_i32_0 : i32, i32, i32
  }
  func.func @transform_4(%arg0: i32) -> (i32, i32) {
    %c0_i32 = arith.constant 0 : i32
    %c0_i32_0 = arith.constant 0 : i32
    %c0_i32_1 = arith.constant 0 : i32
    return %c0_i32, %c0_i32_0 : i32, i32
  }
  func.func @transform_5(%arg0: i32) -> (i32, i32) {
    %c0_i32 = arith.constant 0 : i32
    %c0_i32_0 = arith.constant 0 : i32
    %c0_i32_1 = arith.constant 0 : i32
    return %c0_i32, %c0_i32_0 : i32, i32
  }
  func.func @transform_6(%arg0: i32) -> (i32, i32) {
    %c0_i32 = arith.constant 0 : i32
    %c0_i32_0 = arith.constant 0 : i32
    %c0_i32_1 = arith.constant 0 : i32
    return %c0_i32, %c0_i32_0 : i32, i32
  }
  func.func @transform_7(%arg0: i32) -> (i32, i32) {
    %c0_i32 = arith.constant 0 : i32
    %c0_i32_0 = arith.constant 0 : i32
    %c0_i32_1 = arith.constant 0 : i32
    return %c0_i32, %c0_i32_0 : i32, i32
  }
  func.func @transform_8(%arg0: i32) -> (i32, i32) {
    %c0_i32 = arith.constant 0 : i32
    %c0_i32_0 = arith.constant 0 : i32
    %c0_i32_1 = arith.constant 0 : i32
    return %c0_i32, %c0_i32_0 : i32, i32
  }
  func.func @transform_9(%arg0: i32) -> (i32, i32) {
    %c0_i32 = arith.constant 0 : i32
    %c0_i32_0 = arith.constant 0 : i32
    %c0_i32_1 = arith.constant 0 : i32
    return %c0_i32, %c0_i32_0 : i32, i32
  }
  func.func @transform_10(%arg0: i32) -> (i32, i32) {
    %c0_i32 = arith.constant 0 : i32
    %c0_i32_0 = arith.constant 0 : i32
    %c0_i32_1 = arith.constant 0 : i32
    return %c0_i32, %c0_i32_0 : i32, i32
  }
  func.func @transform_11(%arg0: i32) -> (i32, i32) {
    %c0_i32 = arith.constant 0 : i32
    %c0_i32_0 = arith.constant 0 : i32
    %c0_i32_1 = arith.constant 0 : i32
    return %c0_i32, %c0_i32_0 : i32, i32
  }
  func.func @transform_12(%arg0: i32) -> (i32, i32) {
    %c0_i32 = arith.constant 0 : i32
    %c0_i32_0 = arith.constant 0 : i32
    %c0_i32_1 = arith.constant 0 : i32
    return %c0_i32, %c0_i32_0 : i32, i32
  }
  func.func @transform_13(%arg0: i32) -> (i32, i32) {
    %c0_i32 = arith.constant 0 : i32
    %c0_i32_0 = arith.constant 0 : i32
    %c0_i32_1 = arith.constant 0 : i32
    return %c0_i32, %c0_i32_0 : i32, i32
  }
  func.func @transform_14(%arg0: i32) -> (i32, i32) {
    %c0_i32 = arith.constant 0 : i32
    %c0_i32_0 = arith.constant 0 : i32
    %c0_i32_1 = arith.constant 0 : i32
    return %c0_i32, %c0_i32_0 : i32, i32
  }
  func.func @transform_15(%arg0: i32) -> (i32, i32, i32) {
    %c0_i32 = arith.constant 0 : i32
    %c0_i32_0 = arith.constant 0 : i32
    %c0_i32_1 = arith.constant 0 : i32
    return %arg0, %c0_i32, %c0_i32_0 : i32, i32, i32
  }
  func.func @transform_16(%arg0: i32) -> (i32, i32, i32) {
    %c0_i32 = arith.constant 0 : i32
    %c0_i32_0 = arith.constant 0 : i32
    %c0_i32_1 = arith.constant 0 : i32
    return %arg0, %c0_i32, %c0_i32_0 : i32, i32, i32
  }
  func.func @transform_17(%arg0: i32) -> (i32, i32, i32) {
    %c0_i32 = arith.constant 0 : i32
    %c0_i32_0 = arith.constant 0 : i32
    %c0_i32_1 = arith.constant 0 : i32
    return %arg0, %c0_i32, %c0_i32_0 : i32, i32, i32
  }
}

</mosaic_0001>

<bundles_post_ra>
// kernel: st_lstm_forward.1
= control target key start
LH: loop header
LB: loop body
LE: loop exit
PB: predicated region body
PF: predicated region fallthrough
CT: control target
= control target key end

     0   :  { %s5004_s24 = smov 0   ;;  %s7534_s0 = inlined_call_operand.vmem [shape: f32[2,8,512], index: 0, kind: input, shape index: {}]   ;;  %s7535_s1 = inlined_call_operand.vmem [shape: f32[2,8,512], index: 1, kind: input, shape index: {}]   ;;  %s7536_s2 = inlined_call_operand.vmem [shape: f32[2,8,512], index: 2, kind: input, shape index: {}]   ;;  %s7537_s3 = inlined_call_operand.vmem [shape: f32[2,8,256], index: 3, kind: input, shape index: {}]   ;;  %s7538_s4 = inlined_call_operand.vmem [shape: f32[5,256], index: 4, kind: input, shape index: {}]   ;;  %s7539_s5 = inlined_call_operand.vmem [shape: f32[40,400], index: 5, kind: input, shape index: {}]   ;;  %s7540_s6 = inlined_call_operand.vmem [shape: f32[40,1], index: 6, kind: input, shape index: {}]   ;;  %s7541_s7 = inlined_call_operand.vmem [shape: f32[40,1], index: 7, kind: input, shape index: {}]   ;;  %s7542_s8 = inlined_call_operand.vmem [shape: f32[40,1], index: 8, kind: input, shape index: {}]   ;;  %s7543_s9 = inlined_call_operand.vmem [shape: f32[40,40], index: 9, kind: input, shape index: {}]   ;;  %s7544_s10 = inlined_call_operand.vmem [shape: f32[8,200], index: 10, kind: input, shape index: {}]   ;;  %s7545_s11 = inlined_call_operand.vmem [shape: f32[8,1], index: 11, kind: input, shape index: {}]   ;;  %s7546_s12 = inlined_call_operand.vmem [shape: f32[8,1], index: 12, kind: input, shape index: {}]   ;;  %s7547_s13 = inlined_call_operand.vmem [shape: f32[8,1], index: 13, kind: input, shape index: {}]   ;;  %s7548_s14 = inlined_call_operand.vmem [shape: f32[8,8], index: 14, kind: input, shape index: {}]   ;;  %s7549_s15 = inlined_call_operand.vmem [shape: f32[2,8,256], index: 15, kind: output, shape index: {0}]   ;;  %s7550_s16 = inlined_call_operand.vmem [shape: f32[2,8,256], index: 16, kind: output, shape index: {1}]   ;;  %s7551_s17 = inlined_call_operand.vmem [shape: f32[2,8,256], index: 17, kind: output, shape index: {2}]  }
   0x1   :  { %7865 = sst [smem:[#allocation101_spill]] %s7534_s0 }
   0x2   :  { %7866 = sst [smem:[#allocation102_spill]] %s7535_s1 }
   0x3   :  { %7867 = sst [smem:[#allocation103_spill]] %s7536_s2 }
   0x4   :  { %7868 = sst [smem:[#allocation104_spill]] %s7537_s3 }
   0x5   :  { %7869 = sst [smem:[#allocation105_spill]] %s7538_s4 }
   0x6   :  { %7870 = sst [smem:[#allocation106_spill]] %s7539_s5 }
   0x7   :  { %7871 = sst [smem:[#allocation107_spill]] %s7540_s6 }
   0x8   :  { %7872 = sst [smem:[#allocation108_spill]] %s7541_s7 }
   0x9   :  { %7873 = sst [smem:[#allocation109_spill]] %s7542_s8 }
   0xa   :  { %7874 = sst [smem:[#allocation110_spill]] %s7543_s9 }
   0xb   :  { %7875 = sst [smem:[#allocation111_spill]] %s7544_s10 }
   0xc   :  { %7876 = sst [smem:[#allocation112_spill]] %s7545_s11 }
   0xd   :  { %7877 = sst [smem:[#allocation113_spill]] %s7546_s12 }
   0xe   :  { %7878 = sst [smem:[#allocation114_spill]] %s7547_s13 }
   0xf   :  { %7879 = sst [smem:[#allocation115_spill]] %s7548_s14 }
  0x10   :  { %7880 = sst [smem:[#allocation116_spill]] %s7549_s15 }
  0x11   :  { %7881 = sst [smem:[#allocation117_spill]] %s7550_s16 }
  0x12   :  { %7882 = sst [smem:[#allocation118_spill]] %s7551_s17 }
  0x13 LB: > { %7883 = sst [smem:[#allocation5_spill]] %s4887_s24  ;;  %s4163_s25 = sadd.s32 4294967295, %s4887_s24   ;;  %s4887_s24 = sphi %s5004_s24, %s28_s24  }
  0x14   : > { %p4167_p0 = scmp.ge.s32.totalorder %s4887_s24, 1  ;;  %p522_p1 = scmp.lt.s32.totalorder %s4887_s24, 3 }
  0x16   : > { %p523_p2 = pnand %p4167_p0, %p522_p1 }
  0x18   : > { %526 = sbr.rel (%p523_p2) target bundleno = 2934 (0xb76), region = 80 }
  0x1d   : > { %s7884_s4 = sld [smem:[#allocation105_spill]]  ;;  %s7556_s28 = smov 32   ;;  %vm7727_vm0 = vcmask 252928   ;;  %vm7606_vm1 = vcmask 261120   ;;  %vm7628_vm2 = vcmask 113664   ;;  %vm7724_vm3 = vcmask 908288  }
  0x1e   : > { %s7560_s29 = smov 31   ;;  %s7552_s0 = smov 14   ;;  %vm971_vm4 = vcmask 15360   ;;  %vm7852_vm5 = vcmask 244736   ;;  %vm7725_vm6 = vcmask 900096   ;;  %vm999_vm7 = vcmask 7168  }
  0x1f   : > { %s7564_s19 = smov 111   ;;  %s7554_s1 = smov 2   ;;  %vm7853_vm8 = vcmask 146432   ;;  %vm7863_vm9 = vcmask 801792   ;;  %vm7864_vm10 = vcmask 138240   ;;  %vm754_vm11 = vcmask 793600  }
  0x20   : > { %s7566_s20 = smov 30   ;;  %s7558_s21 = smov 1   ;;  %vm982_vm12 = vcmask 1039360   ;;  %vm7605_vm13 = vcmask 130048   ;;  %vm722_vm14 = vcmask 785408   ;;  %vm954_vm15 = vcmask 1031168  }
  0x21   : > { %s7576_s22 = smov 110   ;;  %s7580_s23 = smov 18  }
  0x22   : > { %s7588_s26 = smov 17   ;;  %s7584_s27 = smov 98  }
  0x23   : > { %v634_v0 = vld [vmem:[%s7884_s4] sm:$0x1f]  ;;  %v635_v4 = vld [vmem:[%s7884_s4 + $0x8] sm:$0x1f]  ;;  %s7590_s30 = smov 97   ;;  %s7562_s18 = smov 16  }
  0x24   : > { %v5015_v1 = vperm.slane %v634_v0, 2  ;;  %v682_v2 = vperm.slane %v634_v0, 1  ;;  %v5017_v3 = vperm.slane %v634_v0, 0  ;;  %v5027_v5 = vperm.slane %v635_v4, 2  ;;  %p599_p3 = scmp.lt.s32.totalorder %s4163_s25, 1  ;;  %s7947_s4 = smov 112  }
  0x25   : > { %v683_v6 = vperm.slane %v635_v4, 1  ;;  %v651_v7 = vperm.slane %v635_v4, 0  ;;  %v5033_v8 = vperm.slane %v634_v0, 4  ;;  %v5039_v9 = vperm.slane %v635_v4, 4  ;;  %s7948_s24 = smov 32   ;;  %s7953_s17 = smov 2  }
  0x26   : > { %7885 = vst [vmem:[#allocation6_spill] sm:$0xff] %v5015_v1  ;;  %1244 = vrot.lane.b32.xlu0 %v5015_v1, %s7556_s28  ;;  %1218 = vrot.lane.b32.xlu2 %v682_v2, %s7560_s29  ;;  %v5046_v10 = vperm.slane %v634_v0, 3  ;;  %v747_v11 = vperm.slane %v635_v4, 3  ;;  %s8376_s25 = smov (!%p599_p3, %s4163_s25), 1  ;;  %s7959_s15 = smov 113  }
  0x27   : > { %1062 = vrot.lane.b32.xlu1 %v5017_v3, %s7552_s0  ;;  %7886 = vst [vmem:[#allocation7_spill] sm:$0xff] %v5027_v5  ;;  %7890 = sst [smem:[#allocation11_spill]] %s8376_s25  ;;  %s7960_s16 = smov 33  }
  0x28   : > { %s7965_s3 = smov 114   ;;  %s7972_s12 = smov 34  }
  0x29   : > { %s7973_s13 = smov 15   ;;  %s7976_s8 = smov 16  }
  0x2a   : > { %s7981_s14 = smov 94   ;;  %s7983_s7 = smov 95  }
  0x2b   : > { %s7984_s10 = smov 96   ;;  %s7986_s9 = smov 97  }
  0x2c   : > { %s8045_s6 = sld [smem:[#allocation107_spill]] }
  0x2d   : > { %s8050_s2 = sld [smem:[#allocation103_spill]] }
  0x2e   : > { %1246 = vrot.lane.b32.xlu0 %v5027_v5, %s7556_s28  ;;  %1220 = vrot.lane.b32.xlu2 %v683_v6, %s7560_s29  ;;  %s7570_s28 = smov 15   ;;  %s7568_s29 = smov 95  }
  0x2f   : > { %1064 = vrot.lane.b32.xlu1 %v651_v7, %s7552_s0  ;;  %s7578_s0 = smov 127   ;;  %s8056_s5 = sld [smem:[#allocation106_spill]] }
  0x30   : > { %s8252_s11 = sld [smem:[#allocation108_spill]] }
  0x36   : > { %838 = vrot.lane.b32.xlu0 %v682_v2, %s7564_s19  ;;  %1036 = vrot.lane.b32.xlu2 %v5033_v8, %s7554_s1 }
  0x37   : > { %840 = vrot.lane.b32.xlu1 %v683_v6, %s7564_s19  ;;  %s7596_s19 = smov 114  }
  0x3e   : > { %1038 = vrot.lane.b32.xlu0 %v5039_v9, %s7554_s1  ;;  %1194 = vrot.lane.b32.xlu2 %v651_v7, %s7566_s20  ;;  %s7592_s1 = smov 96  }
  0x3f   : > { %1192 = vrot.lane.b32.xlu1 %v5017_v3, %s7566_s20  ;;  %s7574_s20 = smov 113  }
  0x46   : > { %1010 = vrot.lane.b32.xlu2 %v5046_v10, %s7558_s21  ;;  %810 = vrot.lane.b32.xlu0 %v5017_v3, %s7576_s22 }
  0x47   : > { %812 = vrot.lane.b32.xlu1 %v651_v7, %s7576_s22  ;;  %s7918_s22 = smov 18  }
  0x4e   : > { %1168 = vrot.lane.b32.xlu2 %v5039_v9, %s7580_s23  ;;  %1012 = vrot.lane.b32.xlu0 %v747_v11, %s7558_s21  ;;  %s7586_s21 = smov 126  }
  0x4f   : > { %1166 = vrot.lane.b32.xlu1 %v5033_v8, %s7580_s23 }
  0x56   : > { %1140 = vrot.lane.b32.xlu2 %v5046_v10, %s7588_s26  ;;  %782 = vrot.lane.b32.xlu0 %v5033_v8, %s7584_s27 }
  0x57   : > { %784 = vrot.lane.b32.xlu1 %v5039_v9, %s7584_s27  ;;  %s7924_s27 = smov 127  }
  0x5e   : > { %752 = vrot.lane.b32.xlu2 %v747_v11, %s7590_s30  ;;  %1142 = vrot.lane.b32.xlu0 %v747_v11, %s7588_s26 }
  0x5f   : > { %750 = vrot.lane.b32.xlu1 %v5046_v10, %s7590_s30 }
  0x66   : > { %1114 = vrot.lane.b32.xlu2 %v5015_v1, %s7562_s18  ;;  %978 = vrot.lane.b32.xlu0 %v682_v2, %s7578_s0 }
  0x67   : > { %980 = vrot.lane.b32.xlu1 %v683_v6, %s7578_s0  ;;  %s7894_s0 = sld [smem:[#allocation102_spill]] }
  0x6e   : > { %720 = vrot.lane.b32.xlu2 %v5027_v5, %s7592_s1  ;;  %1116 = vrot.lane.b32.xlu0 %v5027_v5, %s7562_s18  ;;  %s7572_s18 = smov 94  }
  0x6f   : > { %718 = vrot.lane.b32.xlu1 %v5015_v1, %s7592_s1 }
  0x76   : > { %1088 = vrot.lane.b32.xlu2 %v682_v2, %s7570_s28  ;;  %950 = vrot.lane.b32.xlu0 %v5017_v3, %s7586_s21 }
  0x77   : > { %952 = vrot.lane.b32.xlu1 %v651_v7, %s7586_s21  ;;  %s7896_s21 = sld [smem:[#allocation101_spill]] }
  0x7e   : > { %688 = vrot.lane.b32.xlu2 %v683_v6, %s7568_s29  ;;  %1090 = vrot.lane.b32.xlu0 %v683_v6, %s7570_s28  ;;  %s7582_s28 = smov 112  }
  0x7f   : > { %686 = vrot.lane.b32.xlu1 %v682_v2, %s7568_s29  ;;  %s7594_s29 = smov 34  }
  0x80   : > { %v5085_v12 = vpop.permute.xlu2 %1218 }
  0x81   : > { %7887 = vst [vmem:[#allocation8_spill] sm:$0xff] %v5085_v12 }
  0x86   : > { %654 = vrot.lane.b32.xlu2 %v5017_v3, %s7572_s18  ;;  %922 = vrot.lane.b32.xlu0 %v5033_v8, %s7596_s19 }
  0x87   : > { %924 = vrot.lane.b32.xlu1 %v5039_v9, %s7596_s19 }
  0x88   : > { %v5093_v13 = vpop.permute.xlu2 %1220 }
  0x89   : > { %7888 = vst [vmem:[#allocation9_spill] sm:$0xff] %v5093_v13  ;;  %v5134_v19 = vsel %vm7727_vm0, %v5085_v12, %v5093_v13 }
  0x8a   : > { %7895 = vst [vmem:[#allocation15_spill] sm:$0xff] %v5134_v19 }
  0x8e   : > { %896 = vrot.lane.b32.xlu2 %v747_v11, %s7574_s20  ;;  %656 = vrot.lane.b32.xlu0 %v651_v7, %s7572_s18  ;;  %s5114_s18 = sshll.u32 %s8376_s25, 5  ;;  %s7966_s25 = smov 14  }
  0x8f   : > { %894 = vrot.lane.b32.xlu1 %v5046_v10, %s7574_s20  ;;  %s5126_s23 = scalar_lea.vmem %s7894_s0, %s5114_s18  ;;  %s5143_s26 = scalar_lea.vmem %s7896_s21, %s5114_s18 }
  0x90   : > { %v5101_v14 = vpop.permute.xlu2 %1036  ;;  %v5129_v18 = vld [vmem:[%s5126_s23 + $0x10] sm:$0xff]  ;;  %v5137_v20 = vld [vmem:[%s5126_s23 + $0x8] sm:$0xff]  ;;  %s7598_s0 = smov 33   ;;  %v5187_v37 = vld [vmem:[%s5126_s23] sm:$0xff]  ;;  %s7912_s20 = smov 126  }
  0x91   : > { %7889 = vst [vmem:[#allocation10_spill] sm:$0xff] %v5101_v14  ;;  %v1686_v21 = vmul.f32 %v5085_v12, %v5137_v20  ;;  %v1687_v22 = vmul.f32 %v5134_v19, %v5129_v18  ;;  %v5159_v25 = vld [vmem:[%s5143_s26 + $0x8] sm:$0xff]  ;;  %v5162_v26 = vld [vmem:[%s5143_s26 + $0x10] sm:$0xff]  ;;  %s7913_s21 = smov 98  }
  0x92   : > { %v1044_v47 = vmul.f32 %v5101_v14, %v5159_v25 }
  0x93   : > { %v4268_v32 = vpack.i.bf16 %v1687_v22, %v1686_v21 }
  0x96   : > { %1296 = vrot.lane.b32.xlu2 %v5033_v8, %s7594_s29  ;;  %866 = vrot.lane.b32.xlu0 %v5015_v1, %s7582_s28 }
  0x97   : > { %868 = vrot.lane.b32.xlu1 %v5027_v5, %s7582_s28  ;;  %s7906_s28 = smov 17  }
  0x98   : > { %v5116_v15 = vpop.permute.xlu0 %1244  ;;  %v5118_v16 = vpop.permute.xlu2 %1194 }
  0x99   : > { %7891 = vst [vmem:[#allocation12_spill] sm:$0xff] %v5116_v15  ;;  %v5120_v17 = vpop.permute.xlu1 %1062  ;;  %v1704_v30 = vmul.f32 %v5116_v15, %v5137_v20 }
  0x9a   : > { %7892 = vst [vmem:[#allocation13_spill] sm:$0xff] %v5118_v16  ;;  %v1070_v29 = vmul.f32 %v5120_v17, %v5159_v25 }
  0x9b   : > { %7893 = vst [vmem:[#allocation14_spill] sm:$0xff] %v5120_v17 }
  0x9e   : > { %1272 = vrot.lane.b32.xlu2 %v747_v11, %s7598_s0  ;;  %1298 = vrot.lane.b32.xlu0 %v5039_v9, %s7594_s29  ;;  %s7936_s29 = smov 111  }
  0x9f   : > { %1270 = vrot.lane.b32.xlu1 %v5046_v10, %s7598_s0  ;;  %s7942_s0 = smov 1  }
  0xa0   : > { %v5154_v23 = vpop.permute.xlu0 %1246  ;;  %v5156_v24 = vpop.permute.xlu2 %1010 }
  0xa1   : > { %7897 = vst [vmem:[#allocation16_spill] sm:$0xff] %v5154_v23  ;;  %v5164_v27 = vpop.permute.xlu1 %1064  ;;  %v5169_v28 = vsel %vm7606_vm1, %v5116_v15, %v5154_v23  ;;  %v1018_v2 = vmul.f32 %v5156_v24, %v5159_v25  ;;  %vm7626_vm1 = vcmask 777216  }
  0xa2   : > { %7898 = vst [vmem:[#allocation17_spill] sm:$0xff] %v5156_v24  ;;  %v1705_v31 = vmul.f32 %v5169_v28, %v5129_v18  ;;  %v5180_v33 = vsel %vm7628_vm2, %v5120_v17, %v5164_v27  ;;  %vm7652_vm2 = vcmask 924672  }
  0xa3   : > { %7899 = vst [vmem:[#allocation18_spill] sm:$0xff] %v5164_v27  ;;  %v1071_v34 = vmul.f32 %v5180_v33, %v5162_v26 }
  0xa4   : > { %7900 = vst [vmem:[#allocation19_spill] sm:$0xff] %v5169_v28  ;;  %v4258_v35 = vpack.i.bf16 %v1705_v31, %v1704_v30 }
  0xa5   : > { %7901 = vst [vmem:[#allocation20_spill] sm:$0xff] %v5180_v33  ;;  %v4263_v36 = vpack.i.bf16 %v1071_v34, %v1070_v29 }
  0xa6   : > { %4259 = vrot.lane.b32.xlu0 %v4258_v35, %s7592_s1  ;;  %4269 = vrot.lane.b32.xlu2 %v4268_v32, %s7590_s30  ;;  %s7925_s30 = smov 110   ;;  %s7930_s1 = smov 30  }
  0xa7   : > { %4264 = vrot.lane.b32.xlu1 %v4263_v36, %s7596_s19  ;;  %s7937_s19 = smov 31  }
  0xa8   : > { %v5190_v38 = vpop.permute.xlu0 %838  ;;  %v5192_v39 = vpop.permute.xlu2 %1168 }
  0xa9   : > { %7902 = vst [vmem:[#allocation21_spill] sm:$0xff] %v5190_v38  ;;  %v5194_v40 = vpop.permute.xlu1 %840  ;;  %v1430_v41 = vmul.f32 %v5190_v38, %v5187_v37 }
  0xaa   : > { %7903 = vst [vmem:[#allocation22_spill] sm:$0xff] %v5192_v39  ;;  %v5201_v42 = vsel %vm7724_vm3, %v5190_v38, %v5194_v40 }
  0xab   : > { %7904 = vst [vmem:[#allocation23_spill] sm:$0xff] %v5194_v40  ;;  %v1431_v43 = vmul.f32 %v5201_v42, %v5137_v20  ;;  %v1252_v40 = vmul.f32 %v5116_v15, %v5159_v25 }
  0xac   : > { %7905 = vst [vmem:[#allocation24_spill] sm:$0xff] %v5201_v42 }
  0xad   : > { %v4278_v44 = vpack.i.bf16 %v1431_v43, %v1430_v41 }
  0xaf   : > { %4279 = vrot.lane.b32.xlu1 %v4278_v44, %s7906_s28 }
  0xb0   : > { %v5206_v45 = vpop.permute.xlu0 %1038  ;;  %v5208_v46 = vpop.permute.xlu2 %1140 }
  0xb1   : > { %7907 = vst [vmem:[#allocation25_spill] sm:$0xff] %v5206_v45  ;;  %v5212_v48 = vpop.permute.xlu1 %1192  ;;  %v5217_v49 = vsel %vm971_vm4, %v5101_v14, %v5206_v45  ;;  %v1632_v36 = vmul.f32 %v5208_v46, %v5137_v20 }
  0xb2   : > { %7908 = vst [vmem:[#allocation26_spill] sm:$0xff] %v5208_v46  ;;  %v1045_v50 = vmul.f32 %v5217_v49, %v5162_v26  ;;  %v5224_v51 = vsel %vm7852_vm5, %v5212_v48, %v5118_v16  ;;  %v1668_v52 = vmul.f32 %v5212_v48, %v5137_v20  ;;  %v1578_v16 = vmul.f32 %v5120_v17, %v5137_v20 }
  0xb3   : > { %7909 = vst [vmem:[#allocation27_spill] sm:$0xff] %v5212_v48  ;;  %v1669_v53 = vmul.f32 %v5224_v51, %v5129_v18  ;;  %v1561_v17 = vmul.f32 %v5217_v49, %v5129_v18 }
  0xb4   : > { %7910 = vst [vmem:[#allocation28_spill] sm:$0xff] %v5217_v49  ;;  %v4273_v54 = vpack.i.bf16 %v1045_v50, %v1044_v47 }
  0xb5   : > { %7911 = vst [vmem:[#allocation29_spill] sm:$0xff] %v5224_v51  ;;  %v4283_v55 = vpack.i.bf16 %v1669_v53, %v1668_v52 }
  0xb6   : > { %4274 = vrot.lane.b32.xlu0 %v4273_v54, %s7912_s20 }
  0xb7   : > { %4284 = vrot.lane.b32.xlu2 %v4283_v55, %s7913_s21 }
  0xb8   : > { %v5232_v56 = vpop.permute.xlu2 %752  ;;  %v5234_v57 = vpop.permute.xlu0 %810 }
  0xb9   : > { %7914 = vst [vmem:[#allocation30_spill] sm:$0xff] %v5232_v56  ;;  %v5236_v58 = vpop.permute.xlu1 %812  ;;  %v1412_v59 = vmul.f32 %v5234_v57, %v5187_v37 }
  0xba   : > { %7915 = vst [vmem:[#allocation31_spill] sm:$0xff] %v5234_v57  ;;  %v5243_v60 = vsel %vm7725_vm6, %v5234_v57, %v5236_v58 }
  0xbb   : > { %7916 = vst [vmem:[#allocation32_spill] sm:$0xff] %v5236_v58  ;;  %v1413_v61 = vmul.f32 %v5243_v60, %v5137_v20 }
  0xbc   : > { %7917 = vst [vmem:[#allocation33_spill] sm:$0xff] %v5243_v60 }
  0xbd   : > { %v4293_v62 = vpack.i.bf16 %v1413_v61, %v1412_v59  ;;  %v5319_v61 = vld [vmem:[%s5143_s26] sm:$0xff] }
  0xbf   : > { %4294 = vrot.lane.b32.xlu1 %v4293_v62, %s7918_s22 }
  0xc0   : > { %v5248_v63 = vpop.permute.xlu2 %1114  ;;  %v5250_v0 = vpop.permute.xlu0 %1012 }
  0xc1   : > { %7919 = vst [vmem:[#allocation34_spill] sm:$0xff] %v5248_v63  ;;  %v5254_v3 = vpop.permute.xlu1 %1166  ;;  %v5259_v4 = vsel %vm999_vm7, %v5156_v24, %v5250_v0 }
  0xc2   : > { %7920 = vst [vmem:[#allocation35_spill] sm:$0xff] %v5250_v0  ;;  %v1019_v6 = vmul.f32 %v5259_v4, %v5162_v26  ;;  %v5266_v7 = vsel %vm7853_vm8, %v5254_v3, %v5192_v39  ;;  %v1650_v8 = vmul.f32 %v5254_v3, %v5137_v20 }
  0xc3   : > { %7921 = vst [vmem:[#allocation36_spill] sm:$0xff] %v5254_v3  ;;  %v1651_v9 = vmul.f32 %v5266_v7, %v5129_v18 }
  0xc4   : > { %7922 = vst [vmem:[#allocation37_spill] sm:$0xff] %v5259_v4  ;;  %v4288_v10 = vpack.i.bf16 %v1019_v6, %v1018_v2 }
  0xc5   : > { %7923 = vst [vmem:[#allocation38_spill] sm:$0xff] %v5266_v7  ;;  %v4298_v11 = vpack.i.bf16 %v1651_v9, %v1650_v8 }
  0xc6   : > { %4289 = vrot.lane.b32.xlu0 %v4288_v10, %s7924_s27 }
  0xc7   : > { %4299 = vrot.lane.b32.xlu2 %v4298_v11, %s7925_s30 }
  0xc8   : > { %v5274_v21 = vpop.permute.xlu0 %782  ;;  %v5280_v30 = vpop.permute.xlu2 %720 }
  0xc9   : > { %7926 = vst [vmem:[#allocation39_spill] sm:$0xff] %v5274_v21  ;;  %v5276_v22 = vpop.permute.xlu1 %784  ;;  %v1394_v29 = vmul.f32 %v5274_v21, %v5187_v37 }
  0xca   : > { %7927 = vst [vmem:[#allocation40_spill] sm:$0xff] %v5276_v22  ;;  %v5285_v31 = vsel %vm7863_vm9, %v5274_v21, %v5276_v22 }
  0xcb   : > { %7928 = vst [vmem:[#allocation41_spill] sm:$0xff] %v5280_v30  ;;  %v1395_v32 = vmul.f32 %v5285_v31, %v5137_v20 }
  0xcc   : > { %7929 = vst [vmem:[#allocation42_spill] sm:$0xff] %v5285_v31 }
  0xcd   : > { %v4303_v34 = vpack.i.bf16 %v1395_v32, %v1394_v29  ;;  %v1614_v29 = vmul.f32 %v5248_v63, %v5137_v20 }
  0xcf   : > { %4304 = vrot.lane.b32.xlu0 %v4303_v34, %s7930_s1 }
  0xd0   : > { %v5290_v35 = vpop.permute.xlu0 %1142  ;;  %v5312_v53 = vpop.permute.xlu2 %1088 }
  0xd1   : > { %7931 = vst [vmem:[#allocation43_spill] sm:$0xff] %v5290_v35  ;;  %v5294_v41 = vpop.permute.xlu1 %750  ;;  %v5299_v43 = vsel %vm7864_vm10, %v5208_v46, %v5290_v35 }
  0xd2   : > { %7932 = vst [vmem:[#allocation44_spill] sm:$0xff] %v5294_v41  ;;  %v1633_v44 = vmul.f32 %v5299_v43, %v5129_v18  ;;  %v5306_v47 = vsel %vm754_vm11, %v5294_v41, %v5232_v56  ;;  %v1376_v50 = vmul.f32 %v5294_v41, %v5187_v37 }
  0xd3   : > { %7933 = vst [vmem:[#allocation45_spill] sm:$0xff] %v5299_v43  ;;  %v1377_v52 = vmul.f32 %v5306_v47, %v5137_v20 }
  0xd4   : > { %7934 = vst [vmem:[#allocation46_spill] sm:$0xff] %v5306_v47  ;;  %v4308_v54 = vpack.i.bf16 %v1633_v44, %v1632_v36 }
  0xd5   : > { %7935 = vst [vmem:[#allocation47_spill] sm:$0xff] %v5312_v53  ;;  %v4318_v55 = vpack.i.bf16 %v1377_v52, %v1376_v50 }
  0xd6   : > { %4309 = vrot.lane.b32.xlu1 %v4308_v54, %s7936_s29 }
  0xd7   : > { %4319 = vrot.lane.b32.xlu0 %v4318_v55, %s7937_s19 }
  0xd8   : > { %v5316_v59 = vpop.permute.xlu0 %978  ;;  %v5332_v10 = vpop.permute.xlu2 %688 }
  0xd9   : > { %7938 = vst [vmem:[#allocation48_spill] sm:$0xff] %v5316_v59  ;;  %v5321_v62 = vpop.permute.xlu1 %980  ;;  %v987_v2 = vmul.f32 %v5316_v59, %v5319_v61 }
  0xda   : > { %7939 = vst [vmem:[#allocation49_spill] sm:$0xff] %v5321_v62  ;;  %v5328_v6 = vsel %vm982_vm12, %v5316_v59, %v5321_v62  ;;  %v1543_v62 = vmul.f32 %v5259_v4, %v5129_v18  ;;  %v819_v4 = vmul.f32 %v5234_v57, %v5319_v61 }
  0xdb   : > { %7940 = vst [vmem:[#allocation50_spill] sm:$0xff] %v5328_v6  ;;  %v988_v8 = vmul.f32 %v5328_v6, %v5159_v25 }
  0xdc   : > { %7941 = vst [vmem:[#allocation51_spill] sm:$0xff] %v5332_v10 }
  0xdd   : > { %v4313_v9 = vpack.i.bf16 %v988_v8, %v987_v2 }
  0xdf   : > { %4314 = vrot.lane.b32.xlu2 %v4313_v9, %s7942_s0 }
  0xe0   : > { %v5335_v11 = vpop.permute.xlu0 %1116  ;;  %v5359_v2 = vpop.permute.xlu2 %654 }
  0xe1   : > { %7943 = vst [vmem:[#allocation52_spill] sm:$0xff] %v5335_v11  ;;  %v5339_v32 = vpop.permute.xlu1 %718  ;;  %v5344_v34 = vsel %vm7605_vm13, %v5248_v63, %v5335_v11  ;;  %vm7615_vm13 = vcmask 121856  }
  0xe2   : > { %7944 = vst [vmem:[#allocation53_spill] sm:$0xff] %v5339_v32  ;;  %v1615_v36 = vmul.f32 %v5344_v34, %v5129_v18  ;;  %v5351_v44 = vsel %vm722_vm14, %v5339_v32, %v5280_v30  ;;  %v1358_v50 = vmul.f32 %v5339_v32, %v5187_v37 }
  0xe3   : > { %7945 = vst [vmem:[#allocation54_spill] sm:$0xff] %v5344_v34  ;;  %v1359_v52 = vmul.f32 %v5351_v44, %v5137_v20 }
  0xe4   : > { %7946 = vst [vmem:[#allocation55_spill] sm:$0xff] %v5351_v44  ;;  %v4323_v54 = vpack.i.bf16 %v1615_v36, %v1614_v29 }
  0xe5   : > { %v4333_v55 = vpack.i.bf16 %v1359_v52, %v1358_v50  ;;  %7949 = vst [vmem:[#allocation56_spill] sm:$0xff] %v5359_v2  ;;  %v1596_v52 = vmul.f32 %v5312_v53, %v5137_v20 }
  0xe6   : > { %4324 = vrot.lane.b32.xlu1 %v4323_v54, %s7947_s4 }
  0xe7   : > { %4334 = vrot.lane.b32.xlu0 %v4333_v55, %s7948_s24 }
  0xe8   : > { %v5361_v8 = vpop.permute.xlu0 %950  ;;  %v5386_v35 = vpop.permute.xlu2 %896 }
  0xe9   : > { %7950 = vst [vmem:[#allocation57_spill] sm:$0xff] %v5361_v8  ;;  %v5363_v9 = vpop.permute.xlu1 %952  ;;  %v959_v5 = vmul.f32 %v5361_v8, %v5319_v61 }
  0xea   : > { %7951 = vst [vmem:[#allocation58_spill] sm:$0xff] %v5363_v9  ;;  %v5370_v11 = vsel %vm954_vm15, %v5361_v8, %v5363_v9 }
  0xeb   : > { %7952 = vst [vmem:[#allocation59_spill] sm:$0xff] %v5370_v11  ;;  %v960_v29 = vmul.f32 %v5370_v11, %v5159_v25 }
  0xec   : > { %7957 = vst [vmem:[#allocation63_spill] sm:$0xff] %v5386_v35 }
  0xed   : > { %v4328_v36 = vpack.i.bf16 %v960_v29, %v959_v5 }
  0xef   : > { %4329 = vrot.lane.b32.xlu2 %v4328_v36, %s7953_s17 }
  0xf0   : > { %v5375_v50 = vpop.permute.xlu0 %1090 }
  0xf1   : > { %7954 = vst [vmem:[#allocation60_spill] sm:$0xff] %v5375_v50  ;;  %v5379_v54 = vpop.permute.xlu1 %686  ;;  %v5384_v55 = vsel %vm7615_vm13, %v5312_v53, %v5375_v50  ;;  %vm926_vm13 = vcmask 932864  }
  0xf2   : > { %7955 = vst [vmem:[#allocation61_spill] sm:$0xff] %v5379_v54  ;;  %v1597_v5 = vmul.f32 %v5384_v55, %v5129_v18  ;;  %v5393_v29 = vsel %vm7626_vm1, %v5379_v54, %v5332_v10  ;;  %v1340_v36 = vmul.f32 %v5379_v54, %v5187_v37  ;;  %v1579_v10 = vmul.f32 %v5180_v33, %v5129_v18 }
  0xf3   : > { %7956 = vst [vmem:[#allocation62_spill] sm:$0xff] %v5384_v55  ;;  %v1341_v30 = vmul.f32 %v5393_v29, %v5137_v20  ;;  %vm7645_vm1 = vcmask 769024   ;;  %v1560_v33 = vmul.f32 %v5101_v14, %v5137_v20 }
  0xf4   : > { %7958 = vst [vmem:[#allocation64_spill] sm:$0xff] %v5393_v29  ;;  %v4338_v39 = vpack.i.bf16 %v1597_v5, %v1596_v52  ;;  %v4353_v52 = vpack.i.bf16 %v1579_v10, %v1578_v16 }
  0xf5   : > { %v4348_v56 = vpack.i.bf16 %v1341_v30, %v1340_v36  ;;  %v5418_v30 = vpop.permute.xlu2 %1296 }
  0xf6   : > { %4339 = vrot.lane.b32.xlu1 %v4338_v39, %s7959_s15  ;;  %7964 = vst [vmem:[#allocation68_spill] sm:$0xff] %v5418_v30 }
  0xf7   : > { %4349 = vrot.lane.b32.xlu0 %v4348_v56, %s7960_s16 }
  0xf8   : > { %v5401_v50 = vpop.permute.xlu0 %922 }
  0xf9   : > { %7961 = vst [vmem:[#allocation65_spill] sm:$0xff] %v5401_v50  ;;  %v5407_v22 = vpop.permute.xlu1 %924  ;;  %v931_v13 = vmul.f32 %v5401_v50, %v5319_v61 }
  0xfa   : > { %7962 = vst [vmem:[#allocation66_spill] sm:$0xff] %v5407_v22  ;;  %v5414_v39 = vsel %vm926_vm13, %v5401_v50, %v5407_v22  ;;  %v1322_v22 = vmul.f32 %v5359_v2, %v5187_v37 }
  0xfb   : > { %7963 = vst [vmem:[#allocation67_spill] sm:$0xff] %v5414_v39  ;;  %v932_v56 = vmul.f32 %v5414_v39, %v5159_v25 }
  0xfd   : > { %v4343_v5 = vpack.i.bf16 %v932_v56, %v931_v13  ;;  %v5448_v9 = vpop.permute.xlu2 %1272 }
  0xfe   : > { %4354 = vrot.lane.b32.xlu1 %v4353_v52, %s7965_s3  ;;  %7971 = vst [vmem:[#allocation73_spill] sm:$0xff] %v5448_v9 }
  0xff   : > { %4344 = vrot.lane.b32.xlu2 %v4343_v5, %s7966_s25  ;;  %v4368_v5 = vpack.i.bf16 %v1561_v17, %v1560_v33 }
 0x100   : > { %v5422_v36 = vpop.permute.xlu0 %656 }
 0x101   : > { %7967 = vst [vmem:[#allocation69_spill] sm:$0xff] %v5422_v36  ;;  %v5430_v58 = vpop.permute.xlu1 %894  ;;  %v5435_v13 = vsel %vm7645_vm1, %v5359_v2, %v5422_v36  ;;  %vm7658_vm1 = vcmask 916480  }
 0x102   : > { %7968 = vst [vmem:[#allocation70_spill] sm:$0xff] %v5430_v58  ;;  %v1323_v16 = vmul.f32 %v5435_v13, %v5137_v20  ;;  %v5442_v10 = vsel %vm7652_vm2, %v5430_v58, %v5386_v35  ;;  %v903_v56 = vmul.f32 %v5430_v58, %v5319_v61  ;;  %v1542_v35 = vmul.f32 %v5156_v24, %v5137_v20 }
 0x103   : > { %7969 = vst [vmem:[#allocation71_spill] sm:$0xff] %v5435_v13  ;;  %v904_v52 = vmul.f32 %v5442_v10, %v5159_v25  ;;  %vm7842_vm2 = vcmask 277504   ;;  %v820_v24 = vmul.f32 %v5243_v60, %v5159_v25 }
 0x104   : > { %7970 = vst [vmem:[#allocation72_spill] sm:$0xff] %v5442_v10  ;;  %v4363_v49 = vpack.i.bf16 %v1323_v16, %v1322_v22  ;;  %v4383_v22 = vpack.i.bf16 %v1543_v62, %v1542_v35 }
 0x105   : > { %v4358_v14 = vpack.i.bf16 %v904_v52, %v903_v56  ;;  %v5472_v56 = vpop.permute.xlu2 %4269  ;;  %v4398_v57 = vpack.i.bf16 %v820_v24, %v819_v4  ;;  %v1253_v24 = vmul.f32 %v5169_v28, %v5162_v26 }
 0x106   : > { %4369 = vrot.lane.b32.xlu1 %v4368_v5, %s7912_s20  ;;  %4364 = vrot.lane.b32.xlu0 %v4363_v49, %s7972_s12  ;;  %v1304_v5 = vmul.f32 %v5418_v30, %v5159_v25  ;;  %v7982_v55 = vunpack.i.h.bf16 %v5472_v56 }
 0x107   : > { %4359 = vrot.lane.b32.xlu2 %v4358_v14, %s7973_s13 }
 0x108   : > { %v5453_v36 = vpop.permute.xlu0 %866 }
 0x109   : > { %v5459_v17 = vpop.permute.xlu1 %868  ;;  %v875_v33 = vmul.f32 %v5453_v36, %v5319_v61 }
 0x10a   : > { %7974 = vst [vmem:[#allocation74_spill] sm:$0xff] %v5459_v17  ;;  %v5466_v49 = vsel %vm7658_vm1, %v5453_v36, %v5459_v17  ;;  %vm7862_vm1 = vcmask 269312  }
 0x10b   : > { %7975 = vst [vmem:[#allocation75_spill] sm:$0xff] %v5466_v49  ;;  %v876_v14 = vmul.f32 %v5466_v49, %v5159_v25 }
 0x10d   : > { %v4373_v16 = vpack.i.bf16 %v876_v14, %v875_v33  ;;  %v847_v33 = vmul.f32 %v5190_v38, %v5319_v61  ;;  %v848_v14 = vmul.f32 %v5201_v42, %v5159_v25 }
 0x10e   : > { %4384 = vrot.lane.b32.xlu1 %v4383_v22, %s7924_s27 }
 0x10f   : > { %4374 = vrot.lane.b32.xlu2 %v4373_v16, %s7976_s8  ;;  %v4388_v17 = vpack.i.bf16 %v848_v14, %v847_v33 }
 0x110   : > { %v5474_v52 = vpop.permute.xlu0 %1298 }
 0x111   : > { %7977 = vst [vmem:[#allocation76_spill] sm:$0xff] %v5474_v52  ;;  %v5482_v35 = vpop.permute.xlu1 %1270  ;;  %v5487_v62 = vsel %vm7842_vm2, %v5418_v30, %v5474_v52  ;;  %v5508_v23 = vpop.permute.xlu2 %4284 }
 0x112   : > { %7978 = vst [vmem:[#allocation77_spill] sm:$0xff] %v5482_v35  ;;  %v1305_v22 = vmul.f32 %v5487_v62, %v5162_v26  ;;  %v5498_v16 = vsel %vm7862_vm1, %v5482_v35, %v5448_v9  ;;  %v1278_v38 = vmul.f32 %v5482_v35, %v5159_v25 }
 0x113   : > { %7979 = vst [vmem:[#allocation78_spill] sm:$0xff] %v5487_v62  ;;  %v1279_v42 = vmul.f32 %v5498_v16, %v5162_v26 }
 0x114   : > { %7980 = vst [vmem:[#allocation79_spill] sm:$0xff] %v5498_v16  ;;  %v4378_v60 = vpack.i.bf16 %v1305_v22, %v1304_v5 }
 0x115   : > { %v4393_v52 = vpack.i.bf16 %v1279_v42, %v1278_v38  ;;  %v4403_v42 = vpack.i.bf16 %v1253_v24, %v1252_v40 }
 0x116   : > { %4379 = vrot.lane.b32.xlu0 %v4378_v60, %s7981_s14  ;;  %4399 = vrot.lane.b32.xlu1 %v4398_v57, %s7918_s22  ;;  %v1740_v57 = vmul.f32 %v5418_v30, %v5137_v20  ;;  %v4271_v60 = vunpack.i.l.bf16 %v5472_v56  ;;  %v4286_v30 = vunpack.i.l.bf16 %v5508_v23 }
 0x117   : > { %4389 = vrot.lane.b32.xlu2 %v4388_v17, %s7906_s28  ;;  %v1741_v17 = vmul.f32 %v5487_v62, %v5129_v18 }
 0x118   : > { %v5510_v9 = vpop.permute.xlu0 %4259  ;;  %v1698_v38 = vsel %vm754_vm11, %v4271_v60, %v7982_v55  ;;  %v1521_v55 = vmul.f32 %v5328_v6, %v5137_v20 }
 0x119   : > { %v7690_v4 = vunpack.i.h.bf16 %v5510_v9  ;;  %v4261_v5 = vunpack.i.l.bf16 %v5510_v9  ;;  %v5519_v33 = vpop.permute.xlu1 %4264  ;;  %v4413_v28 = vpack.i.bf16 %v1741_v17, %v1740_v57 }
 0x11a   : > { %v7691_v14 = vunpack.i.h.bf16 %v5519_v33  ;;  %v4266_v22 = vunpack.i.l.bf16 %v5519_v33 }
 0x11b   : > { %v1716_v0 = vsel %vm722_vm14, %v4261_v5, %v7690_v4  ;;  %v7985_v5 = vunpack.i.h.bf16 %v5508_v23 }
 0x11c   : > { %v1082_v62 = vsel %vm926_vm13, %v4266_v22, %v7691_v14  ;;  %1987 = vmatpush.msra.mxu2 %v1716_v0  ;;  %v1520_v0 = vmul.f32 %v5316_v59, %v5187_v37 }
 0x11d   : > { %1923 = vmatpush.msra.mxu0 %v1082_v62  ;;  %v1680_v4 = vsel %vm7863_vm9, %v4286_v30, %v7985_v5  ;;  %v1503_v62 = vmul.f32 %v5370_v11, %v5137_v20  ;;  %v792_v30 = vmul.f32 %v5285_v31, %v5159_v25 }
 0x11e   : > { %1988 = vmatpush.msra.mxu2 %v1698_v38  ;;  %4394 = vrot.lane.b32.xlu0 %v4393_v52, %s7983_s7  ;;  %v1502_v52 = vmul.f32 %v5361_v8, %v5187_v37  ;;  %v4408_v38 = vpack.i.bf16 %v1521_v55, %v1520_v0  ;;  %v1227_v0 = vmul.f32 %v5134_v19, %v5162_v26 }
 0x11f   : > { %4404 = vrot.lane.b32.xlu2 %v4403_v42, %s7984_s10  ;;  %4414 = vrot.lane.b32.xlu1 %v4413_v28, %s7981_s14  ;;  %v791_v28 = vmul.f32 %v5274_v21, %v5319_v61  ;;  %v1200_v55 = vmul.f32 %v5212_v48, %v5159_v25  ;;  %v8008_v21 = vld [vmem:[#allocation63_spill] sm:$0xff] }
 0x120   : > { %1989 = vmatpush.msra.mxu2 %v1680_v4  ;;  %v4428_v5 = vpack.i.bf16 %v1503_v62, %v1502_v52  ;;  %v1201_v52 = vmul.f32 %v5224_v51, %v5162_v26  ;;  %v905_v15 = vmul.f32 %v8008_v21, %v5162_v26 }
 0x121   : > { %v5548_v40 = vpop.permute.xlu1 %4279  ;;  %v5558_v24 = vpop.permute.xlu2 %4299  ;;  %v4418_v14 = vpack.i.bf16 %v792_v30, %v791_v28  ;;  %v1723_v30 = vmul.f32 %v5498_v16, %v5129_v18 }
 0x122   : > { %v7696_v57 = vunpack.i.h.bf16 %v5548_v40  ;;  %v4281_v60 = vunpack.i.l.bf16 %v5548_v40  ;;  %v7695_v4 = vunpack.i.h.bf16 %v5558_v24  ;;  %v4301_v17 = vunpack.i.l.bf16 %v5558_v24 }
 0x124   : > { %v1442_v22 = vsel %vm7864_vm10, %v4281_v60, %v7696_v57  ;;  %v1662_v42 = vsel %vm7725_vm6, %v4301_v17, %v7695_v4  ;;  %v1226_v60 = vmul.f32 %v5085_v12, %v5159_v25  ;;  %v760_v4 = vmul.f32 %v5306_v47, %v5159_v25 }
 0x125   : > { %1955 = vmatpush.msra.mxu1 %v1442_v22  ;;  %1990 = vmatpush.msra.mxu2 %v1662_v42  ;;  %vm7994_vm6 = vcmask 113664  }
 0x126   : > { %4409 = vrot.lane.b32.xlu0 %v4408_v38, %s7942_s0  ;;  %v4423_v22 = vpack.i.bf16 %v1227_v0, %v1226_v60  ;;  %v4443_v38 = vpack.i.bf16 %v1201_v52, %v1200_v55  ;;  %v1175_v60 = vmul.f32 %v5266_v7, %v5162_v26  ;;  %v1484_v0 = vmul.f32 %v5401_v50, %v5187_v37 }
 0x127   : > { %4429 = vrot.lane.b32.xlu1 %v4428_v5, %s7953_s17  ;;  %4419 = vrot.lane.b32.xlu2 %v4418_v14, %s7930_s1  ;;  %v1722_v14 = vmul.f32 %v5482_v35, %v5137_v20  ;;  %v759_v5 = vmul.f32 %v5294_v41, %v5319_v61  ;;  %v1485_v55 = vmul.f32 %v5414_v39, %v5137_v20 }
 0x128   : > { %v5573_v31 = vpop.permute.xlu0 %4274  ;;  %v1149_v7 = vmul.f32 %v5299_v43, %v5162_v26  ;;  %v695_v43 = vmul.f32 %v5379_v54, %v5319_v61 }
 0x129   : > { %v7697_v62 = vunpack.i.h.bf16 %v5573_v31  ;;  %v4276_v28 = vunpack.i.l.bf16 %v5573_v31  ;;  %v4433_v42 = vpack.i.bf16 %v1723_v30, %v1722_v14 }
 0x12b   : > { %v1056_v17 = vsel %vm954_vm15, %v4276_v28, %v7697_v62  ;;  %v1174_v28 = vmul.f32 %v5254_v3, %v5159_v25  ;;  %v1148_v62 = vmul.f32 %v5208_v46, %v5159_v25 }
 0x12c   : > { %1924 = vmatpush.msra.mxu0 %v1056_v17  ;;  %v4438_v17 = vpack.i.bf16 %v760_v4, %v759_v5  ;;  %v727_v4 = vmul.f32 %v5339_v32, %v5319_v61  ;;  %v728_v5 = vmul.f32 %v5351_v44, %v5159_v25 }
 0x12d   : > { %v4473_v3 = vpack.i.bf16 %v1149_v7, %v1148_v62  ;;  %v1448_v62 = vmul.f32 %v5453_v36, %v5187_v37 }
 0x12e   : > { %4424 = vrot.lane.b32.xlu0 %v4423_v22, %s7986_s9  ;;  %v4458_v22 = vpack.i.bf16 %v1175_v60, %v1174_v28 }
 0x12f   : > { %4444 = vrot.lane.b32.xlu1 %v4443_v38, %s7913_s21  ;;  %4434 = vrot.lane.b32.xlu2 %v4433_v42, %s7983_s7  ;;  %v4448_v38 = vpack.i.bf16 %v1485_v55, %v1484_v0  ;;  %v1466_v55 = vmul.f32 %v5430_v58, %v5187_v37  ;;  %v5671_v37 = vld [vmem:[%s5143_s26 + $0x18] sm:$0xff] }
 0x131   : > { %v5599_v57 = vpop.permute.xlu1 %4294 }
 0x132   : > { %v7700_v52 = vunpack.i.h.bf16 %v5599_v57  ;;  %v4296_v14 = vunpack.i.l.bf16 %v5599_v57 }
 0x134   : > { %v1424_v30 = vsel %vm7853_vm8, %v4296_v14, %v7700_v52  ;;  %v1467_v14 = vmul.f32 %v5442_v10, %v5137_v20  ;;  %v4453_v52 = vpack.i.bf16 %v728_v5, %v727_v4  ;;  %v696_v4 = vmul.f32 %v5393_v29, %v5159_v25  ;;  %v7997_v29 = vld [vmem:[#allocation58_spill] sm:$0xff] }
 0x135   : > { %1956 = vmatpush.msra.mxu1 %v1424_v30  ;;  %v1006_v30 = vmul.f32 %v5015_v1, %v5159_v25  ;;  %v961_v54 = vmul.f32 %v7997_v29, %v5162_v26 }
 0x136   : > { %4439 = vrot.lane.b32.xlu0 %v4438_v17, %s7937_s19  ;;  %v4463_v47 = vpack.i.bf16 %v1467_v14, %v1466_v55  ;;  %v4468_v55 = vpack.i.bf16 %v696_v4, %v695_v43  ;;  %v663_v4 = vmul.f32 %v5359_v2, %v5319_v61 }
 0x137   : > { %4459 = vrot.lane.b32.xlu1 %v4458_v22, %s7925_s30  ;;  %4449 = vrot.lane.b32.xlu2 %v4448_v38, %s7966_s25 }
 0x138   : > { %v5617_v42 = vpop.permute.xlu0 %4289 }
 0x139   : > { %v7711_v28 = vunpack.i.h.bf16 %v5617_v42  ;;  %v4291_v60 = vunpack.i.l.bf16 %v5617_v42  ;;  %v5629_v0 = vpop.permute.xlu2 %4314 }
 0x13a   : > { %v7709_v17 = vunpack.i.h.bf16 %v5629_v0  ;;  %v4316_v22 = vunpack.i.l.bf16 %v5629_v0 }
 0x13b   : > { %v1030_v38 = vsel %vm982_vm12, %v4291_v60, %v7711_v28 }
 0x13c   : > { %1925 = vmatpush.msra.mxu0 %v1030_v38  ;;  %v1000_v41 = vsel %vm999_vm7, %v4316_v22, %v7709_v17  ;;  %v5674_v22 = vld [vmem:[%s5126_s23 + $0x18] sm:$0xff]  ;;  %v1072_v17 = vmul.f32 %v5164_v27, %v5671_v37 }
 0x13d   : > { %v1580_v43 = vmul.f32 %v5164_v27, %v5674_v22 }
 0x13e   : > { %1926 = vmatpush.msra.mxu0 %v1006_v30  ;;  %4454 = vrot.lane.b32.xlu0 %v4453_v52, %s7948_s24 }
 0x13f   : > { %4474 = vrot.lane.b32.xlu1 %v4473_v3, %s7936_s29  ;;  %4464 = vrot.lane.b32.xlu2 %v4463_v47, %s7973_s13  ;;  %v1122_v3 = vmul.f32 %v5248_v63, %v5159_v25  ;;  %v1123_v47 = vmul.f32 %v5344_v34, %v5162_v26  ;;  %v4493_v46 = vpack.i.bf16 %v1580_v43, %v1072_v17 }
 0x140   : > { %1927 = vmatpush.msra.mxu0 %v1000_v41  ;;  %v1449_v41 = vmul.f32 %v5466_v49, %v5137_v20 }
 0x141   : > { %v5652_v7 = vpop.permute.xlu0 %4304  ;;  %v4488_v14 = vpack.i.bf16 %v1123_v47, %v1122_v3  ;;  %v664_v3 = vmul.f32 %v5435_v13, %v5159_v25 }
 0x142   : > { %v7710_v52 = vunpack.i.h.bf16 %v5652_v7  ;;  %v4306_v5 = vunpack.i.l.bf16 %v5652_v7  ;;  %v4478_v30 = vpack.i.bf16 %v1449_v41, %v1448_v62 }
 0x143   : > { %v4483_v2 = vpack.i.bf16 %v664_v3, %v663_v4  ;;  %v7989_v3 = vld [vmem:[#allocation23_spill] sm:$0xff] }
 0x144   : > { %v1406_v60 = vsel %vm7852_vm5, %v4306_v5, %v7710_v52  ;;  %v1046_v5 = vmul.f32 %v5206_v45, %v5671_v37 }
 0x145   : > { %1957 = vmatpush.msra.mxu1 %v1406_v60  ;;  %v1562_v60 = vmul.f32 %v5206_v45, %v5674_v22 }
 0x146   : > { %4469 = vrot.lane.b32.xlu0 %v4468_v55, %s7960_s16 }
 0x147   : > { %4489 = vrot.lane.b32.xlu1 %v4488_v14, %s7947_s4  ;;  %4479 = vrot.lane.b32.xlu2 %v4478_v30, %s7976_s8  ;;  %v4503_v63 = vpack.i.bf16 %v1562_v60, %v1046_v5 }
 0x148   : > { %v5676_v38 = vpop.permute.xlu1 %4309 }
 0x149   : > { %7987 = vst [vmem:[#allocation80_spill] sm:$0xff] %v5676_v38  ;;  %v7722_v47 = vunpack.i.h.bf16 %v5676_v38  ;;  %v4311_v62 = vunpack.i.l.bf16 %v5676_v38  ;;  %v5688_v41 = vpop.permute.xlu2 %4329  ;;  %v5694_v55 = vpop.permute.xlu0 %4319 }
 0x14a   : > { %v7726_v14 = vunpack.i.h.bf16 %v5688_v41  ;;  %v4331_v61 = vunpack.i.l.bf16 %v5688_v41  ;;  %v7723_v30 = vunpack.i.h.bf16 %v5694_v55  ;;  %v4321_v52 = vunpack.i.l.bf16 %v5694_v55 }
 0x14b   : > { %v1644_v28 = vsel %vm7724_vm3, %v4311_v62, %v7722_v47  ;;  %v1096_v62 = vmul.f32 %v5312_v53, %v5159_v25  ;;  %v7992_v47 = vld [vmem:[#allocation16_spill] sm:$0xff]  ;;  %vm7993_vm3 = vcmask 916480  }
 0x14c   : > { %v972_v13 = vsel %vm971_vm4, %v4331_v61, %v7726_v14  ;;  %1991 = vmatpush.msra.mxu2 %v1644_v28  ;;  %v1388_v34 = vsel %vm7727_vm0, %v4321_v52, %v7723_v30  ;;  %v7988_v28 = vld [vmem:[#allocation62_spill] sm:$0xff]  ;;  %v849_v61 = vmul.f32 %v7989_v3, %v5162_v26  ;;  %v1254_v30 = vmul.f32 %v7992_v47, %v5671_v37 }
 0x14d   : > { %1928 = vmatpush.msra.mxu0 %v972_v13  ;;  %1958 = vmatpush.msra.mxu1 %v1388_v34  ;;  %v1097_v4 = vmul.f32 %v7988_v28, %v5162_v26  ;;  %v1432_v13 = vmul.f32 %v7989_v3, %v5129_v18  ;;  %v7990_v34 = vld [vmem:[#allocation35_spill] sm:$0xff]  ;;  %vm7996_vm0 = vcmask 261120  }
 0x14e   : > { %4484 = vrot.lane.b32.xlu0 %v4483_v2, %s7972_s12  ;;  %v1020_v17 = vmul.f32 %v7990_v34, %v5671_v37 }
 0x14f   : > { %4504 = vrot.lane.b32.xlu1 %v4503_v63, %s7912_s20  ;;  %4494 = vrot.lane.b32.xlu2 %v4493_v46, %s7965_s3  ;;  %v1544_v63 = vmul.f32 %v7990_v34, %v5674_v22  ;;  %v4498_v2 = vpack.i.bf16 %v1097_v4, %v1096_v62  ;;  %v4513_v46 = vpack.i.bf16 %v849_v61, %v1432_v13 }
 0x150   : > { %v1706_v62 = vmul.f32 %v7992_v47, %v5674_v22  ;;  %v8003_v47 = vld [vmem:[#allocation40_spill] sm:$0xff] }
 0x151   : > { %v4508_v52 = vpack.i.bf16 %v1544_v63, %v1020_v17 }
 0x152   : > { %v4523_v53 = vpack.i.bf16 %v1254_v30, %v1706_v62  ;;  %v7999_v30 = vld [vmem:[#allocation9_spill] sm:$0xff] }
 0x153   : > { %v1228_v62 = vmul.f32 %v7999_v30, %v5671_v37 }
 0x156   : > { %4499 = vrot.lane.b32.xlu0 %v4498_v2, %s7959_s15 }
 0x157   : > { %4514 = vrot.lane.b32.xlu1 %v4513_v46, %s7906_s28  ;;  %4509 = vrot.lane.b32.xlu2 %v4508_v52, %s7924_s27  ;;  %v7995_v52 = vld [vmem:[#allocation49_spill] sm:$0xff] }
 0x158   : > { %v5727_v25 = vpop.permute.xlu1 %4324  ;;  %v989_v14 = vmul.f32 %v7995_v52, %v5162_v26 }
 0x159   : > { %7991 = vst [vmem:[#allocation81_spill] sm:$0xff] %v5727_v25  ;;  %v7734_v43 = vunpack.i.h.bf16 %v5727_v25  ;;  %v4326_v5 = vunpack.i.l.bf16 %v5727_v25  ;;  %v5731_v60 = vpop.permute.xlu2 %4344  ;;  %v5737_v4 = vpop.permute.xlu0 %4334 }
 0x15a   : > { %v7736_v61 = vunpack.i.h.bf16 %v5731_v60  ;;  %v4346_v13 = vunpack.i.l.bf16 %v5731_v60  ;;  %v7735_v17 = vunpack.i.h.bf16 %v5737_v4  ;;  %v4336_v63 = vunpack.i.l.bf16 %v5737_v4 }
 0x15b   : > { %v1626_v2 = vsel %vm7993_vm3, %v4326_v5, %v7734_v43  ;;  %v7998_v5 = vld [vmem:[#allocation32_spill] sm:$0xff]  ;;  %vm8006_vm3 = vcmask 924672  }
 0x15c   : > { %v944_v46 = vsel %vm7994_vm6, %v4346_v13, %v7736_v61  ;;  %1992 = vmatpush.msra.mxu2 %v1626_v2  ;;  %v1370_v28 = vsel %vm7996_vm0, %v4336_v63, %v7735_v17  ;;  %v821_v13 = vmul.f32 %v7998_v5, %v5162_v26  ;;  %v1414_v2 = vmul.f32 %v7998_v5, %v5129_v18  ;;  %v8001_v17 = vld [vmem:[#allocation66_spill] sm:$0xff] }
 0x15d   : > { %1929 = vmatpush.msra.mxu0 %v944_v46  ;;  %1959 = vmatpush.msra.mxu1 %v1370_v28  ;;  %v1688_v28 = vmul.f32 %v7999_v30, %v5674_v22  ;;  %vm8000_vm0 = vcmask 121856   ;;  %v933_v61 = vmul.f32 %v8001_v17, %v5162_v26  ;;  %vm8007_vm6 = vcmask 130048  }
 0x15e   : > { %997 = vrot.lane.b32.xlu0 %v989_v14, %s7942_s0  ;;  %v4518_v63 = vpack.i.bf16 %v821_v13, %v1414_v2  ;;  %v793_v13 = vmul.f32 %v8003_v47, %v5162_v26  ;;  %v1396_v2 = vmul.f32 %v8003_v47, %v5129_v18 }
 0x15f   : > { %4524 = vrot.lane.b32.xlu1 %v4523_v53, %s7984_s10  ;;  %969 = vrot.lane.b32.xlu2 %v961_v54, %s7953_s17  ;;  %v4533_v46 = vpack.i.bf16 %v1228_v62, %v1688_v28 }
 0x161   : > { %v5763_v43 = vpop.permute.xlu2 %4359 }
 0x162   : > { %v7739_v14 = vunpack.i.h.bf16 %v5763_v43  ;;  %v4361_v53 = vunpack.i.l.bf16 %v5763_v43 }
 0x164   : > { %v916_v54 = vsel %vm8000_vm0, %v4361_v53, %v7739_v14  ;;  %vm8025_vm0 = vcmask 769024  }
 0x165   : > { %1930 = vmatpush.msra.mxu0 %v916_v54 }
 0x166   : > { %4519 = vrot.lane.b32.xlu0 %v4518_v63, %s7918_s22  ;;  %v8004_v63 = vld [vmem:[#allocation13_spill] sm:$0xff] }
 0x167   : > { %4534 = vrot.lane.b32.xlu1 %v4533_v46, %s7986_s9  ;;  %941 = vrot.lane.b32.xlu2 %v933_v61, %s7966_s25  ;;  %v1202_v54 = vmul.f32 %v8004_v63, %v5671_v37  ;;  %v1670_v61 = vmul.f32 %v8004_v63, %v5674_v22  ;;  %v4528_v63 = vpack.i.bf16 %v793_v13, %v1396_v2 }
 0x168   : > { %v5779_v30 = vpop.permute.xlu1 %4339 }
 0x169   : > { %8002 = vst [vmem:[#allocation82_spill] sm:$0xff] %v5779_v30  ;;  %v4341_v28 = vunpack.i.l.bf16 %v5779_v30  ;;  %v5787_v53 = vpop.permute.xlu2 %4374  ;;  %v5793_v46 = vpop.permute.xlu0 %4349  ;;  %v8005_v32 = vunpack.i.h.bf16 %v5779_v30  ;;  %v4543_v12 = vpack.i.bf16 %v1202_v54, %v1670_v61  ;;  %v8019_v30 = vld [vmem:[#allocation43_spill] sm:$0xff] }
 0x16a   : > { %v7759_v14 = vunpack.i.h.bf16 %v5787_v53  ;;  %v4376_v44 = vunpack.i.l.bf16 %v5787_v53  ;;  %v7758_v47 = vunpack.i.h.bf16 %v5793_v46  ;;  %v4351_v62 = vunpack.i.l.bf16 %v5793_v46 }
 0x16b   : > { %v1608_v51 = vsel %vm8006_vm3, %v4341_v28, %v8005_v32  ;;  %vm8030_vm3 = vcmask 777216  }
 0x16c   : > { %v888_v48 = vsel %vm8007_vm6, %v4376_v44, %v7759_v14  ;;  %1993 = vmatpush.msra.mxu2 %v1608_v51  ;;  %v1352_v19 = vsel %vm7862_vm1, %v4351_v62, %v7758_v47  ;;  %v8010_v51 = vld [vmem:[#allocation30_spill] sm:$0xff]  ;;  %vm8031_vm6 = vmmov %vm8025_vm0 }
 0x16d   : > { %1931 = vmatpush.msra.mxu0 %v888_v48  ;;  %1960 = vmatpush.msra.mxu1 %v1352_v19  ;;  %v761_v44 = vmul.f32 %v8010_v51, %v5162_v26  ;;  %v1378_v13 = vmul.f32 %v8010_v51, %v5129_v18  ;;  %v8011_v19 = vld [vmem:[#allocation22_spill] sm:$0xff] }
 0x16e   : > { %4529 = vrot.lane.b32.xlu0 %v4528_v63, %s7930_s1  ;;  %v1176_v28 = vmul.f32 %v8011_v19, %v5671_v37  ;;  %v8012_v51 = vld [vmem:[#allocation74_spill] sm:$0xff] }
 0x16f   : > { %4544 = vrot.lane.b32.xlu1 %v4543_v12, %s7913_s21  ;;  %913 = vrot.lane.b32.xlu2 %v905_v15, %s7973_s13  ;;  %v1652_v12 = vmul.f32 %v8011_v19, %v5674_v22  ;;  %v4538_v47 = vpack.i.bf16 %v761_v44, %v1378_v13  ;;  %v877_v16 = vmul.f32 %v8012_v51, %v5162_v26  ;;  %v8013_v19 = vld [vmem:[#allocation41_spill] sm:$0xff] }
 0x170   : > { %v5813_v32 = vpop.permute.xlu1 %4354  ;;  %v8015_v13 = vld [vmem:[#allocation69_spill] sm:$0xff] }
 0x171   : > { %8009 = vst [vmem:[#allocation83_spill] sm:$0xff] %v5813_v32  ;;  %v7764_v48 = vunpack.i.h.bf16 %v5813_v32  ;;  %v4356_v2 = vunpack.i.l.bf16 %v5813_v32  ;;  %v5821_v62 = vpop.permute.xlu2 %4389  ;;  %v4553_v14 = vpack.i.bf16 %v1176_v28, %v1652_v12  ;;  %v665_v28 = vmul.f32 %v8015_v13, %v5162_v26 }
 0x172   : > { %v7765_v15 = vunpack.i.h.bf16 %v5821_v62  ;;  %v4391_v63 = vunpack.i.l.bf16 %v5821_v62 }
 0x173   : > { %v1590_v54 = vsel %vm926_vm13, %v4356_v2, %v7764_v48  ;;  %v729_v2 = vmul.f32 %v8013_v19, %v5162_v26  ;;  %v1360_v48 = vmul.f32 %v8013_v19, %v5129_v18 }
 0x174   : > { %v860_v61 = vsel %vm7864_vm10, %v4391_v63, %v7765_v15  ;;  %1994 = vmatpush.msra.mxu2 %v1590_v54 }
 0x175   : > { %1932 = vmatpush.msra.mxu0 %v860_v61 }
 0x176   : > { %4539 = vrot.lane.b32.xlu0 %v4538_v47, %s7937_s19  ;;  %v1324_v47 = vmul.f32 %v8015_v13, %v5129_v18 }
 0x177   : > { %4554 = vrot.lane.b32.xlu1 %v4553_v14, %s7925_s30  ;;  %885 = vrot.lane.b32.xlu2 %v877_v16, %s7976_s8  ;;  %v8016_v14 = vld [vmem:[#allocation51_spill] sm:$0xff]  ;;  %s8215_s30 = smov 110  }
 0x178   : > { %v5844_v63 = vpop.permute.xlu1 %4369  ;;  %v5846_v44 = vpop.permute.xlu0 %4364  ;;  %v697_v12 = vmul.f32 %v8016_v14, %v5162_v26  ;;  %v1342_v16 = vmul.f32 %v8016_v14, %v5129_v18  ;;  %v4548_v18 = vpack.i.bf16 %v729_v2, %v1360_v48  ;;  %v4568_v14 = vpack.i.bf16 %v665_v28, %v1324_v47 }
 0x179   : > { %8014 = vst [vmem:[#allocation84_spill] sm:$0xff] %v5844_v63  ;;  %v7776_v54 = vunpack.i.h.bf16 %v5844_v63  ;;  %v4371_v61 = vunpack.i.l.bf16 %v5844_v63  ;;  %v7774_v15 = vunpack.i.h.bf16 %v5846_v44  ;;  %v4366_v19 = vunpack.i.l.bf16 %v5846_v44  ;;  %v5860_v35 = vpop.permute.xlu2 %4404  ;;  %v8026_v63 = vld [vmem:[#allocation73_spill] sm:$0xff] }
 0x17a   : > { %8017 = vst [vmem:[#allocation85_spill] sm:$0xff] %v5860_v35  ;;  %v4558_v5 = vpack.i.bf16 %v697_v12, %v1342_v16  ;;  %v1538_v28 = vmul.f32 %v5015_v1, %v5137_v20  ;;  %v8021_v16 = vld [vmem:[#allocation52_spill] sm:$0xff]  ;;  %v5916_v1 = vld [vmem:[%s5126_s23 + $0x10] sm:$0xff]  ;;  %v1280_v25 = vmul.f32 %v8026_v63, %v5671_v37  ;;  %s8228_s23 = sld [smem:[#allocation110_spill]] }
 0x17b   : > { %v1334_v13 = vsel %vm7842_vm2, %v4366_v19, %v7774_v15  ;;  %v1572_v26 = vsel %vm954_vm15, %v4371_v61, %v7776_v54  ;;  %v1150_v19 = vmul.f32 %v8019_v30, %v5671_v37  ;;  %v1634_v15 = vmul.f32 %v8019_v30, %v5674_v22 }
 0x17c   : > { %1961 = vmatpush.msra.mxu1 %v1334_v13  ;;  %1995 = vmatpush.msra.mxu2 %v1572_v26  ;;  %v1616_v61 = vmul.f32 %v8021_v16, %v5674_v22 }
 0x17d   : > { %v4563_v47 = vpack.i.bf16 %v1150_v19, %v1634_v15  ;;  %v8023_v19 = vld [vmem:[#allocation76_spill] sm:$0xff] }
 0x17e   : > { %4549 = vrot.lane.b32.xlu0 %v4548_v18, %s7948_s24 }
 0x17f   : > { %4569 = vrot.lane.b32.xlu1 %v4568_v14, %s7972_s12  ;;  %4559 = vrot.lane.b32.xlu2 %v4558_v5, %s7960_s16  ;;  %v8020_v14 = vld [vmem:[#allocation60_spill] sm:$0xff]  ;;  %s8207_s12 = smov 34  }
 0x180   : > { %v5871_v32 = vpop.permute.xlu1 %4384  ;;  %v1598_v12 = vmul.f32 %v8020_v14, %v5674_v22 }
 0x181   : > { %8018 = vst [vmem:[#allocation86_spill] sm:$0xff] %v5871_v32  ;;  %v7775_v13 = vunpack.i.h.bf16 %v5871_v32  ;;  %v4386_v48 = vunpack.i.l.bf16 %v5871_v32  ;;  %v5879_v2 = vpop.permute.xlu2 %4419  ;;  %v1504_v32 = vmul.f32 %v5916_v1, %v7997_v29 }
 0x182   : > { %v4421_v26 = vunpack.i.l.bf16 %v5879_v2 }
 0x183   : > { %v1554_v5 = vsel %vm982_vm12, %v4386_v48, %v7775_v13  ;;  %v1306_v48 = vmul.f32 %v8023_v19, %v5671_v37 }
 0x184   : > { %1996 = vmatpush.msra.mxu2 %v1554_v5  ;;  %v1742_v5 = vmul.f32 %v8023_v19, %v5674_v22 }
 0x186   : > { %4564 = vrot.lane.b32.xlu0 %v4563_v47, %s7936_s29  ;;  %1997 = vmatpush.msra.mxu2 %v1538_v28  ;;  %v4913_v28 = vmov 0   ;;  %v4573_v19 = vpack.i.bf16 %v1742_v5, %v1306_v48  ;;  %s8212_s29 = smov 112  }
 0x187   : > { %1606 = vrot.lane.b32.xlu1 %v1598_v12, %s7959_s15  ;;  %1624 = vrot.lane.b32.xlu2 %v1616_v61, %s7947_s4 }
 0x188   : > { %v5895_v18 = vpop.permute.xlu0 %4379  ;;  %v5897_v15 = vpop.permute.xlu1 %4399  ;;  %4580 = vset.pattern.permute.xlu1 %v4913_v28  ;;  %4578 = vset.pattern.permute.xlu2 %v4913_v28 }
 0x189   : > { %8022 = vst [vmem:[#allocation87_spill] sm:$0xff] %v5895_v18  ;;  %v7785_v47 = vunpack.i.h.bf16 %v5895_v18  ;;  %v4381_v12 = vunpack.i.l.bf16 %v5895_v18  ;;  %v7786_v61 = vunpack.i.h.bf16 %v5897_v15  ;;  %v4401_v13 = vunpack.i.l.bf16 %v5897_v15  ;;  %v5907_v54 = vpop.permute.xlu2 %4434  ;;  %4579 = vset.pattern.permute.xlu0 %v4913_v28 }
 0x18a   : > { %8024 = vst [vmem:[#allocation88_spill] sm:$0xff] %v5907_v54  ;;  %v8027_v28 = vunpack.i.h.bf16 %v5879_v2 }
 0x18b   : > { %v832_v20 = vsel %vm7853_vm8, %v4401_v13, %v7786_v61  ;;  %v1316_v30 = vsel %vm8025_vm0, %v4381_v12, %v7785_v47  ;;  %v7789_v13 = vunpack.i.h.bf16 %v5860_v35  ;;  %v1522_v61 = vmul.f32 %v5916_v1, %v7995_v52  ;;  %vm8033_vm0 = vmmov %vm8030_vm3 }
 0x18c   : > { %1933 = vmatpush.msra.mxu0 %v832_v20  ;;  %1962 = vmatpush.msra.mxu1 %v1316_v30  ;;  %v804_v38 = vsel %vm7852_vm5, %v4421_v26, %v8027_v28  ;;  %v4406_v20 = vunpack.i.l.bf16 %v5860_v35 }
 0x18e   : > { %1934 = vmatpush.msra.mxu0 %v804_v38  ;;  %4574 = vrot.lane.b32.xlu0 %v4573_v19, %s7981_s14  ;;  %v4436_v19 = vunpack.i.l.bf16 %v5907_v54  ;;  %v1264_v18 = vsel %vm722_vm14, %v4406_v20, %v7789_v13 }
 0x18f   : > { %1512 = vrot.lane.b32.xlu1 %v1504_v32, %s7953_s17  ;;  %1288 = vrot.lane.b32.xlu2 %v1280_v25, %s7983_s7  ;;  %v1724_v25 = vmul.f32 %v8026_v63, %v5674_v22 }
 0x190   : > { %v5928_v30 = vpop.permute.xlu0 %4394 }
 0x191   : > { %8028 = vst [vmem:[#allocation89_spill] sm:$0xff] %v5928_v30  ;;  %v7790_v48 = vunpack.i.h.bf16 %v5928_v30  ;;  %v4396_v5 = vunpack.i.l.bf16 %v5928_v30  ;;  %v5934_v12 = vpop.permute.xlu1 %4414  ;;  %v5936_v26 = vpop.permute.xlu2 %4449  ;;  %v1124_v30 = vmul.f32 %v8021_v16, %v5671_v37 }
 0x192   : > { %8029 = vst [vmem:[#allocation90_spill] sm:$0xff] %v5936_v26  ;;  %v7791_v38 = vunpack.i.h.bf16 %v5934_v12  ;;  %v4416_v32 = vunpack.i.l.bf16 %v5934_v12  ;;  %v4451_v13 = vunpack.i.l.bf16 %v5936_v26 }
 0x193   : > { %v1290_v28 = vsel %vm8030_vm3, %v4396_v5, %v7790_v48  ;;  %v8032_v5 = vunpack.i.h.bf16 %v5907_v54  ;;  %vm8038_vm3 = vcmask 113664  }
 0x194   : > { %1963 = vmatpush.msra.mxu1 %v1290_v28  ;;  %v1752_v47 = vsel %vm8031_vm6, %v4416_v32, %v7791_v38  ;;  %vm8043_vm6 = vcmask 121856  }
 0x195   : > { %2033 = vmatpush.msra.mxu3 %v1752_v47  ;;  %v1734_v47 = vsel %vm8033_vm0, %v4436_v19, %v8032_v5  ;;  %v1098_v5 = vmul.f32 %v8020_v14, %v5671_v37  ;;  %v8037_v37 = vunpack.i.h.bf16 %v5936_v26  ;;  %vm8044_vm0 = vcmask 130048  }
 0x196   : > { %1964 = vmatpush.msra.mxu1 %v1264_v18  ;;  %1530 = vrot.lane.b32.xlu0 %v1522_v61, %s7942_s0 }
 0x197   : > { %1732 = vrot.lane.b32.xlu1 %v1724_v25, %s7983_s7  ;;  %1132 = vrot.lane.b32.xlu2 %v1124_v30, %s7947_s4  ;;  %v1450_v30 = vmul.f32 %v5916_v1, %v8012_v51  ;;  %s8201_s4 = smov 111  }
 0x198   : > { %2034 = vmatpush.msra.mxu3 %v1734_v47  ;;  %v5963_v32 = vpop.permute.xlu0 %4409  ;;  %v1486_v47 = vmul.f32 %v5916_v1, %v8001_v17 }
 0x199   : > { %8034 = vst [vmem:[#allocation91_spill] sm:$0xff] %v5963_v32  ;;  %v7793_v20 = vunpack.i.h.bf16 %v5963_v32  ;;  %v4411_v22 = vunpack.i.l.bf16 %v5963_v32  ;;  %v5967_v28 = vpop.permute.xlu1 %4429  ;;  %v5969_v18 = vpop.permute.xlu2 %4464 }
 0x19a   : > { %8035 = vst [vmem:[#allocation92_spill] sm:$0xff] %v5967_v28  ;;  %v7795_v61 = vunpack.i.h.bf16 %v5967_v28  ;;  %v4431_v25 = vunpack.i.l.bf16 %v5967_v28  ;;  %v4466_v38 = vunpack.i.l.bf16 %v5969_v18 }
 0x19b   : > { %8036 = vst [vmem:[#allocation93_spill] sm:$0xff] %v5969_v18  ;;  %v1532_v19 = vsel %vm999_vm7, %v4411_v22, %v7793_v20  ;;  %v1496_v22 = vsel %vm8038_vm3, %v4451_v13, %v8037_v37  ;;  %vm8047_vm3 = vcmask 252928  }
 0x19c   : > { %1998 = vmatpush.msra.mxu2 %v1532_v19  ;;  %v1514_v63 = vsel %vm971_vm4, %v4431_v25, %v7795_v61  ;;  %v8042_v25 = vunpack.i.h.bf16 %v5969_v18  ;;  %v1878_v18 = vld [vmem:[%s8045_s6] sm:$0xff] }
 0x19e   : > { %1999 = vmatpush.msra.mxu2 %v1514_v63  ;;  %1494 = vrot.lane.b32.xlu0 %v1486_v47, %s7966_s25 }
 0x19f   : > { %1458 = vrot.lane.b32.xlu1 %v1450_v30, %s7976_s8  ;;  %1106 = vrot.lane.b32.xlu2 %v1098_v5, %s7959_s15  ;;  %v1478_v30 = vsel %vm8043_vm6, %v4466_v38, %v8042_v25  ;;  %v1880_v38 = vld [vmem:[%s8045_s6 + $0x10] sm:$0xff]  ;;  %v1882_v25 = vld [vmem:[%s8045_s6 + $0x20] sm:$0xff]  ;;  %vm8048_vm6 = vcmask 900096   ;;  %s6061_s15 = scalar_lea.vmem %s8050_s2, %s5114_s18  ;;  %s8213_s18 = smov 113  }
 0x1a0   : > { %v5995_v19 = vpop.permute.xlu0 %4424  ;;  %2000 = vmatpush.msra.mxu2 %v1496_v22  ;;  %s8238_s2 = sld [smem:[#allocation111_spill]] }
 0x1a1   : > { %8039 = vst [vmem:[#allocation94_spill] sm:$0xff] %v5995_v19  ;;  %v7800_v20 = vunpack.i.h.bf16 %v5995_v19  ;;  %v4426_v48 = vunpack.i.l.bf16 %v5995_v19  ;;  %v5999_v14 = vpop.permute.xlu1 %4444  ;;  %v6001_v63 = vpop.permute.xlu2 %4479 }
 0x1a2   : > { %8040 = vst [vmem:[#allocation95_spill] sm:$0xff] %v5999_v14  ;;  %v7802_v5 = vunpack.i.h.bf16 %v5999_v14  ;;  %v4446_v47 = vunpack.i.l.bf16 %v5999_v14  ;;  %v7799_v13 = vunpack.i.h.bf16 %v6001_v63  ;;  %v4481_v37 = vunpack.i.l.bf16 %v6001_v63  ;;  %2001 = vmatpush.msra.mxu2 %v1478_v30 }
 0x1a3   : > { %8041 = vst [vmem:[#allocation96_spill] sm:$0xff] %v6001_v63  ;;  %v1238_v22 = vsel %vm754_vm11, %v4426_v48, %v7800_v20  ;;  %v1468_v30 = vmul.f32 %v5916_v1, %v8008_v21 }
 0x1a4   : > { %1965 = vmatpush.msra.mxu1 %v1238_v22  ;;  %v1460_v61 = vsel %vm8044_vm0, %v4481_v37, %v7799_v13  ;;  %v1212_v48 = vsel %vm7863_vm9, %v4446_v47, %v7802_v5  ;;  %v8049_v5 = vunpack.i.h.bf16 %v5519_v33  ;;  %v6064_v33 = vld [vmem:[%s6061_s15 + $0x10] sm:$0xff]  ;;  %vm8058_vm0 = vcmask 261120  }
 0x1a5   : > { %2002 = vmatpush.msra.mxu2 %v1460_v61 }
 0x1a6   : > { %1966 = vmatpush.msra.mxu1 %v1212_v48  ;;  %1476 = vrot.lane.b32.xlu0 %v1468_v30, %s7973_s13 }
 0x1a7   : > { %1895 = vperm.xlu1 %4580, %v1880_v38   ;;  %1905 = vperm.xlu2 %4578, %v1882_v25   ;;  %v1881_v25 = vld [vmem:[%s8045_s6 + $0x18] sm:$0xff] }
 0x1a8   : > { %v6028_v37 = vpop.permute.xlu0 %4439 }
 0x1a9   : > { %v6030_v22 = vpop.permute.xlu1 %4459  ;;  %v6032_v13 = vpop.permute.xlu2 %4494  ;;  %v7809_v20 = vunpack.i.h.bf16 %v6028_v37  ;;  %v4441_v61 = vunpack.i.l.bf16 %v6028_v37 }
 0x1aa   : > { %8046 = vst [vmem:[#allocation97_spill] sm:$0xff] %v6030_v22  ;;  %v7808_v16 = vunpack.i.h.bf16 %v6030_v22  ;;  %v4461_v47 = vunpack.i.l.bf16 %v6030_v22  ;;  %v4496_v48 = vunpack.i.l.bf16 %v6032_v13  ;;  %v8055_v22 = vld [vmem:[#allocation28_spill] sm:$0xff] }
 0x1ab   : > { %v772_v38 = vsel %vm8047_vm3, %v4441_v61, %v7809_v20  ;;  %v1879_v61 = vld [vmem:[%s8045_s6 + $0x8] sm:$0xff]  ;;  %v2753_v28 = vmul.f32 %v8055_v22, %v6064_v33  ;;  %vm8059_vm3 = vcmask 130048   ;;  %v6101_v22 = vld [vmem:[%s6061_s15 + $0x18] sm:$0xff]  ;;  %s8279_s6 = smov 127  }
 0x1ac   : > { %1935 = vmatpush.msra.mxu0 %v772_v38  ;;  %v1186_v30 = vsel %vm8048_vm6, %v4461_v47, %v7808_v16  ;;  %v1083_v63 = vsel %vm926_vm13, %v8049_v5, %v4496_v48  ;;  %v6067_v5 = vld [vmem:[%s6061_s15 + $0x8] sm:$0xff]  ;;  %v8051_v48 = vld [vmem:[#allocation14_spill] sm:$0xff]  ;;  %vm8060_vm6 = vcmask 908288   ;;  %v2772_v19 = vmul.f32 %v5164_v27, %v6101_v22 }
 0x1ad   : > { %1967 = vmatpush.msra.mxu1 %v1186_v30  ;;  %2051 = vmatpush.msrb.mxu3 %v1083_v63  ;;  %v2770_v38 = vmul.f32 %v8051_v48, %v6067_v5  ;;  %v8052_v16 = vld [vmem:[#allocation20_spill] sm:$0xff] }
 0x1ae   : > { %1900 = vperm.xlu0 %4579, %v1881_v25   ;;  %v2771_v20 = vmul.f32 %v8052_v16, %v6064_v33  ;;  %v8054_v25 = vld [vmem:[#allocation10_spill] sm:$0xff]  ;;  %v6090_v16 = vld [vmem:[%s8056_s5 + $0x18] sm:$0xff] }
 0x1af   : > { %1885 = vperm.xlu1 %4580, %v1878_v18   ;;  %1890 = vperm.xlu2 %4578, %v1879_v61   ;;  %v2752_v61 = vmul.f32 %v8054_v25, %v6067_v5  ;;  %8057 = vst [vmem:[#allocation99_spill] sm:$0xff] %v6090_v16 }
 0x1b0   : > { %v6069_v47 = vpop.permute.xlu0 %4454  ;;  %4182 = vmatmul.msk.f32.vlgmr.msra.gmra.mxu3 %vm8059_vm3, %v6090_v16  ;;  %v4581_v32 = vpack.i.bf16 %v2771_v20, %v2770_v38  ;;  %v6115_v20 = vld [vmem:[%s6061_s15] sm:$0xff] }
 0x1b1   : > { %v6075_v26 = vpop.permute.xlu1 %4474  ;;  %v6077_v30 = vpop.permute.xlu2 %4509  ;;  %v7818_v63 = vunpack.i.h.bf16 %v6069_v47  ;;  %v4456_v18 = vunpack.i.l.bf16 %v6069_v47  ;;  %v4586_v35 = vpack.i.bf16 %v2753_v28, %v2752_v61 }
 0x1b2   : > { %8053 = vst [vmem:[#allocation98_spill] sm:$0xff] %v6075_v26  ;;  %v7819_v14 = vunpack.i.h.bf16 %v6075_v26  ;;  %v4476_v48 = vunpack.i.l.bf16 %v6075_v26 }
 0x1b3   : > { %v740_v54 = vsel %vm8058_vm0, %v4456_v18, %v7818_v63  ;;  %vm8063_vm0 = vmmov %vm8059_vm3  ;;  %vm8064_vm3 = vcmask 916480  }
 0x1b4   : > { %1936 = vmatpush.msra.mxu0 %v740_v54  ;;  %v1160_v25 = vsel %vm8060_vm6, %v4476_v48, %v7819_v14  ;;  %v8061_v54 = vld [vmem:[#allocation17_spill] sm:$0xff]  ;;  %vm8066_vm6 = vmmov %vm8063_vm0 }
 0x1b5   : > { %1968 = vmatpush.msra.mxu1 %v1160_v25  ;;  %v2734_v63 = vmul.f32 %v8061_v54, %v6067_v5  ;;  %v8062_v48 = vld [vmem:[#allocation37_spill] sm:$0xff] }
 0x1b6   : > { %4582 = vrot.lane.b32.xlu0 %v4581_v32, %s7965_s3  ;;  %v2735_v14 = vmul.f32 %v8062_v48, %v6064_v33  ;;  %v6132_v48 = vld [vmem:[%s8056_s5 + $0x38] sm:$0xff] }
 0x1b7   : > { %2780 = vrot.lane.b32.xlu1 %v2772_v19, %s7965_s3  ;;  %4587 = vrot.lane.b32.xlu2 %v4586_v35, %s7912_s20  ;;  %v2712_v35 = vmul.f32 %v5316_v59, %v6115_v20  ;;  %v2713_v19 = vmul.f32 %v5328_v6, %v6067_v5  ;;  %v2754_v59 = vmul.f32 %v5206_v45, %v6101_v22 }
 0x1b8   : > { %v6108_v18 = vpop.permute.xlu0 %4469  ;;  %4183 = vmatmul.msk.f32.gmra.mxu3 %vm8063_vm0, %v6132_v48  ;;  %v4591_v26 = vpack.i.bf16 %v2735_v14, %v2734_v63  ;;  %v4511_v14 = vunpack.i.l.bf16 %v6077_v30  ;;  %v2696_v45 = vmul.f32 %v7997_v29, %v6064_v33  ;;  %v6206_v29 = vld [vmem:[%s8056_s5 + $0x10] sm:$0xff]  ;;  %vm8071_vm0 = vcmask 924672  }
 0x1b9   : > { %v6117_v38 = vpop.permute.xlu1 %4489  ;;  %v6119_v25 = vpop.permute.xlu2 %969  ;;  %v7825_v32 = vunpack.i.h.bf16 %v6108_v18  ;;  %v4471_v28 = vunpack.i.l.bf16 %v6108_v18  ;;  %v4596_v16 = vpack.i.bf16 %v2713_v19, %v2712_v35  ;;  %v2736_v35 = vmul.f32 %v7990_v34, %v6101_v22  ;;  %2003 = vmatmul.f32.vlgmr.msra.gmra.mxu2 %v6206_v29 }
 0x1ba   : > { %v7826_v61 = vunpack.i.h.bf16 %v6117_v38  ;;  %v4491_v54 = vunpack.i.l.bf16 %v6117_v38  ;;  %v2714_v19 = vmul.f32 %v7995_v52, %v6064_v33 }
 0x1bb   : > { %v708_v27 = vsel %vm7862_vm1, %v4471_v28, %v7825_v32 }
 0x1bc   : > { %1937 = vmatpush.msra.mxu0 %v708_v27  ;;  %v1134_v6 = vsel %vm8064_vm3, %v4491_v54, %v7826_v61  ;;  %vm8072_vm3 = vmmov %vm8066_vm6 }
 0x1bd   : > { %1969 = vmatpush.msra.mxu1 %v1134_v6 }
 0x1be   : > { %2762 = vrot.lane.b32.xlu0 %v2754_v59, %s7912_s20  ;;  %v6159_v59 = vld [vmem:[%s8056_s5 + $0x58] sm:$0xff] }
 0x1bf   : > { %4592 = vrot.lane.b32.xlu1 %v4591_v26, %s7924_s27  ;;  %4597 = vrot.lane.b32.xlu2 %v4596_v16, %s7942_s0  ;;  %8065 = vst [vmem:[#allocation100_spill] sm:$0xff] %v6159_v59  ;;  %v8067_v26 = vunpack.i.h.bf16 %v5573_v31  ;;  %v8069_v31 = vunpack.i.h.bf16 %v5617_v42 }
 0x1c0   : > { %v6147_v28 = vpop.permute.xlu0 %4484  ;;  %4184 = vmatmul.msk.f32.gmra.mxu3 %vm8066_vm6, %v6159_v59  ;;  %vm8076_vm6 = vmmov %vm8072_vm3 }
 0x1c1   : > { %v6149_v32 = vpop.permute.xlu1 %4504  ;;  %v6151_v27 = vpop.permute.xlu2 %941  ;;  %v7828_v54 = vunpack.i.h.bf16 %v6147_v28  ;;  %v4486_v61 = vunpack.i.l.bf16 %v6147_v28 }
 0x1c2   : > { %v4506_v6 = vunpack.i.l.bf16 %v6149_v32 }
 0x1c3   : > { %v676_v16 = vsel %vm7842_vm2, %v4486_v61, %v7828_v54  ;;  %v4876_v61 = vld [vmem:[%s5143_s26 + $0x10] sm:$0xff]  ;;  %v8068_v54 = vld [vmem:[#allocation7_spill] sm:$0xff]  ;;  %s8227_s26 = sld [smem:[#allocation112_spill]] }
 0x1c4   : > { %1938 = vmatpush.msra.mxu0 %v676_v16  ;;  %v1057_v63 = vsel %vm954_vm15, %v8067_v26, %v4506_v6  ;;  %v1007_v59 = vmul.f32 %v4876_v61, %v8068_v54  ;;  %v1031_v6 = vsel %vm982_vm12, %v8069_v31, %v4511_v14  ;;  %v2676_v26 = vmul.f32 %v5401_v50, %v6115_v20  ;;  %v6211_v14 = vld [vmem:[%s8056_s5 + $0x78] sm:$0xff] }
 0x1c5   : > { %2052 = vmatpush.msrb.mxu3 %v1057_v63  ;;  %v2677_v63 = vmul.f32 %v5414_v39, %v6067_v5  ;;  %v2658_v31 = vmul.f32 %v5430_v58, %v6115_v20 }
 0x1c6   : > { %2744 = vrot.lane.b32.xlu0 %v2736_v35, %s7924_s27  ;;  %v2694_v35 = vmul.f32 %v5361_v8, %v6115_v20  ;;  %s8255_s27 = sld [smem:[#allocation114_spill]] }
 0x1c7   : > { %2722 = vrot.lane.b32.xlu1 %v2714_v19, %s7942_s0  ;;  %2704 = vrot.lane.b32.xlu2 %v2696_v45, %s7953_s17  ;;  %v2695_v19 = vmul.f32 %v5370_v11, %v6067_v5  ;;  %v6216_v11 = vld [vmem:[%s8056_s5] sm:$0xff]  ;;  %v4606_v50 = vpack.i.bf16 %v2677_v63, %v2676_v26 }
 0x1c8   : > { %2053 = vmatpush.msrb.mxu3 %v1031_v6  ;;  %v6184_v16 = vpop.permute.xlu0 %4499  ;;  %v2659_v6 = vmul.f32 %v5442_v10, %v6067_v5  ;;  %1939 = vmatmul.f32.vlgmr.msra.gmra.mxu0 %v6216_v11 }
 0x1c9   : > { %v6194_v45 = vpop.permute.xlu1 %4514  ;;  %v914_v42 = vpop.permute.xlu2 %913  ;;  %v4501_v61 = vunpack.i.l.bf16 %v6184_v16  ;;  %v8070_v10 = vunpack.i.h.bf16 %v6184_v16  ;;  %4185 = vmatmul.msk.f32.gmra.mxu3 %vm8072_vm3, %v6211_v14  ;;  %v4601_v58 = vpack.i.bf16 %v2695_v19, %v2694_v35  ;;  %v8077_v19 = vunpack.i.h.bf16 %v5510_v9  ;;  %v6282_v9 = vld [vmem:[%s8056_s5 + $0x28] sm:$0xff] }
 0x1ca   : > { %v4516_v39 = vunpack.i.l.bf16 %v6194_v45  ;;  %2054 = vmatpush.msrb.mxu3 %v1007_v59  ;;  %v8073_v59 = vunpack.i.h.bf16 %v5548_v40  ;;  %v4611_v8 = vpack.i.bf16 %v2659_v6, %v2658_v31  ;;  %v2678_v31 = vmul.f32 %v8001_v17, %v6064_v33 }
 0x1cb   : > { %v1108_v52 = vsel %vm8071_vm0, %v4501_v61, %v8070_v10  ;;  %v6231_v10 = vld [vmem:[%s8056_s5 + $0x8] sm:$0xff]  ;;  %v8078_v6 = vunpack.i.h.bf16 %v5731_v60  ;;  %vm8079_vm0 = vcmask 113664   ;;  %vm8081_vm3 = vcmask 121856  }
 0x1cc   : > { %1970 = vmatpush.msra.mxu1 %v1108_v52  ;;  %v1443_v34 = vsel %vm7864_vm10, %v8073_v59, %v4516_v39 }
 0x1cd   : > { %2083 = vmatpush.msrb.mxu0 %v1443_v34  ;;  %1971 = vmatmul.f32.vlgmr.msra.gmra.mxu1 %v6231_v10  ;;  %v8074_v34 = vunpack.i.h.bf16 %v5629_v0  ;;  %v8075_v0 = vunpack.i.h.bf16 %v5688_v41  ;;  %v2660_v41 = vmul.f32 %v8008_v21, %v6064_v33  ;;  %v945_v59 = vsel %vm8079_vm0, %v8078_v6, %v6151_v27 }
 0x1ce   : > { %4602 = vrot.lane.b32.xlu0 %v4601_v58, %s7953_s17  ;;  %v6246_v58 = vld [vmem:[%s8056_s5 + $0x30] sm:$0xff]  ;;  %vm8095_vm0 = vcmask 252928  }
 0x1cf   : > { %4607 = vrot.lane.b32.xlu1 %v4606_v50, %s7966_s25  ;;  %4612 = vrot.lane.b32.xlu2 %v4611_v8, %s7973_s13  ;;  %v6251_v8 = vld [vmem:[%s8056_s5 + $0x98] sm:$0xff]  ;;  %v6256_v50 = vld [vmem:[%s8056_s5 + $0x20] sm:$0xff]  ;;  %v973_v35 = vsel %vm971_vm4, %v8075_v0, %v6119_v25  ;;  %v2642_v25 = vmul.f32 %v8012_v51, %v6064_v33  ;;  %v2640_v0 = vmul.f32 %v5453_v36, %v6115_v20 }
 0x1d0   : > { %v998_v39 = vpop.permute.xlu0 %997  ;;  %2006 = vmatmul.f32.gmra.mxu2 %v6246_v58  ;;  %1942 = vmatmul.f32.gmra.mxu0 %v6256_v50 }
 0x1d1   : > { %v6237_v40 = vpop.permute.xlu1 %4524  ;;  %v1001_v52 = vsel %vm999_vm7, %v8074_v34, %v998_v39  ;;  %v886_v63 = vpop.permute.xlu2 %885  ;;  %4186 = vmatmul.msk.f32.gmra.mxu3 %vm8076_vm6, %v6251_v8  ;;  %v4517_v39 = vunpack.i.h.bf16 %v6194_v45  ;;  %v8080_v34 = vunpack.i.h.bf16 %v5763_v43  ;;  %v8083_v43 = vunpack.i.h.bf16 %v5787_v53 }
 0x1d2   : > { %v4526_v26 = vunpack.i.l.bf16 %v6237_v40  ;;  %2055 = vmatpush.msrb.mxu3 %v1001_v52  ;;  %v8082_v52 = vld [vmem:[#allocation68_spill] sm:$0xff]  ;;  %v8085_v53 = vunpack.i.h.bf16 %v5821_v62  ;;  %v2624_v62 = vmul.f32 %v7989_v3, %v6064_v33 }
 0x1d3   : > { %v917_v60 = vsel %vm8081_vm3, %v8080_v34, %v914_v42  ;;  %v889_v42 = vsel %vm8076_vm6, %v8083_v43, %v886_v63  ;;  %v8086_v34 = vunpack.i.h.bf16 %v5599_v57  ;;  %v8087_v43 = vunpack.i.h.bf16 %v5472_v56  ;;  %vm8097_vm3 = vmmov %vm8095_vm0 }
 0x1d4   : > { %2056 = vmatpush.msrb.mxu3 %v973_v35  ;;  %v1717_v61 = vsel %vm722_vm14, %v8077_v19, %v4526_v26  ;;  %v2932_v26 = vmul.f32 %v8082_v52, %v6067_v5  ;;  %v2641_v35 = vmul.f32 %v5466_v49, %v6067_v5  ;;  %v861_v63 = vsel %vm7864_vm10, %v8085_v53, %v4517_v39  ;;  %v6358_v53 = vld [vmem:[%s8056_s5 + $0x60] sm:$0xff] }
 0x1d5   : > { %2115 = vmatpush.msrb.mxu1 %v1717_v61  ;;  %v8088_v57 = vunpack.i.h.bf16 %v5897_v15  ;;  %vm8099_vm6 = vcmask 900096  }
 0x1d6   : > { %2686 = vrot.lane.b32.xlu0 %v2678_v31, %s7966_s25  ;;  %2057 = vmatpush.msrb.mxu3 %v945_v59  ;;  %v8084_v31 = vld [vmem:[#allocation78_spill] sm:$0xff]  ;;  %v6314_v59 = vld [vmem:[%s8056_s5 + $0x40] sm:$0xff]  ;;  %v4616_v51 = vpack.i.bf16 %v2641_v35, %v2640_v0  ;;  %v8090_v0 = vld [vmem:[#allocation24_spill] sm:$0xff] }
 0x1d7   : > { %2668 = vrot.lane.b32.xlu1 %v2660_v41, %s7973_s13  ;;  %2650 = vrot.lane.b32.xlu2 %v2642_v25, %s7976_s8  ;;  %v2933_v41 = vmul.f32 %v8084_v31, %v6064_v33  ;;  %v6308_v25 = vld [vmem:[%s8056_s5 + $0x50] sm:$0xff]  ;;  %v2623_v35 = vmul.f32 %v8090_v0, %v6067_v5  ;;  %v8223_v0 = vld [vmem:[#allocation71_spill] sm:$0xff] }
 0x1d8   : > { %2058 = vmatpush.msrb.mxu3 %v917_v60  ;;  %v4520_v27 = vpop.permute.xlu0 %4519  ;;  %1974 = vmatmul.f32.gmra.mxu1 %v6282_v9 }
 0x1d9   : > { %v6298_v45 = vpop.permute.xlu1 %4534  ;;  %v4522_v19 = vunpack.i.h.bf16 %v4520_v27  ;;  %v4521_v61 = vunpack.i.l.bf16 %v4520_v27  ;;  %2009 = vmatmul.f32.gmra.mxu2 %v6308_v25  ;;  %v6323_v27 = vpop.permute.xlu2 %4559  ;;  %v4621_v49 = vpack.i.bf16 %v2933_v41, %v2932_v26  ;;  %1945 = vmatmul.f32.gmra.mxu0 %v6314_v59  ;;  %v8089_v26 = vld [vmem:[#allocation21_spill] sm:$0xff] }
 0x1da   : > { %v4536_v6 = vunpack.i.l.bf16 %v6298_v45  ;;  %2059 = vmatpush.msrb.mxu3 %v889_v42  ;;  %v2622_v15 = vmul.f32 %v8089_v26, %v6115_v20 }
 0x1db   : > { %v1425_v60 = vsel %vm7853_vm8, %v8086_v34, %v4521_v61  ;;  %v833_v39 = vsel %vm7853_vm8, %v8088_v57, %v4522_v19  ;;  %v6337_v61 = vld [vmem:[%s8056_s5 + $0x48] sm:$0xff] }
 0x1dc   : > { %2060 = vmatpush.msrb.mxu3 %v861_v63  ;;  %2084 = vmatpush.msrb.mxu0 %v1425_v60  ;;  %v1699_v42 = vsel %vm754_vm11, %v8087_v43, %v4536_v6  ;;  %v8091_v63 = vunpack.i.h.bf16 %v5879_v2  ;;  %v8092_v60 = vunpack.i.h.bf16 %v5652_v7  ;;  %v4626_v57 = vpack.i.bf16 %v2623_v35, %v2622_v15  ;;  %v6374_v2 = vld [vmem:[%s8056_s5 + $0x68] sm:$0xff]  ;;  %v6383_v15 = vld [vmem:[%s8056_s5 + $0x90] sm:$0xff] }
 0x1dd   : > { %2116 = vmatpush.msrb.mxu1 %v1699_v42  ;;  %v8093_v42 = vunpack.i.h.bf16 %v5508_v23 }
 0x1de   : > { %4617 = vrot.lane.b32.xlu0 %v4616_v51, %s7976_s8  ;;  %2061 = vmatpush.msrb.mxu3 %v833_v39  ;;  %v6352_v51 = vld [vmem:[%s8056_s5 + $0x70] sm:$0xff] }
 0x1df   : > { %4622 = vrot.lane.b32.xlu1 %v4621_v49, %s7981_s14  ;;  %2632 = vrot.lane.b32.xlu2 %v2624_v62, %s7906_s28 }
 0x1e0   : > { %v4530_v56 = vpop.permute.xlu0 %4529  ;;  %1977 = vmatmul.f32.gmra.mxu1 %v6337_v61 }
 0x1e1   : > { %v6347_v19 = vpop.permute.xlu1 %4544  ;;  %v4532_v41 = vunpack.i.h.bf16 %v4530_v56  ;;  %v4531_v6 = vunpack.i.l.bf16 %v4530_v56  ;;  %2012 = vmatmul.f32.gmra.mxu2 %v6352_v51  ;;  %1948 = vmatmul.f32.gmra.mxu0 %v6358_v53  ;;  %v1625_v7 = vpop.permute.xlu2 %1624 }
 0x1e2   : > { %v4546_v49 = vunpack.i.l.bf16 %v6347_v19 }
 0x1e3   : > { %v805_v34 = vsel %vm7852_vm5, %v8091_v63, %v4532_v41  ;;  %v1407_v43 = vsel %vm7852_vm5, %v8092_v60, %v4531_v6  ;;  %v8094_v6 = vunpack.i.h.bf16 %v6028_v37  ;;  %v8096_v63 = vunpack.i.h.bf16 %v5694_v55  ;;  %v6396_v60 = vld [vmem:[%s8056_s5 + $0x80] sm:$0xff]  ;;  %v6405_v55 = vld [vmem:[%s8056_s5 + $0x88] sm:$0xff] }
 0x1e4   : > { %2062 = vmatpush.msrb.mxu3 %v805_v34  ;;  %2085 = vmatpush.msrb.mxu0 %v1407_v43  ;;  %v1681_v62 = vsel %vm7863_vm9, %v8093_v42, %v4546_v49  ;;  %v8098_v43 = vunpack.i.h.bf16 %v5558_v24 }
 0x1e5   : > { %2117 = vmatpush.msrb.mxu1 %v1681_v62 }
 0x1e6   : > { %4627 = vrot.lane.b32.xlu0 %v4626_v57, %s7906_s28  ;;  %v4562_v57 = vunpack.i.h.bf16 %v6323_v27 }
 0x1e8   : > { %v4540_v39 = vpop.permute.xlu0 %4539  ;;  %1980 = vmatmul.f32.gmra.mxu1 %v6374_v2 }
 0x1e9   : > { %v6378_v56 = vpop.permute.xlu1 %4554  ;;  %v4542_v23 = vunpack.i.h.bf16 %v4540_v39  ;;  %v4541_v41 = vunpack.i.l.bf16 %v4540_v39  ;;  %2015 = vmatmul.f32.gmra.mxu2 %v6383_v15  ;;  %1951 = vmatmul.f32.gmra.mxu0 %v6396_v60  ;;  %v1289_v37 = vpop.permute.xlu2 %1288  ;;  %v4561_v39 = vunpack.i.l.bf16 %v6323_v27  ;;  %v8105_v27 = vunpack.i.h.bf16 %v5793_v46 }
 0x1ea   : > { %v4556_v35 = vunpack.i.l.bf16 %v6378_v56 }
 0x1eb   : > { %v773_v49 = vsel %vm8095_vm0, %v8094_v6, %v4542_v23  ;;  %v1389_v34 = vsel %vm8097_vm3, %v8096_v63, %v4541_v41  ;;  %vm8101_vm0 = vcmask 261120  }
 0x1ec   : > { %2063 = vmatpush.msrb.mxu3 %v773_v49  ;;  %2086 = vmatpush.msrb.mxu0 %v1389_v34  ;;  %v1663_v42 = vsel %vm8099_vm6, %v8098_v43, %v4556_v35  ;;  %v8100_v49 = vunpack.i.h.bf16 %v6069_v47  ;;  %v8102_v34 = vunpack.i.h.bf16 %v5737_v4  ;;  %vm8103_vm3 = vmmov %vm8101_vm0  ;;  %v8106_v47 = vunpack.i.h.bf16 %v6147_v28 }
 0x1ed   : > { %2118 = vmatpush.msrb.mxu1 %v1663_v42  ;;  %v8104_v42 = vunpack.i.h.bf16 %v6108_v18  ;;  %v8107_v4 = vunpack.i.h.bf16 %v5846_v44  ;;  %vm8110_vm6 = vcmask 908288   ;;  %v4497_v28 = vunpack.i.h.bf16 %v6032_v13  ;;  %v8117_v13 = vld [vmem:[#allocation83_spill] sm:$0xff] }
 0x1ef   : > { %v709_v3 = vsel %vm7862_vm1, %v8104_v42, %v4562_v57  ;;  %v8108_v57 = vld [vmem:[#allocation80_spill] sm:$0xff] }
 0x1f0   : > { %v4550_v62 = vpop.permute.xlu0 %4549  ;;  %1983 = vmatmul.f32.gmra.mxu1 %v6405_v55 }
 0x1f1   : > { %v4570_v23 = vpop.permute.xlu1 %4569  ;;  %v4552_v24 = vunpack.i.h.bf16 %v4550_v62  ;;  %v4551_v41 = vunpack.i.l.bf16 %v4550_v62  ;;  %v1353_v62 = vsel %vm7862_vm1, %v8105_v27, %v4561_v39  ;;  %v1133_v46 = vpop.permute.xlu2 %1132  ;;  %v8109_v39 = vunpack.i.h.bf16 %v8108_v57  ;;  %v8122_v57 = vld [vmem:[#allocation84_spill] sm:$0xff] }
 0x1f2   : > { %v4572_v35 = vunpack.i.h.bf16 %v4570_v23  ;;  %v4571_v6 = vunpack.i.l.bf16 %v4570_v23  ;;  %v4512_v27 = vunpack.i.h.bf16 %v6077_v30 }
 0x1f3   : > { %v741_v63 = vsel %vm8101_vm0, %v8100_v49, %v4552_v24  ;;  %v1371_v43 = vsel %vm8103_vm3, %v8102_v34, %v4551_v41  ;;  %vm8113_vm0 = vcmask 916480   ;;  %v8114_v34 = vld [vmem:[#allocation82_spill] sm:$0xff]  ;;  %vm8116_vm3 = vcmask 924672  }
 0x1f4   : > { %2064 = vmatpush.msrb.mxu3 %v741_v63  ;;  %2087 = vmatpush.msrb.mxu0 %v1371_v43  ;;  %v677_v23 = vsel %vm7842_vm2, %v8106_v47, %v4572_v35  ;;  %v1335_v24 = vsel %vm7842_vm2, %v8107_v4, %v4571_v6  ;;  %v8111_v35 = vld [vmem:[#allocation81_spill] sm:$0xff]  ;;  %v4507_v6 = vunpack.i.h.bf16 %v6149_v32  ;;  %v8115_v43 = vunpack.i.h.bf16 %v8114_v34 }
 0x1f5   : > { %v8112_v63 = vunpack.i.h.bf16 %v8111_v35  ;;  %v8118_v4 = vunpack.i.h.bf16 %v8117_v13  ;;  %v4527_v32 = vunpack.i.h.bf16 %v6237_v40  ;;  %v4537_v40 = vunpack.i.h.bf16 %v6298_v45 }
 0x1f6   : > { %2065 = vmatpush.msrb.mxu3 %v709_v3  ;;  %2088 = vmatpush.msrb.mxu0 %v1353_v62  ;;  %v4557_v45 = vunpack.i.h.bf16 %v6378_v56  ;;  %v8140_v56 = vld [vmem:[#allocation95_spill] sm:$0xff]  ;;  %vm8153_vm2 = vcmask 916480  }
 0x1f7   : > { %v1627_v44 = vsel %vm8113_vm0, %v8112_v63, %v1625_v7  ;;  %v1591_v7 = vsel %vm926_vm13, %v8118_v4, %v4497_v28  ;;  %v1539_v28 = vmul.f32 %v5916_v1, %v8068_v54  ;;  %v8126_v63 = vld [vmem:[#allocation89_spill] sm:$0xff] }
 0x1f8   : > { %v4565_v41 = vpop.permute.xlu0 %4564  ;;  %2066 = vmatpush.msrb.mxu3 %v677_v23  ;;  %2089 = vmatpush.msrb.mxu0 %v1335_v24  ;;  %v8119_v24 = vld [vmem:[#allocation87_spill] sm:$0xff] }
 0x1f9   : > { %v1607_v18 = vpop.permute.xlu1 %1606  ;;  %v4566_v49 = vunpack.i.l.bf16 %v4565_v41  ;;  %2067 = vmatmul.f32.vlgmr.msrb.gmra.mxu3 %v6216_v11 }
 0x1fa   : > { %v1609_v42 = vsel %vm8116_vm3, %v8115_v43, %v1607_v18  ;;  %vm8128_vm3 = vcmask 777216   ;;  %v8129_v43 = vld [vmem:[#allocation86_spill] sm:$0xff] }
 0x1fb   : > { %v1645_v3 = vsel %vm8110_vm6, %v8109_v39, %v4566_v49  ;;  %v8120_v49 = vunpack.i.h.bf16 %v8119_v24  ;;  %vm8121_vm6 = vcmask 769024   ;;  %v8123_v39 = vunpack.i.h.bf16 %v8122_v57 }
 0x1fc   : > { %2119 = vmatpush.msrb.mxu1 %v1645_v3  ;;  %v8124_v3 = vunpack.i.h.bf16 %v5934_v12  ;;  %vm8125_vm0 = vmmov %vm8121_vm6  ;;  %v4547_v12 = vunpack.i.h.bf16 %v6347_v19  ;;  %v4567_v57 = vunpack.i.h.bf16 %v4565_v41  ;;  %v8149_v41 = vld [vmem:[#allocation98_spill] sm:$0xff] }
 0x1fd   : > { %v1573_v30 = vsel %vm954_vm15, %v8123_v39, %v4507_v6  ;;  %v8141_v39 = vunpack.i.h.bf16 %v8140_v56 }
 0x1fe   : > { %2120 = vmatpush.msrb.mxu1 %v1627_v44  ;;  %v8127_v44 = vunpack.i.h.bf16 %v8126_v63 }
 0x200   : > { %v4575_v11 = vpop.permute.xlu0 %4574  ;;  %2121 = vmatpush.msrb.mxu1 %v1609_v42  ;;  %v1291_v34 = vsel %vm8128_vm3, %v8127_v44, %v1289_v37  ;;  %v8130_v42 = vunpack.i.h.bf16 %v8129_v43  ;;  %v8133_v37 = vld [vmem:[#allocation94_spill] sm:$0xff]  ;;  %v8147_v44 = vld [vmem:[#allocation99_spill] sm:$0xff]  ;;  %v8150_v43 = vunpack.i.h.bf16 %v8149_v41 }
 0x201   : > { %v1513_v62 = vpop.permute.xlu1 %1512  ;;  %v4577_v47 = vunpack.i.h.bf16 %v4575_v11  ;;  %v4576_v23 = vunpack.i.l.bf16 %v4575_v11  ;;  %2070 = vmatmul.f32.gmra.mxu3 %v6256_v50  ;;  %v1107_v50 = vpop.permute.xlu2 %1106  ;;  %v8131_v11 = vld [vmem:[#allocation85_spill] sm:$0xff]  ;;  %v8134_v4 = vunpack.i.h.bf16 %v8133_v37 }
 0x202   : > { %2122 = vmatpush.msrb.mxu1 %v1591_v7  ;;  %v1555_v6 = vsel %vm982_vm12, %v8130_v42, %v4512_v27  ;;  %v8135_v7 = vld [vmem:[#allocation91_spill] sm:$0xff]  ;;  %v8160_v37 = vld [vmem:[#allocation93_spill] sm:$0xff] }
 0x203   : > { %v1317_v18 = vsel %vm8121_vm6, %v8120_v49, %v4576_v23  ;;  %v1753_v35 = vsel %vm8125_vm0, %v8124_v3, %v4577_v47  ;;  %v8132_v47 = vunpack.i.h.bf16 %v8131_v11  ;;  %v1239_v27 = vsel %vm754_vm11, %v8134_v4, %v4537_v40  ;;  %v8137_v49 = vld [vmem:[#allocation88_spill] sm:$0xff]  ;;  %vm8139_vm6 = vmmov %vm8128_vm3 }
 0x204   : > { %2090 = vmatpush.msrb.mxu0 %v1317_v18  ;;  %2123 = vmatpush.msrb.mxu1 %v1573_v30  ;;  %v8136_v24 = vunpack.i.h.bf16 %v8135_v7  ;;  %v8142_v30 = vld [vmem:[#allocation92_spill] sm:$0xff]  ;;  %vm8146_vm0 = vcmask 900096   ;;  %vm8148_vm3 = vcmask 130048   ;;  %v8161_v4 = vunpack.i.h.bf16 %v8160_v37 }
 0x205   : > { %2161 = vmatpush.msrb.mxu2 %v1753_v35  ;;  %v1265_v23 = vsel %vm722_vm14, %v8132_v47, %v4527_v32  ;;  %v8138_v32 = vunpack.i.h.bf16 %v8137_v49  ;;  %v8143_v3 = vunpack.i.h.bf16 %v8142_v30  ;;  %v8154_v47 = vld [vmem:[#allocation90_spill] sm:$0xff] }
 0x206   : > { %2091 = vmatpush.msrb.mxu0 %v1291_v34  ;;  %2124 = vmatpush.msrb.mxu1 %v1555_v6 }
 0x207   : > { %v1515_v35 = vsel %vm971_vm4, %v8143_v3, %v1513_v62  ;;  %v8152_v62 = vunpack.i.h.bf16 %v6117_v38 }
 0x208   : > { %v1531_v1 = vpop.permute.xlu0 %1530  ;;  %2092 = vmatpush.msrb.mxu0 %v1265_v23  ;;  %2125 = vmatpush.msrb.mxu1 %v1539_v28  ;;  %v8144_v28 = vld [vmem:[#allocation97_spill] sm:$0xff]  ;;  %v8155_v23 = vunpack.i.h.bf16 %v8154_v47 }
 0x209   : > { %v1733_v13 = vpop.permute.xlu1 %1732  ;;  %2073 = vmatmul.f32.gmra.mxu3 %v6314_v59  ;;  %v1533_v19 = vsel %vm999_vm7, %v8136_v24, %v1531_v1  ;;  %v1213_v59 = vsel %vm7863_vm9, %v8141_v39, %v4547_v12  ;;  %v8145_v40 = vunpack.i.h.bf16 %v8144_v28  ;;  %v6490_v34 = vpop.permute.xlu2 %1905  ;;  %v1135_v11 = vsel %vm8153_vm2, %v8152_v62, %v1133_v46 }
 0x20a   : > { %2093 = vmatpush.msrb.mxu0 %v1239_v27  ;;  %2126 = vmatpush.msrb.mxu1 %v1533_v19  ;;  %v1735_v18 = vsel %vm8139_vm6, %v8138_v32, %v1733_v13  ;;  %vm8151_vm6 = vcmask 908288   ;;  %vm8162_vm2 = vcmask 121856  }
 0x20b   : > { %2162 = vmatpush.msrb.mxu2 %v1735_v18  ;;  %v1187_v63 = vsel %vm8146_vm0, %v8145_v40, %v4557_v45  ;;  %v1161_v42 = vsel %vm8151_vm6, %v8150_v43, %v4567_v57  ;;  %vm8156_vm0 = vcmask 113664   ;;  %v8157_v45 = vunpack.i.h.bf16 %v6184_v16  ;;  %v8163_v16 = vld [vmem:[#allocation96_spill] sm:$0xff] }
 0x20c   : > { %2094 = vmatpush.msrb.mxu0 %v1213_v59  ;;  %2127 = vmatpush.msrb.mxu1 %v1515_v35  ;;  %vm8159_vm6 = vcmask 130048   ;;  %v8170_v35 = vld [vmem:[#allocation6_spill] sm:$0xff] }
 0x20d   : > { %4187 = vmatmul.msk.f32.vlgmr.msrb.gmra.mxu2 %vm8148_vm3, %v8147_v44  ;;  %vm8158_vm3 = vcmask 924672   ;;  %v2730_v28 = vmul.f32 %v8170_v35, %v6067_v5 }
 0x20e   : > { %2095 = vmatpush.msrb.mxu0 %v1187_v63  ;;  %v1109_v13 = vsel %vm8158_vm3, %v8157_v45, %v1107_v50  ;;  %v8164_v50 = vunpack.i.h.bf16 %v8163_v16 }
 0x210   : > { %v1495_v6 = vpop.permute.xlu0 %1494  ;;  %2096 = vmatpush.msrb.mxu0 %v1161_v42 }
 0x211   : > { %v1459_v12 = vpop.permute.xlu1 %1458  ;;  %2076 = vmatmul.f32.gmra.mxu3 %v6358_v53  ;;  %v1497_v1 = vsel %vm8156_vm0, %v8155_v23, %v1495_v6  ;;  %v6508_v53 = vpop.permute.xlu2 %1890  ;;  %vm8165_vm0 = vmmov %vm8159_vm6 }
 0x212   : > { %2097 = vmatpush.msrb.mxu0 %v1135_v11  ;;  %2128 = vmatpush.msrb.mxu1 %v1497_v1  ;;  %v1461_v7 = vsel %vm8165_vm0, %v8164_v50, %v1459_v12  ;;  %vm8167_vm3 = vmmov %vm8165_vm0 }
 0x214   : > { %2098 = vmatpush.msrb.mxu0 %v1109_v13 }
 0x215   : > { %2099 = vmatmul.f32.vlgmr.msrb.gmra.mxu0 %v6231_v10  ;;  %4188 = vmatmul.msk.f32.gmra.mxu2 %vm8159_vm6, %v6132_v48  ;;  %v8166_v48 = vld [vmem:[#allocation100_spill] sm:$0xff]  ;;  %vm8168_vm6 = vmmov %vm8165_vm0 }
 0x218   : > { %v1477_v38 = vpop.permute.xlu0 %1476 }
 0x219   : > { %v6510_v46 = vpop.permute.xlu1 %1895  ;;  %2079 = vmatmul.f32.gmra.mxu3 %v6396_v60  ;;  %v1479_v27 = vsel %vm8162_vm2, %v8161_v4, %v1477_v38  ;;  %v4588_v24 = vpop.permute.xlu2 %4587  ;;  %vm8169_vm2 = vmmov %vm8165_vm0  ;;  %vm8171_vm0 = vcmask 113664  }
 0x21a   : > { %2129 = vmatpush.msrb.mxu1 %v1479_v27  ;;  %v4590_v49 = vunpack.i.h.bf16 %v4588_v24 }
 0x21c   : > { %2130 = vmatpush.msrb.mxu1 %v1461_v7 }
 0x21d   : > { %2102 = vmatmul.f32.gmra.mxu0 %v6282_v9  ;;  %2131 = vmatmul.f32.vlgmr.msrb.gmra.mxu1 %v6206_v29  ;;  %v4589_v9 = vunpack.i.l.bf16 %v4588_v24 }
 0x21e   : > { %4189 = vmatmul.msk.f32.gmra.mxu2 %vm8167_vm3, %v8166_v48  ;;  %vm8172_vm3 = vcmask 121856  }
 0x220   : > { %v6523_v10 = vpop.permute.xlu0 %1900 }
 0x221   : > { %v6525_v60 = vpop.permute.xlu1 %1885  ;;  %v4598_v39 = vpop.permute.xlu2 %4597 }
 0x222   : > { %v4600_v40 = vunpack.i.h.bf16 %v4598_v39 }
 0x225   : > { %2105 = vmatmul.f32.gmra.mxu0 %v6337_v61  ;;  %2134 = vmatmul.f32.gmra.mxu1 %v6246_v58  ;;  %v2764_v58 = vsel %vm954_vm15, %v4589_v9, %v4590_v49 }
 0x226   : > { %4190 = vmatmul.msk.f32.gmra.mxu2 %vm8168_vm6, %v6211_v14  ;;  %vm8173_vm6 = vmmov %vm8171_vm0 }
 0x228   : > { %v4583_v19 = vpop.permute.xlu0 %4582 }
 0x229   : > { %v2781_v32 = vpop.permute.xlu1 %2780  ;;  %v4585_v29 = vunpack.i.h.bf16 %v4583_v19  ;;  %v4584_v18 = vunpack.i.l.bf16 %v4583_v19  ;;  %v2705_v63 = vpop.permute.xlu2 %2704 }
 0x22b   : > { %v2782_v57 = vsel %vm926_vm13, %v4584_v18, %v4585_v29  ;;  %v6533_v56 = vsel %vm926_vm13, %v4585_v29, %v2781_v32 }
 0x22c   : > { %3012 = vmatpush.msra.mxu1 %v2782_v57 }
 0x22d   : > { %2108 = vmatmul.f32.gmra.mxu0 %v6374_v2  ;;  %2137 = vmatmul.f32.gmra.mxu1 %v6308_v25  ;;  %v4599_v2 = vunpack.i.l.bf16 %v4598_v39 }
 0x22e   : > { %3013 = vmatpush.msra.mxu1 %v2764_v58  ;;  %4191 = vmatmul.msk.f32.gmra.mxu2 %vm8169_vm2, %v6251_v8  ;;  %vm8174_vm2 = vmmov %vm8172_vm3 }
 0x22f   : > { %v2724_v44 = vsel %vm999_vm7, %v4599_v2, %v4600_v40 }
 0x230   : > { %v2763_v14 = vpop.permute.xlu0 %2762 }
 0x231   : > { %v4593_v61 = vpop.permute.xlu1 %4592  ;;  %v6541_v59 = vsel %vm954_vm15, %v4590_v49, %v2763_v14  ;;  %v4613_v6 = vpop.permute.xlu2 %4612 }
 0x232   : > { %v4595_v30 = vunpack.i.h.bf16 %v4593_v61  ;;  %v4594_v3 = vunpack.i.l.bf16 %v4593_v61  ;;  %v4615_v23 = vunpack.i.h.bf16 %v4613_v6  ;;  %v4614_v1 = vunpack.i.l.bf16 %v4613_v6 }
 0x233   : > { %v2036_v4 = vpop.f32.mrf.mxu3 }
 0x234   : > { %v2746_v25 = vsel %vm982_vm12, %v4594_v3, %v4595_v30 }
 0x235   : > { %3014 = vmatpush.msra.mxu1 %v2746_v25  ;;  %2111 = vmatmul.f32.gmra.mxu0 %v6405_v55 }
 0x236   : > { %2140 = vmatmul.f32.gmra.mxu1 %v6352_v51 }
 0x237   : > { %3015 = vmatpush.msra.mxu1 %v2730_v28 }
 0x238   : > { %v2745_v8 = vpop.permute.xlu0 %2744 }
 0x239   : > { %v2723_v41 = vpop.permute.xlu1 %2722  ;;  %3016 = vmatpush.msra.mxu1 %v2724_v44  ;;  %v6550_v43 = vsel %vm982_vm12, %v4595_v30, %v2745_v8  ;;  %v2651_v18 = vpop.permute.xlu2 %2650 }
 0x23a   : > { %v6553_v42 = vsel %vm999_vm7, %v4600_v40, %v2723_v41 }
 0x23b   : > { %v2039_v14 = vpop.f32.mrf.mxu3 }
 0x23c   : > { %v2004_v24 = vpop.f32.mrf.mxu2 }
 0x23e   : > { %2143 = vmatmul.f32.gmra.mxu1 %v6383_v15  ;;  %v2670_v15 = vsel %vm8172_vm3, %v4614_v1, %v4615_v23 }
 0x240   : > { %v4603_v12 = vpop.permute.xlu0 %4602 }
 0x241   : > { %v4608_v55 = vpop.permute.xlu1 %4607  ;;  %v4605_v62 = vunpack.i.h.bf16 %v4603_v12  ;;  %v4604_v11 = vunpack.i.l.bf16 %v4603_v12 }
 0x242   : > { %v4610_v51 = vunpack.i.h.bf16 %v4608_v55  ;;  %v4609_v47 = vunpack.i.l.bf16 %v4608_v55 }
 0x243   : > { %v2706_v45 = vsel %vm971_vm4, %v4604_v11, %v4605_v62  ;;  %v6558_v13 = vsel %vm971_vm4, %v4605_v62, %v2705_v63  ;;  %v2042_v44 = vpop.f32.mrf.mxu3 }
 0x244   : > { %3017 = vmatpush.msra.mxu1 %v2706_v45  ;;  %v2688_v38 = vsel %vm8171_vm0, %v4609_v47, %v4610_v51  ;;  %vm8175_vm0 = vcmask 130048  }
 0x245   : > { %v1940_v16 = vpop.f32.mrf.mxu0  ;;  %vm8176_vm3 = vmmov %vm8175_vm0 }
 0x246   : > { %3018 = vmatpush.msra.mxu1 %v2688_v38 }
 0x248   : > { %v2687_v37 = vpop.permute.xlu0 %2686  ;;  %3019 = vmatpush.msra.mxu1 %v2670_v15 }
 0x249   : > { %v2669_v27 = vpop.permute.xlu1 %2668  ;;  %v6563_v50 = vsel %vm8173_vm6, %v4610_v51, %v2687_v37  ;;  %vm8177_vm6 = vcmask 769024  }
 0x24a   : > { %v6566_v7 = vsel %vm8174_vm2, %v4615_v23, %v2669_v27  ;;  %v1972_v48 = vpop.f32.mrf.mxu1  ;;  %vm8226_vm2 = vcmask 777216  }
 0x24c   : > { %v2045_v11 = vpop.f32.mrf.mxu3 }
 0x24d   : > { %v1943_v29 = vpop.f32.mrf.mxu0 }
 0x250   : > { %v4618_v19 = vpop.permute.xlu0 %4617 }
 0x251   : > { %v6568_v49 = vpop.permute.xlu1 %4622  ;;  %v4620_v9 = vunpack.i.h.bf16 %v4618_v19  ;;  %v4619_v32 = vunpack.i.l.bf16 %v4618_v19  ;;  %v1941_v19 = vadd.f32 %v1940_v16, %v6525_v60 }
 0x252   : > { %v7843_v57 = vunpack.i.h.bf16 %v6568_v49  ;;  %v4624_v39 = vunpack.i.l.bf16 %v6568_v49 }
 0x253   : > { %v2652_v58 = vsel %vm8175_vm0, %v4619_v32, %v4620_v9  ;;  %v6574_v61 = vsel %vm8176_vm3, %v4620_v9, %v2651_v18  ;;  %v2007_v28 = vpop.f32.mrf.mxu2  ;;  %v1973_v32 = vadd.f32 %v1972_v48, %v1941_v19  ;;  %vm2214_vm0 = vcmask 326656  }
 0x254   : > { %3020 = vmatpush.msra.mxu1 %v2652_v58  ;;  %v2944_v30 = vsel %vm8177_vm6, %v4624_v39, %v7843_v57  ;;  %v2048_v15 = vpop.f32.mrf.mxu3  ;;  %vm8229_vm3 = vcmask 252928   ;;  %vm8230_vm6 = vcmask 261120  }
 0x255   : > { %3039 = vmatpush.msra.mxu2 %v2944_v30  ;;  %v1975_v3 = vpop.f32.mrf.mxu1  ;;  %v2005_v30 = vadd.f32 %v2004_v24, %v1973_v32 }
 0x256   : > { %v1946_v63 = vpop.f32.mrf.mxu0 }
 0x257   : > { %v1947_v24 = vadd.f32 %v1946_v63, %v6510_v46 }
 0x258   : > { %v6579_v40 = vpop.permute.xlu0 %4627 }
 0x259   : > { %v7844_v2 = vunpack.i.h.bf16 %v6579_v40  ;;  %v4629_v25 = vunpack.i.l.bf16 %v6579_v40 }
 0x25b   : > { %v2634_v8 = vsel %vm7864_vm10, %v4629_v25, %v7844_v2  ;;  %v1944_v25 = vadd.f32 %v1943_v29, %v6508_v53  ;;  %v8202_v2 = vld [vmem:[#allocation9_spill] sm:$0xff] }
 0x25c   : > { %3021 = vmatpush.msra.mxu1 %v2634_v8  ;;  %v2010_v6 = vpop.f32.mrf.mxu2  ;;  %v2880_v35 = vmul.f32 %v8202_v2, %v6101_v22 }
 0x25d   : > { %v1978_v41 = vpop.f32.mrf.mxu1 }
 0x25e   : > { %v1949_v12 = vpop.f32.mrf.mxu0 }
 0x264   : > { %v2013_v62 = vpop.f32.mrf.mxu2 }
 0x265   : > { %v1981_v55 = vpop.f32.mrf.mxu1 }
 0x266   : > { %v1952_v51 = vpop.f32.mrf.mxu0 }
 0x267   : > { %v1953_v47 = vadd.f32 %v1952_v51, %v6490_v34 }
 0x26c   : > { %v2016_v45 = vpop.f32.mrf.mxu2 }
 0x26d   : > { %v1984_v23 = vpop.f32.mrf.mxu1 }
 0x26e   : > { %v1985_v1 = vadd.f32 %v1984_v23, %v1953_v47 }
 0x270   : > { %v2017_v38 = vadd.f32 %v2016_v45, %v1985_v1  ;;  %v6592_v1 = vadd.f32 %v2036_v4, %v2005_v30  ;;  %v1976_v45 = vadd.f32 %v1975_v3, %v1944_v25  ;;  %v1979_v4 = vadd.f32 %v1978_v41, %v1947_v24 }
 0x271   : > { %v1950_v30 = vadd.f32 %v1949_v12, %v6523_v10 }
 0x272   : > { %v6587_v37 = vadd.f32 %v2048_v15, %v2017_v38 }
 0x27c   : > { %v2068_v27 = vpop.f32.mrf.mxu3 }
 0x27d   : > { %v2069_v39 = vadd.f32 %v2068_v27, %v6525_v60  ;;  %v2008_v60 = vadd.f32 %v2007_v28, %v1976_v45 }
 0x27f   : > { %v6600_v32 = vadd.f32 %v2039_v14, %v2008_v60 }
 0x284   : > { %v2071_v58 = vpop.f32.mrf.mxu3 }
 0x285   : > { %v2072_v16 = vadd.f32 %v2071_v58, %v6508_v53  ;;  %v2011_v58 = vadd.f32 %v2010_v6, %v1979_v4 }
 0x287   : > { %v6609_v41 = vadd.f32 %v2042_v44, %v2011_v58  ;;  %v8178_v44 = vld [vmem:[#allocation32_spill] sm:$0xff]  ;;  %v8183_v58 = vld [vmem:[#allocation19_spill] sm:$0xff] }
 0x28c   : > { %v2074_v27 = vpop.f32.mrf.mxu3 }
 0x28d   : > { %v2075_v53 = vadd.f32 %v2074_v27, %v6510_v46  ;;  %v8179_v27 = vld [vmem:[#allocation77_spill] sm:$0xff] }
 0x290   : > { %v2164_v18 = vpop.f32.mrf.mxu2 }
 0x292   : > { %v2100_v9 = vpop.f32.mrf.mxu0 }
 0x293   : > { %v2101_v8 = vadd.f32 %v2100_v9, %v2069_v39 }
 0x298   : > { %v2167_v15 = vpop.f32.mrf.mxu2 }
 0x29a   : > { %v2132_v51 = vpop.f32.mrf.mxu1  ;;  %v2103_v47 = vpop.f32.mrf.mxu0 }
 0x29b   : > { %v2133_v23 = vadd.f32 %v2132_v51, %v2101_v8  ;;  %v2104_v29 = vadd.f32 %v2103_v47, %v2072_v16  ;;  %v2077_v8 = vpop.f32.mrf.mxu3 }
 0x29c   : > { %v2078_v14 = vadd.f32 %v2077_v8, %v6523_v10  ;;  %v8185_v8 = vld [vmem:[#allocation39_spill] sm:$0xff] }
 0x29d   : > { %v6594_v38 = vadd.f32 %v2164_v18, %v2133_v23  ;;  %v1982_v23 = vadd.f32 %v1981_v55, %v1950_v30  ;;  %v2606_v55 = vmul.f32 %v8178_v44, %v6064_v33 }
 0x29f   : > { %v2194_v48 = vadd.f32 %v6594_v38, %v6592_v1  ;;  %v2014_v16 = vadd.f32 %v2013_v62, %v1982_v23  ;;  %v8180_v62 = vld [vmem:[#allocation79_spill] sm:$0xff] }
 0x2a1   : > { %2195 = vadd.xlane.f32.xlu2 %v2194_v48  ;;  %v2170_v63 = vpop.f32.mrf.mxu2  ;;  %v6615_v60 = vadd.f32 %v2045_v11, %v2014_v16  ;;  %v8181_v11 = vld [vmem:[#allocation31_spill] sm:$0xff] }
 0x2a2   : > { %v2135_v19 = vpop.f32.mrf.mxu1  ;;  %v2106_v3 = vpop.f32.mrf.mxu0  ;;  %v2604_v4 = vmul.f32 %v8181_v11, %v6115_v20  ;;  %v8188_v16 = vld [vmem:[#allocation15_spill] sm:$0xff] }
 0x2a3   : > { %v2136_v9 = vadd.f32 %v2135_v19, %v2104_v29  ;;  %v2107_v28 = vadd.f32 %v2106_v3, %v2075_v53  ;;  %v2914_v29 = vmul.f32 %v8179_v27, %v6067_v5  ;;  %v2915_v19 = vmul.f32 %v8180_v62, %v6064_v33  ;;  %v8182_v3 = vld [vmem:[#allocation33_spill] sm:$0xff] }
 0x2a4   : > { %v2605_v53 = vmul.f32 %v8182_v3, %v6067_v5  ;;  %v8217_v3 = vld [vmem:[#allocation73_spill] sm:$0xff] }
 0x2a5   : > { %v6602_v18 = vadd.f32 %v2167_v15, %v2136_v9  ;;  %v4631_v9 = vpack.i.bf16 %v2915_v19, %v2914_v29  ;;  %v8189_v29 = vld [vmem:[#allocation76_spill] sm:$0xff] }
 0x2a6   : > { %v2934_v19 = vmul.f32 %v8189_v29, %v6101_v22 }
 0x2a7   : > { %v2197_v39 = vadd.f32 %v6602_v18, %v6600_v32 }
 0x2a9   : > { %2198 = vadd.xlane.f32.xlu2 %v2197_v39  ;;  %v2173_v15 = vpop.f32.mrf.mxu2  ;;  %v4636_v39 = vpack.i.bf16 %v2605_v53, %v2604_v4 }
 0x2aa   : > { %v2138_v25 = vpop.f32.mrf.mxu1  ;;  %v2109_v46 = vpop.f32.mrf.mxu0 }
 0x2ab   : > { %v2139_v51 = vadd.f32 %v2138_v25, %v2107_v28  ;;  %v2110_v6 = vadd.f32 %v2109_v46, %v2078_v14  ;;  %v2897_v28 = vmul.f32 %v8183_v58, %v6064_v33  ;;  %v8186_v14 = vld [vmem:[#allocation42_spill] sm:$0xff] }
 0x2ac   : > { %v2587_v23 = vmul.f32 %v8186_v14, %v6067_v5  ;;  %v8210_v14 = vld [vmem:[#allocation62_spill] sm:$0xff] }
 0x2ad   : > { %v6611_v47 = vadd.f32 %v2170_v63, %v2139_v51  ;;  %v8184_v63 = vld [vmem:[#allocation12_spill] sm:$0xff]  ;;  %v2586_v51 = vmul.f32 %v8185_v8, %v6115_v20 }
 0x2ae   : > { %v2896_v30 = vmul.f32 %v8184_v63, %v6067_v5  ;;  %v8222_v63 = vld [vmem:[#allocation56_spill] sm:$0xff] }
 0x2af   : > { %v2200_v45 = vadd.f32 %v6611_v47, %v6609_v41  ;;  %v4646_v46 = vpack.i.bf16 %v2587_v23, %v2586_v51  ;;  %v8192_v51 = vld [vmem:[#allocation29_spill] sm:$0xff] }
 0x2b0   : > { %v4641_v25 = vpack.i.bf16 %v2897_v28, %v2896_v30  ;;  %v8191_v30 = vld [vmem:[#allocation27_spill] sm:$0xff]  ;;  %v2861_v23 = vmul.f32 %v8192_v51, %v6064_v33  ;;  %v8203_v51 = vld [vmem:[#allocation69_spill] sm:$0xff] }
 0x2b1   : > { %2201 = vadd.xlane.f32.xlu1 %v2200_v45  ;;  %v8187_v45 = vld [vmem:[#allocation8_spill] sm:$0xff] }
 0x2b3   : > { %v2141_v48 = vpop.f32.mrf.mxu1 }
 0x2b4   : > { %v2142_v12 = vadd.f32 %v2141_v48, %v2110_v6  ;;  %v2878_v6 = vmul.f32 %v8187_v45, %v6067_v5  ;;  %v2879_v48 = vmul.f32 %v8188_v16, %v6064_v33  ;;  %v8211_v16 = vld [vmem:[#allocation46_spill] sm:$0xff] }
 0x2b6   : > { %v6617_v24 = vadd.f32 %v2173_v15, %v2142_v12  ;;  %v4651_v15 = vpack.i.bf16 %v2879_v48, %v2878_v6  ;;  %v2080_v12 = vpop.f32.mrf.mxu3  ;;  %v8193_v48 = vld [vmem:[#allocation53_spill] sm:$0xff] }
 0x2b8   : > { %v2203_v10 = vadd.f32 %v6617_v24, %v6615_v60 }
 0x2ba   : > { %2204 = vadd.xlane.f32.xlu0 %v2203_v10  ;;  %v2112_v10 = vpop.f32.mrf.mxu0 }
 0x2c1   : > { %2614 = vrot.lane.b32.xlu2 %v2606_v55, %s7918_s22  ;;  %v2081_v55 = vadd.f32 %v2080_v12, %v6490_v34  ;;  %v8194_v12 = vld [vmem:[#allocation55_spill] sm:$0xff] }
 0x2c3   : > { %v2113_v4 = vadd.f32 %v2112_v10, %v2081_v55  ;;  %v2551_v10 = vmul.f32 %v8194_v12, %v6067_v5  ;;  %v8206_v12 = vld [vmem:[#allocation54_spill] sm:$0xff] }
 0x2ca   : > { %4632 = vrot.lane.b32.xlu1 %v4631_v9, %s7983_s7  ;;  %v2144_v9 = vpop.f32.mrf.mxu1 }
 0x2cb   : > { %v2145_v53 = vadd.f32 %v2144_v9, %v2113_v4  ;;  %v8195_v9 = vld [vmem:[#allocation41_spill] sm:$0xff] }
 0x2ce   : > { %4637 = vrot.lane.b32.xlu0 %v4636_v39, %s7918_s22  ;;  %v8190_v39 = vld [vmem:[#allocation30_spill] sm:$0xff] }
 0x2cf   : > { %v2570_v28 = vmul.f32 %v8190_v39, %v6064_v33  ;;  %v6671_v33 = vld [vmem:[%s6061_s15 + $0x10] sm:$0xff] }
 0x2d0   : > { %v2552_v4 = vmul.f32 %v6671_v33, %v8195_v9 }
 0x2d2   : > { %4642 = vrot.lane.b32.xlu1 %v4641_v25, %s7984_s10  ;;  %v2860_v25 = vmul.f32 %v8191_v30, %v6067_v5  ;;  %v8197_v5 = vld [vmem:[#allocation61_spill] sm:$0xff]  ;;  %v2516_v30 = vmul.f32 %v6671_v33, %v8203_v51  ;;  %v2789_v51 = vmul.f32 %v6671_v33, %v8210_v14 }
 0x2d4   : > { %v4661_v6 = vpack.i.bf16 %v2861_v23, %v2860_v25  ;;  %v2532_v25 = vmul.f32 %v8197_v5, %v6115_v20  ;;  %v4878_v23 = vld [vmem:[%s6061_s15 + $0x8] sm:$0xff] }
 0x2d6   : > { %4647 = vrot.lane.b32.xlu0 %v4646_v46, %s7930_s1  ;;  %v2176_v46 = vpop.f32.mrf.mxu2 }
 0x2d7   : > { %v6660_v34 = vadd.f32 %v2176_v46, %v2145_v53  ;;  %v8196_v53 = vld [vmem:[#allocation16_spill] sm:$0xff] }
 0x2d8   : > { %v8198_v46 = vld [vmem:[#allocation64_spill] sm:$0xff] }
 0x2d9   : > { %v2206_v55 = vadd.f32 %v6660_v34, %v6587_v37 }
 0x2da   : > { %4652 = vrot.lane.b32.xlu1 %v4651_v15, %s7986_s9  ;;  %v2550_v15 = vmul.f32 %v8193_v48, %v6115_v20 }
 0x2de   : > { %2942 = vrot.lane.b32.xlu0 %v2934_v19, %s7981_s14  ;;  %v4666_v19 = vpack.i.bf16 %v2551_v10, %v2550_v15  ;;  %v8199_v10 = vld [vmem:[#allocation26_spill] sm:$0xff] }
 0x2e2   : > { %2578 = vrot.lane.b32.xlu1 %v2570_v28, %s7937_s19  ;;  %v2898_v28 = vmul.f32 %v8196_v53, %v6101_v22  ;;  %v8208_v22 = vld [vmem:[#allocation44_spill] sm:$0xff] }
 0x2e6   : > { %4662 = vrot.lane.b32.xlu0 %v4661_v6, %s7913_s21  ;;  %v2533_v6 = vmul.f32 %v4878_v23, %v8198_v46 }
 0x2e8   : > { %v4676_v15 = vpack.i.bf16 %v2533_v6, %v2532_v25  ;;  %v8205_v6 = vld [vmem:[#allocation34_spill] sm:$0xff] }
 0x2e9   : > { %v2806_v9 = vmul.f32 %v4878_v23, %v8205_v6 }
 0x2ea   : > { %4667 = vrot.lane.b32.xlu1 %v4666_v19, %s7948_s24  ;;  %2207 = vadd.xlane.f32.xlu2 %v2206_v55  ;;  %v2824_v55 = vmul.f32 %v4878_v23, %v8199_v10  ;;  %v8200_v19 = vld [vmem:[#allocation45_spill] sm:$0xff] }
 0x2eb   : > { %v2825_v57 = vmul.f32 %v6671_v33, %v8200_v19 }
 0x2ee   : > { %2560 = vrot.lane.b32.xlu0 %v2552_v4, %s7948_s24  ;;  %v4681_v4 = vpack.i.bf16 %v2825_v57, %v2824_v55  ;;  %v2568_v57 = vmul.f32 %v8208_v22, %v6115_v20  ;;  %v8209_v55 = vld [vmem:[#allocation47_spill] sm:$0xff] }
 0x2f2   : > { %2906 = vrot.lane.b32.xlu1 %v2898_v28, %s7984_s10  ;;  %v8204_v28 = vld [vmem:[#allocation40_spill] sm:$0xff] }
 0x2f3   : > { %v2588_v25 = vmul.f32 %v6671_v33, %v8204_v28  ;;  %v2569_v28 = vmul.f32 %v4878_v23, %v8211_v16  ;;  %v6732_v16 = vpop.permute.xlu2 %2632 }
 0x2f5   : > { %v4656_v44 = vpack.i.bf16 %v2569_v28, %v2568_v57  ;;  %v8219_v57 = vld [vmem:[#allocation36_spill] sm:$0xff] }
 0x2f6   : > { %4677 = vrot.lane.b32.xlu0 %v4676_v15, %s7960_s16  ;;  %v2807_v15 = vmul.f32 %v6671_v33, %v8206_v12 }
 0x2fa   : > { %4682 = vrot.lane.b32.xlu1 %v4681_v4, %s8201_s4  ;;  %v2788_v4 = vmul.f32 %v4878_v23, %v8209_v55 }
 0x2fc   : > { %v4696_v45 = vpack.i.bf16 %v2789_v51, %v2788_v4  ;;  %v8218_v51 = vld [vmem:[#allocation60_spill] sm:$0xff] }
 0x2fe   : > { %2888 = vrot.lane.b32.xlu0 %v2880_v35, %s7986_s9  ;;  %v4691_v35 = vpack.i.bf16 %v2807_v15, %v2806_v9  ;;  %v8216_v9 = vld [vmem:[#allocation52_spill] sm:$0xff] }
 0x302   : > { %2524 = vrot.lane.b32.xlu1 %v2516_v30, %s8207_s12  ;;  %2596 = vrot.lane.b32.xlu2 %v2588_v25, %s7930_s1  ;;  %v4879_v30 = vld [vmem:[%s6061_s15 + $0x18] sm:$0xff] }
 0x303   : > { %v8214_v25 = vld [vmem:[#allocation22_spill] sm:$0xff]  ;;  %v2808_v15 = vmul.f32 %v4879_v30, %v8216_v9  ;;  %v2916_v58 = vmul.f32 %v4879_v30, %v8217_v3  ;;  %v2790_v28 = vmul.f32 %v4879_v30, %v8218_v51  ;;  %v2515_v51 = vmul.f32 %v4878_v23, %v8223_v0 }
 0x304   : > { %v2844_v20 = vmul.f32 %v4879_v30, %v8214_v25 }
 0x306   : > { %4692 = vrot.lane.b32.xlu0 %v4691_v35, %s8212_s29  ;;  %v8220_v35 = vld [vmem:[#allocation38_spill] sm:$0xff] }
 0x30a   : > { %4697 = vrot.lane.b32.xlu1 %v4696_v45, %s8213_s18  ;;  %4657 = vrot.lane.b32.xlu2 %v4656_v44, %s7937_s19  ;;  %v2842_v45 = vmul.f32 %v4878_v23, %v8219_v57  ;;  %v2843_v44 = vmul.f32 %v6671_v33, %v8220_v35  ;;  %v8224_v57 = vld [vmem:[#allocation13_spill] sm:$0xff] }
 0x30b   : > { %v2862_v35 = vmul.f32 %v4879_v30, %v8224_v57 }
 0x30c   : > { %v4671_v4 = vpack.i.bf16 %v2843_v44, %v2842_v45  ;;  %v8225_v44 = vld [vmem:[#allocation43_spill] sm:$0xff] }
 0x30e   : > { %2852 = vrot.lane.b32.xlu0 %v2844_v20, %s8215_s30  ;;  %v8221_v20 = vld [vmem:[#allocation51_spill] sm:$0xff] }
 0x30f   : > { %v2534_v9 = vmul.f32 %v6671_v33, %v8221_v20 }
 0x312   : > { %2816 = vrot.lane.b32.xlu1 %v2808_v15, %s8212_s29  ;;  %2924 = vrot.lane.b32.xlu2 %v2916_v58, %s7983_s7  ;;  %v4880_v15 = vld [vmem:[%s6061_s15] sm:$0xff]  ;;  %s8270_s29 = sld [smem:[#allocation104_spill]] }
 0x313   : > { %v2514_v58 = vmul.f32 %v4880_v15, %v8222_v63 }
 0x315   : > { %v4686_v39 = vpack.i.bf16 %v2515_v51, %v2514_v58  ;;  %v3002_v51 = vld [vmem:[%s8227_s26] sm:$0xff] }
 0x316   : > { %2798 = vrot.lane.b32.xlu0 %v2790_v28, %s8213_s18  ;;  %s8254_s18 = sld [smem:[#allocation109_spill]] }
 0x31a   : > { %4672 = vrot.lane.b32.xlu2 %v4671_v4, %s8215_s30  ;;  %v2826_v4 = vmul.f32 %v4879_v30, %v8225_v44  ;;  %v2196_v30 = vpop.xlane.xlu2 %2195 }
 0x31b   : > { %v2209_v19 = vmul.f32 0.00390625, %v2196_v30 }
 0x322   : > { %2542 = vrot.lane.b32.xlu2 %v2534_v9, %s7960_s16  ;;  %v2199_v21 = vpop.xlane.xlu2 %2198 }
 0x323   : > { %v2210_v20 = vmul.f32 0.00390625, %v2199_v21 }
 0x324   : > { %v2202_v28 = vpop.xlane.xlu1 %2201 }
 0x325   : > { %v2211_v6 = vmul.f32 0.00390625, %v2202_v28 }
 0x32a   : > { %4687 = vrot.lane.b32.xlu2 %v4686_v39, %s8207_s12  ;;  %v2615_v52 = vpop.permute.xlu2 %2614 }
 0x32d   : > { %v2205_v45 = vpop.xlane.xlu0 %2204 }
 0x32e   : > { %v2212_v12 = vmul.f32 0.00390625, %v2205_v45 }
 0x332   : > { %2870 = vrot.lane.b32.xlu2 %v2862_v35, %s7913_s21 }
 0x33a   : > { %2834 = vrot.lane.b32.xlu2 %v2826_v4, %s8201_s4 }
 0x33c   : > { %v6735_v9 = vpop.permute.xlu1 %4632 }
 0x33d   : > { %v7845_v15 = vunpack.i.h.bf16 %v6735_v9  ;;  %v4634_v23 = vunpack.i.l.bf16 %v6735_v9 }
 0x33f   : > { %v2926_v39 = vsel %vm8226_vm2, %v4634_v23, %v7845_v15  ;;  %vm8234_vm2 = vcmask 900096  }
 0x340   : > { %v6745_v35 = vpop.permute.xlu0 %4637  ;;  %3040 = vmatpush.msra.mxu2 %v2926_v39 }
 0x341   : > { %v7847_v58 = vunpack.i.h.bf16 %v6745_v35  ;;  %v4639_v4 = vunpack.i.l.bf16 %v6745_v35 }
 0x342   : > { %3005 = vperm.xlu2 %4578, %v3002_v51  }
 0x343   : > { %v2616_v63 = vsel %vm7853_vm8, %v4639_v4, %v7847_v58 }
 0x344   : > { %3022 = vmatpush.msra.mxu1 %v2616_v63  ;;  %v6752_v0 = vpop.permute.xlu1 %4642 }
 0x345   : > { %v7848_v23 = vunpack.i.h.bf16 %v6752_v0  ;;  %v4644_v15 = vunpack.i.l.bf16 %v6752_v0 }
 0x347   : > { %v2908_v39 = vsel %vm722_vm14, %v4644_v15, %v7848_v23 }
 0x348   : > { %v6759_v62 = vpop.permute.xlu0 %4647  ;;  %3041 = vmatpush.msra.mxu2 %v2908_v39 }
 0x349   : > { %v7849_v51 = vunpack.i.h.bf16 %v6759_v62  ;;  %v4649_v27 = vunpack.i.l.bf16 %v6759_v62 }
 0x34b   : > { %v2598_v63 = vsel %vm7852_vm5, %v4649_v27, %v7849_v51 }
 0x34c   : > { %3023 = vmatpush.msra.mxu1 %v2598_v63  ;;  %v6766_v4 = vpop.permute.xlu1 %4652 }
 0x34d   : > { %v7850_v58 = vunpack.i.h.bf16 %v6766_v4  ;;  %v4654_v31 = vunpack.i.l.bf16 %v6766_v4 }
 0x34f   : > { %v2890_v15 = vsel %vm754_vm11, %v4654_v31, %v7850_v58 }
 0x350   : > { %v6773_v39 = vpop.permute.xlu0 %2942  ;;  %3042 = vmatpush.msra.mxu2 %v2890_v15 }
 0x354   : > { %v6775_v23 = vpop.permute.xlu1 %2578 }
 0x358   : > { %v6777_v14 = vpop.permute.xlu0 %4662 }
 0x359   : > { %v4665_v27 = vunpack.i.h.bf16 %v6777_v14  ;;  %v4664_v63 = vunpack.i.l.bf16 %v6777_v14 }
 0x35b   : > { %v2872_v51 = vsel %vm7863_vm9, %v4664_v63, %v4665_v27 }
 0x35c   : > { %3043 = vmatpush.msra.mxu2 %v2872_v51  ;;  %v6784_v55 = vpop.permute.xlu1 %4667  ;;  %v6793_v51 = vld [vmem:[%s8228_s23] sm:$0xff] }
 0x35d   : > { %v2208_v31 = vpop.xlane.xlu2 %2207  ;;  %v4669_v28 = vunpack.i.l.bf16 %v6784_v55 }
 0x35e   : > { %v2213_v58 = vmul.f32 0.00390625, %v2208_v31 }
 0x360   : > { %v6786_v15 = vpop.permute.xlu0 %2560  ;;  %2241 = vmatpush.msra.mxu3 %v2213_v58 }
 0x362   : > { %2242 = vmatpush.msra.mxu3 %v2212_v12  ;;  %v2731_v12 = vmul.f32 %v6671_v33, %v8068_v54 }
 0x364   : > { %v6788_v17 = vpop.permute.xlu1 %2906  ;;  %2243 = vmatpush.msra.mxu3 %v2211_v6 }
 0x365   : > { %v2597_v46 = vpop.permute.xlu2 %2596 }
 0x366   : > { %2244 = vmatpush.msra.mxu3 %v2210_v20  ;;  %v4670_v20 = vunpack.i.h.bf16 %v6784_v55 }
 0x368   : > { %2245 = vmatpush.msra.mxu3 %v2209_v19  ;;  %v6795_v45 = vpop.permute.xlu0 %4677 }
 0x369   : > { %4192 = vmatmul.msk.f32.vlgmr.msra.gmra.mxu3 %vm2214_vm0, %v6793_v51  ;;  %v4679_v58 = vunpack.i.l.bf16 %v6795_v45 }
 0x36a   : > { %3052 = vmatpush.msrb.mxu3 %v6533_v56  ;;  %v6811_v56 = vld [vmem:[%s8228_s23 + $0x8] sm:$0xff] }
 0x36c   : > { %3053 = vmatpush.msrb.mxu3 %v6541_v59  ;;  %v6801_v21 = vpop.permute.xlu1 %4682  ;;  %v4680_v59 = vunpack.i.h.bf16 %v6795_v45 }
 0x36d   : > { %v4658_v6 = vpop.permute.xlu2 %4657 }
 0x36e   : > { %3054 = vmatpush.msrb.mxu3 %v6550_v43  ;;  %v4660_v19 = vunpack.i.h.bf16 %v4658_v6  ;;  %v4659_v30 = vunpack.i.l.bf16 %v4658_v6  ;;  %v2562_v43 = vsel %vm8230_vm6, %v4669_v28, %v4670_v20  ;;  %v2544_v63 = vsel %vm7862_vm1, %v4679_v58, %v4680_v59 }
 0x36f   : > { %v4684_v58 = vunpack.i.l.bf16 %v6801_v21  ;;  %vm8235_vm6 = vcmask 908288  }
 0x370   : > { %3055 = vmatpush.msrb.mxu3 %v2731_v12  ;;  %v2580_v33 = vsel %vm8229_vm3, %v4659_v30, %v4660_v19  ;;  %v6820_v55 = vpop.permute.xlu0 %2888  ;;  %v6828_v12 = vld [vmem:[%s8228_s23 + $0x10] sm:$0xff] }
 0x371   : > { %4193 = vmatmul.msk.f32.gmra.mxu3 %vm2214_vm0, %v6811_v56  ;;  %3024 = vmatpush.msra.mxu1 %v2580_v33 }
 0x372   : > { %3056 = vmatpush.msrb.mxu3 %v6553_v42  ;;  %v8231_v42 = vunpack.i.h.bf16 %v6579_v40  ;;  %v6848_v40 = vld [vmem:[%s8228_s23 + $0x18] sm:$0xff] }
 0x373   : > { %3025 = vmatpush.msra.mxu1 %v2562_v43  ;;  %v8233_v43 = vunpack.i.h.bf16 %v6759_v62 }
 0x374   : > { %3057 = vmatpush.msrb.mxu3 %v6558_v13  ;;  %v2525_v31 = vpop.permute.xlu1 %2524  ;;  %v2635_v13 = vsel %vm7864_vm10, %v8231_v42, %v6732_v16  ;;  %v2581_v42 = vsel %vm8229_vm3, %v4660_v19, %v6775_v23  ;;  %vm8239_vm3 = vcmask 924672  }
 0x375   : > { %v2925_v45 = vpop.permute.xlu2 %2924  ;;  %3026 = vmatpush.msra.mxu1 %v2544_v63 }
 0x376   : > { %3058 = vmatpush.msrb.mxu3 %v6563_v50  ;;  %v8232_v50 = vunpack.i.h.bf16 %v6745_v35  ;;  %v2599_v35 = vsel %vm7852_vm5, %v8233_v43, %v2597_v46  ;;  %vm8236_vm5 = vcmask 261120  }
 0x377   : > { %v2563_v46 = vsel %vm8236_vm5, %v4670_v20, %v6786_v15  ;;  %vm8240_vm5 = vcmask 277504  }
 0x378   : > { %3059 = vmatpush.msrb.mxu3 %v6566_v7  ;;  %v6838_v6 = vpop.permute.xlu0 %4692  ;;  %v2617_v28 = vsel %vm7853_vm8, %v8232_v50, %v2615_v52  ;;  %v4685_v7 = vunpack.i.h.bf16 %v6801_v21  ;;  %vm8237_vm8 = vcmask 916480  }
 0x379   : > { %4194 = vmatmul.msk.f32.gmra.mxu3 %vm2214_vm0, %v6828_v12  ;;  %v4695_v52 = vunpack.i.h.bf16 %v6838_v6  ;;  %v4694_v63 = vunpack.i.l.bf16 %v6838_v6 }
 0x37a   : > { %3060 = vmatpush.msrb.mxu3 %v6574_v61  ;;  %v2836_v62 = vsel %vm8235_vm6, %v4684_v58, %v4685_v7  ;;  %v6872_v58 = vld [vmem:[%s8228_s23 + $0x20] sm:$0xff]  ;;  %vm8243_vm6 = vcmask 769024   ;;  %s8261_s23 = sld [smem:[#allocation11_spill]] }
 0x37b   : > { %v2818_v6 = vsel %vm8237_vm8, %v4694_v63, %v4695_v52  ;;  %vm8241_vm8 = vmmov %vm8240_vm5 }
 0x37c   : > { %3061 = vmatpush.msrb.mxu3 %v2635_v13  ;;  %v4698_v16 = vpop.permute.xlu1 %4697 }
 0x37d   : > { %v4673_v30 = vpop.permute.xlu2 %4672  ;;  %v4700_v13 = vunpack.i.h.bf16 %v4698_v16  ;;  %v4699_v50 = vunpack.i.l.bf16 %v4698_v16  ;;  %v2950_v16 = vld [vmem:[%s8238_s2] sm:$0xff] }
 0x37e   : > { %3062 = vmatpush.msrb.mxu3 %v2617_v28  ;;  %v4675_v33 = vunpack.i.h.bf16 %v4673_v30  ;;  %v4674_v61 = vunpack.i.l.bf16 %v4673_v30  ;;  %v2951_v30 = vld [vmem:[%s8238_s2 + $0x8] sm:$0xff]  ;;  %s8253_s2 = sld [smem:[#allocation115_spill]] }
 0x37f   : > { %v2800_v23 = vsel %vm8239_vm3, %v4699_v50, %v4700_v13  ;;  %vm8245_vm3 = vcmask 777216  }
 0x380   : > { %3063 = vmatpush.msrb.mxu3 %v2599_v35  ;;  %v2854_v21 = vsel %vm8234_vm2, %v4674_v61, %v4675_v33  ;;  %vm7861_vm2 = vcmask 588800   ;;  %v8242_v35 = vunpack.i.h.bf16 %v6568_v49  ;;  %v2853_v50 = vpop.permute.xlu0 %2852  ;;  %v8247_v49 = vunpack.i.h.bf16 %v6766_v4  ;;  %s7167_s15 = sshll.u32 %s8261_s23, 4  ;;  %s8271_s23 = sld [smem:[#allocation117_spill]] }
 0x381   : > { %4195 = vmatmul.msk.f32.gmra.mxu3 %vm2214_vm0, %v6848_v40  ;;  %3044 = vmatpush.msra.mxu2 %v2854_v21  ;;  %v8244_v21 = vunpack.i.h.bf16 %v6735_v9  ;;  %s618_s26 = scalar_lea.vmem %s8270_s29, %s7167_s15 }
 0x382   : > { %3064 = vmatpush.msrb.mxu3 %v2581_v42  ;;  %v2945_v63 = vsel %vm8243_vm6, %v8242_v35, %v6773_v39  ;;  %v2891_v39 = vsel %vm754_vm11, %v8247_v49, %v6820_v55  ;;  %vm8250_vm6 = vcmask 916480  }
 0x383   : > { %3045 = vmatpush.msra.mxu2 %v2836_v62  ;;  %v2927_v42 = vsel %vm8245_vm3, %v8244_v21, %v2925_v45  ;;  %vm8251_vm3 = vcmask 924672  }
 0x384   : > { %3065 = vmatpush.msrb.mxu3 %v2563_v46 }
 0x385   : > { %v2543_v28 = vpop.permute.xlu2 %2542  ;;  %3046 = vmatpush.msra.mxu2 %v2818_v6  ;;  %v2817_v6 = vpop.permute.xlu1 %2816 }
 0x386   : > { %v2545_v19 = vsel %vm7862_vm1, %v4680_v59, %v2543_v28 }
 0x387   : > { %3047 = vmatpush.msra.mxu2 %v2800_v23  ;;  %3066 = vmatpush.msrb.mxu3 %v2545_v19  ;;  %v2819_v23 = vsel %vm8250_vm6, %v4695_v52, %v2817_v6 }
 0x388   : > { %4202 = vmatmul.msk.f32.vlgmr.msra.gmra.mxu2 %vm7861_vm2, %v2951_v30 }
 0x389   : > { %4196 = vmatmul.msk.f32.gmra.mxu3 %vm2214_vm0, %v6872_v58 }
 0x38d   : > { %v4688_v15 = vpop.permute.xlu2 %4687 }
 0x38e   : > { %v4690_v20 = vunpack.i.h.bf16 %v4688_v15  ;;  %v4689_v61 = vunpack.i.l.bf16 %v4688_v15 }
 0x390   : > { %v2526_v59 = vsel %vm8240_vm5, %v4689_v61, %v4690_v20  ;;  %v2527_v43 = vsel %vm8241_vm8, %v4690_v20, %v2525_v31  ;;  %v8246_v31 = vunpack.i.h.bf16 %v6752_v0  ;;  %vm8248_vm5 = vcmask 900096  }
 0x391   : > { %3027 = vmatpush.msra.mxu1 %v2526_v59  ;;  %3067 = vmatpush.msrb.mxu3 %v2527_v43  ;;  %v2855_v45 = vsel %vm8248_vm5, %v4675_v33, %v2853_v50  ;;  %vm8249_vm8 = vcmask 908288   ;;  %vm7860_vm5 = vcmask 64512  }
 0x392   : > { %3028 = vmatmul.f32.vlgmr.msra.gmra.mxu1 %v2950_v16  ;;  %3068 = vmatmul.f32.vlgmr.msrb.gmra.mxu3 %v2950_v16  ;;  %v2909_v46 = vsel %vm722_vm14, %v8246_v31, %v6788_v17  ;;  %v2799_v17 = vpop.permute.xlu0 %2798 }
 0x393   : > { %3079 = vmatpush.msrb.mxu1 %v2945_v63  ;;  %v2801_v4 = vsel %vm8251_vm3, %v4700_v13, %v2799_v17 }
 0x395   : > { %3080 = vmatpush.msrb.mxu1 %v2927_v42  ;;  %v2871_v62 = vpop.permute.xlu2 %2870 }
 0x396   : > { %v2873_v9 = vsel %vm7863_vm9, %v4665_v27, %v2871_v62 }
 0x397   : > { %3081 = vmatpush.msrb.mxu1 %v2909_v46 }
 0x399   : > { %3082 = vmatpush.msrb.mxu1 %v2891_v39 }
 0x39b   : > { %3083 = vmatpush.msrb.mxu1 %v2873_v9 }
 0x39d   : > { %3084 = vmatpush.msrb.mxu1 %v2855_v45  ;;  %v2835_v28 = vpop.permute.xlu2 %2834 }
 0x39e   : > { %v2837_v0 = vsel %vm8249_vm8, %v4685_v7, %v2835_v28 }
 0x39f   : > { %3085 = vmatpush.msrb.mxu1 %v2837_v0 }
 0x3a1   : > { %3086 = vmatpush.msrb.mxu1 %v2819_v23 }
 0x3a3   : > { %3087 = vmatpush.msrb.mxu1 %v2801_v4 }
 0x3a4   : > { %4203 = vmatmul.msk.f32.vlgmr.msrb.gmra.mxu1 %vm7861_vm2, %v2951_v30 }
 0x3a5   : > { %v3006_v15 = vpop.permute.xlu2 %3005 }
 0x3ec   : > { %v2247_v14 = vpop.f32.mrf.mxu3 }
 0x3f4   : > { %v2250_v27 = vpop.f32.mrf.mxu3 }
 0x3fc   : > { %v2253_v55 = vpop.f32.mrf.mxu3 }
 0x404   : > { %v2256_v19 = vpop.f32.mrf.mxu3 }
 0x405   : > { %2279 = vperm.xlu2 %4578, %v2256_v19   ;;  %v2185_v19 = vld [vmem:[%s8254_s18 + $0x8] sm:$0xff] }
 0x40b   : > { %v3049_v61 = vpop.f32.mrf.mxu2 }
 0x40c   : > { %v2259_v33 = vpop.f32.mrf.mxu3 }
 0x40d   : > { %2269 = vperm.xlu2 %4578, %v2250_v27   ;;  %2284 = vperm.xlu0 %4579, %v2259_v33   ;;  %v2187_v33 = vld [vmem:[%s8254_s18 + $0x18] sm:$0xff] }
 0x40f   : > { %v3029_v7 = vpop.f32.mrf.mxu1 }
 0x410   : > { %v3030_v52 = vadd.f32 %v3029_v7, %v3006_v15  ;;  %v2186_v7 = vld [vmem:[%s8254_s18 + $0x10] sm:$0xff] }
 0x412   : > { %v6905_v59 = vadd.f32 %v3049_v61, %v3030_v52 }
 0x415   : > { %2274 = vperm.xlu0 %4579, %v2253_v55   ;;  %v3069_v20 = vpop.f32.mrf.mxu3 }
 0x416   : > { %v3070_v16 = vadd.f32 %v3069_v20, %v3006_v15  ;;  %v3093_v15 = vld [vmem:[%s8255_s27] sm:$0xff]  ;;  %s8256_s27 = sld [smem:[#allocation113_spill]] }
 0x41d   : > { %2264 = vperm.xlu0 %4579, %v2247_v14  }
 0x421   : > { %v3089_v13 = vpop.f32.mrf.mxu1 }
 0x422   : > { %v6907_v30 = vadd.f32 %v3089_v13, %v3070_v16 }
 0x424   : > { %v3095_v43 = vadd.f32 %v6907_v30, %v6905_v59 }
 0x426   : > { %3096 = vadd.xlane.f32.xlu1 %v3095_v43 }
 0x45f   : > { %v2280_v35 = vpop.permute.xlu2 %2279 }
 0x460   : > { %v6974_v16 = vsub.f32 %v6615_v60, %v2280_v35  ;;  %v6977_v13 = vsub.f32 %v6617_v24, %v2280_v35  ;;  %v2182_v60 = vld [vmem:[%s8252_s11 + $0x18] sm:$0xff]  ;;  %v2181_v24 = vld [vmem:[%s8252_s11 + $0x10] sm:$0xff]  ;;  %v3092_v35 = vld [vmem:[%s8256_s27] sm:$0xff] }
 0x462   : > { %v2303_v43 = vmul.f32 %v6974_v16, %v6974_v16 }
 0x47f   : > { %v2285_v63 = vpop.permute.xlu0 %2284 }
 0x480   : > { %v6912_v21 = vsub.f32 %v6587_v37, %v2285_v63  ;;  %v6915_v42 = vsub.f32 %v6660_v34, %v2285_v63  ;;  %v2270_v37 = vpop.permute.xlu2 %2269  ;;  %v2304_v63 = vmul.f32 %v6977_v13, %v6977_v13 }
 0x481   : > { %v6932_v45 = vsub.f32 %v6600_v32, %v2270_v37  ;;  %v6935_v6 = vsub.f32 %v6602_v18, %v2270_v37  ;;  %v2180_v18 = vld [vmem:[%s8252_s11 + $0x8] sm:$0xff] }
 0x482   : > { %v2305_v50 = vmul.f32 %v6912_v21, %v6912_v21  ;;  %v2306_v62 = vmul.f32 %v6915_v42, %v6915_v42 }
 0x484   : > { %v2319_v31 = vadd.f32 %v2306_v62, %v2305_v50  ;;  %v2316_v50 = vadd.f32 %v2304_v63, %v2303_v43  ;;  %v2184_v62 = vld [vmem:[%s8254_s18] sm:$0xff] }
 0x486   : > { %2320 = vadd.xlane.f32.xlu0 %v2319_v31 }
 0x487   : > { %v2275_v46 = vpop.permute.xlu0 %2274 }
 0x488   : > { %v6922_v49 = vsub.f32 %v6609_v41, %v2275_v46  ;;  %v6925_v39 = vsub.f32 %v6611_v47, %v2275_v46  ;;  %v2299_v41 = vmul.f32 %v6932_v45, %v6932_v45  ;;  %v2300_v47 = vmul.f32 %v6935_v6, %v6935_v6 }
 0x48a   : > { %v2301_v34 = vmul.f32 %v6922_v49, %v6922_v49  ;;  %v2302_v9 = vmul.f32 %v6925_v39, %v6925_v39  ;;  %v2310_v32 = vadd.f32 %v2300_v47, %v2299_v41 }
 0x48c   : > { %v2313_v28 = vadd.f32 %v2302_v9, %v2301_v34 }
 0x48e   : > { %2314 = vadd.xlane.f32.xlu1 %v2313_v28  ;;  %v2183_v28 = vld [vmem:[%s8252_s11 + $0x20] sm:$0xff] }
 0x48f   : > { %v2265_v0 = vpop.permute.xlu0 %2264 }
 0x490   : > { %v6942_v17 = vsub.f32 %v6592_v1, %v2265_v0  ;;  %v6945_v23 = vsub.f32 %v6594_v38, %v2265_v0  ;;  %v6957_v1 = vld [vmem:[%s8253_s2] sm:$0xff]  ;;  %v8258_v0 = vld [vmem:[#allocation65_spill] sm:$0xff]  ;;  %s628_s2 = scalar_lea.vmem %s8271_s23, %s7167_s15 }
 0x492   : > { %v2297_v4 = vmul.f32 %v6942_v17, %v6942_v17  ;;  %v2298_v14 = vmul.f32 %v6945_v23, %v6945_v23 }
 0x494   : > { %v2307_v38 = vadd.f32 %v2298_v14, %v2297_v4  ;;  %v8259_v4 = vld [vmem:[#allocation70_spill] sm:$0xff] }
 0x495   : > { %v3471_v14 = vmul.f32 0.0, %v8259_v4 }
 0x496   : > { %2311 = vadd.xlane.f32.xlu1 %v2310_v32  ;;  %v3489_v32 = vmul.f32 0.0, %v8258_v0 }
 0x499   : > { %v3097_v27 = vpop.xlane.xlu1 %3096 }
 0x49a   : > { %v3098_v55 = vmul.f32 0.00390625, %v3097_v27  ;;  %2451 = vperm.xlu0 %4579, %v2180_v18  }
 0x49c   : > { %3118 = vmatpush.msra.mxu3 %v3098_v55 }
 0x49d   : > { %4204 = vmatmul.msk.f32.vlgmr.msra.gmra.mxu3 %vm7860_vm5, %v6957_v1 }
 0x49e   : > { %2308 = vadd.xlane.f32.xlu1 %v2307_v38 }
 0x4a2   : > { %2486 = vperm.xlu0 %4579, %v2185_v19  }
 0x4aa   : > { %2496 = vperm.xlu0 %4579, %v2187_v33  }
 0x4b2   : > { %2491 = vperm.xlu0 %4579, %v2186_v7  }
 0x4ba   : > { %3182 = vperm.xlu0 %4579, %v3093_v15  }
 0x4f9   : > { %v2321_v20 = vpop.xlane.xlu0 %2320 }
 0x4fa   : > { %v2326_v52 = vmul.f32 0.00390625, %v2321_v20 }
 0x4fc   : > { %2338 = vmatpush.msra.mxu0 %v2326_v52 }
 0x501   : > { %v2315_v18 = vpop.xlane.xlu1 %2314 }
 0x502   : > { %v2324_v19 = vmul.f32 0.00390625, %v2315_v18 }
 0x509   : > { %v2312_v27 = vpop.xlane.xlu1 %2311 }
 0x50a   : > { %v2323_v7 = vmul.f32 0.00390625, %v2312_v27 }
 0x511   : > { %v2309_v33 = vpop.xlane.xlu1 %2308 }
 0x512   : > { %v2322_v15 = vmul.f32 0.00390625, %v2309_v33 }
 0x520   : > { %v3120_v61 = vpop.f32.mrf.mxu3 }
 0x521   : > { %3125 = vperm.xlu2 %4578, %v3120_v61  }
 0x54a   : > { %2317 = vadd.xlane.f32.xlu2 %v2316_v50 }
 0x562   : > { %2481 = vperm.xlu2 %4578, %v2184_v62  }
 0x56a   : > { %2461 = vperm.xlu2 %4578, %v2182_v60  }
 0x572   : > { %2456 = vperm.xlu2 %4578, %v2181_v24  }
 0x57a   : > { %3175 = vperm.xlu2 %4578, %v3092_v35  }
 0x57b   : > { %v3126_v31 = vpop.permute.xlu2 %3125 }
 0x57c   : > { %v6996_v46 = vsub.f32 %v6905_v59, %v3126_v31  ;;  %v6999_v37 = vsub.f32 %v6907_v30, %v3126_v31  ;;  %v2179_v59 = vld [vmem:[%s8252_s11] sm:$0xff]  ;;  %v8257_v30 = vld [vmem:[#allocation57_spill] sm:$0xff] }
 0x57d   : > { %v3507_v47 = vmul.f32 0.0, %v8257_v30 }
 0x57e   : > { %v3130_v34 = vmul.f32 %v6996_v46, %v6996_v46  ;;  %v3131_v9 = vmul.f32 %v6999_v37, %v6999_v37 }
 0x580   : > { %v3132_v41 = vadd.f32 %v3131_v9, %v3130_v34 }
 0x582   : > { %2466 = vperm.xlu2 %4578, %v2183_v28   ;;  %3133 = vadd.xlane.f32.xlu1 %v3132_v41 }
 0x59b   : > { %2446 = vperm.xlu1 %4580, %v2179_v59  }
 0x5a3   : > { %3513 = vrot.lane.b32.xlu1 %v3507_v47, %s7953_s17 }
 0x5ab   : > { %3495 = vrot.lane.b32.xlu1 %v3489_v32, %s7966_s25  ;;  %v2188_v32 = vld [vmem:[%s8254_s18 + $0x20] sm:$0xff] }
 0x5b3   : > { %3477 = vrot.lane.b32.xlu1 %v3471_v14, %s7973_s13 }
 0x5bd   : > { %v2318_v55 = vpop.xlane.xlu2 %2317 }
 0x5be   : > { %v2325_v38 = vmul.f32 0.00390625, %v2318_v55 }
 0x5c0   : > { %2339 = vmatpush.msra.mxu0 %v2325_v38 }
 0x5c2   : > { %2340 = vmatpush.msra.mxu0 %v2324_v19 }
 0x5c4   : > { %2341 = vmatpush.msra.mxu0 %v2323_v7 }
 0x5c6   : > { %2342 = vmatpush.msra.mxu0 %v2322_v15  ;;  %v8260_v15 = vld [vmem:[#allocation48_spill] sm:$0xff] }
 0x5c7   : > { %4197 = vmatmul.msk.f32.vlgmr.msra.gmra.mxu0 %vm2214_vm0, %v6793_v51 }
 0x5cf   : > { %4198 = vmatmul.msk.f32.gmra.mxu0 %vm2214_vm0, %v6811_v56 }
 0x5d7   : > { %4199 = vmatmul.msk.f32.gmra.mxu0 %vm2214_vm0, %v6828_v12 }
 0x5df   : > { %4200 = vmatmul.msk.f32.gmra.mxu0 %vm2214_vm0, %v6848_v40 }
 0x5e7   : > { %4201 = vmatmul.msk.f32.gmra.mxu0 %vm2214_vm0, %v6872_v58 }
 0x5f5   : > { %v3134_v20 = vpop.xlane.xlu1 %3133 }
 0x5f6   : > { %v3135_v52 = vmul.f32 0.00390625, %v3134_v20  ;;  %v3525_v20 = vmul.f32 0.0, %v8260_v15 }
 0x5f8   : > { %3151 = vmatpush.msrb.mxu2 %v3135_v52 }
 0x5f9   : > { %4205 = vmatmul.msk.f32.vlgmr.msrb.gmra.mxu2 %vm7860_vm5, %v6957_v1 }
 0x644   : > { %v2344_v61 = vpop.f32.mrf.mxu0 }
 0x645   : > { %v2345_v51 = vadd.f32 1e-05, %v2344_v61 }
 0x647   : > { %4821 = vrsqrt.f32 %v2345_v51  ;;  %vm2365_vm8 = vweird.f32 %v2345_v51 }
 0x64c   : > { %v2347_v43 = vpop.f32.mrf.mxu0 }
 0x64d   : > { %v4822_v56 = vpop.eup %4821  ;;  %v2348_v63 = vadd.f32 1e-05, %v2347_v43 }
 0x64e   : > { %v2360_v50 = vmul.f32 %v4822_v56, %v2345_v51  ;;  %vm2366_vm6 = vweird.f32 %v4822_v56  ;;  %v3747_v51 = vmul.f32 0.0, %v8189_v29 }
 0x64f   : > { %4823 = vrsqrt.f32 %v2348_v63  ;;  %vm2367_vm0 = vmor %vm2365_vm8, %vm2366_vm6  ;;  %vm2375_vm3 = vweird.f32 %v2348_v63 }
 0x650   : > { %v2361_v12 = vmul.f32 %v4822_v56, %v2360_v50 }
 0x652   : > { %v2362_v62 = vmul.f32 0.5, %v2361_v12 }
 0x654   : > { %v2363_v40 = vsub.f32 1.5, %v2362_v62  ;;  %v2350_v58 = vpop.f32.mrf.mxu0  ;;  %v3435_v62 = vmul.f32 0.0, %v8089_v26  ;;  %v3693_v26 = vmul.f32 0.0, %v8202_v2  ;;  %v3363_v2 = vmul.f32 0.0, %v8193_v48  ;;  %v2482_v48 = vpop.permute.xlu2 %2481 }
 0x655   : > { %v4824_v60 = vpop.eup %4823  ;;  %v2351_v24 = vadd.f32 1e-05, %v2350_v58 }
 0x656   : > { %v2370_v35 = vmul.f32 %v4824_v60, %v2348_v63  ;;  %v2364_v31 = vmul.f32 %v4822_v56, %v2363_v40  ;;  %vm2376_vm5 = vweird.f32 %v4824_v60 }
 0x657   : > { %4825 = vrsqrt.f32 %v2351_v24  ;;  %vm2377_vm2 = vmor %vm2375_vm3, %vm2376_vm5  ;;  %vm2385_vm8 = vweird.f32 %v2351_v24 }
 0x658   : > { %v2371_v1 = vmul.f32 %v4824_v60, %v2370_v35  ;;  %v2368_v34 = vsel %vm2367_vm0, %v4822_v56, %v2364_v31  ;;  %v3711_v31 = vmul.f32 0.0, %v8196_v53 }
 0x659   : > { %2411 = vperm.xlu0 %4579, %v2368_v34  }
 0x65a   : > { %v2372_v9 = vmul.f32 0.5, %v2371_v1 }
 0x65c   : > { %v2373_v28 = vsub.f32 1.5, %v2372_v9  ;;  %v2353_v41 = vpop.f32.mrf.mxu0  ;;  %v3381_v9 = vmul.f32 0.0, %v8208_v22  ;;  %v3345_v22 = vmul.f32 0.0, %v8197_v5 }
 0x65d   : > { %v4826_v59 = vpop.eup %4825  ;;  %v2354_v30 = vadd.f32 1e-05, %v2353_v41 }
 0x65e   : > { %v2380_v47 = vmul.f32 %v4826_v59, %v2351_v24  ;;  %v2374_v0 = vmul.f32 %v4824_v60, %v2373_v28  ;;  %vm2386_vm6 = vweird.f32 %v4826_v59  ;;  %v3639_v28 = vmul.f32 0.0, %v8225_v44 }
 0x65f   : > { %4827 = vrsqrt.f32 %v2354_v30  ;;  %vm2387_vm0 = vmor %vm2385_vm8, %vm2386_vm6 }
 0x660   : > { %v2381_v18 = vmul.f32 %v4826_v59, %v2380_v47  ;;  %v2378_v4 = vsel %vm2377_vm2, %v4824_v60, %v2374_v0  ;;  %vm2395_vm2 = vweird.f32 %v2354_v30  ;;  %v3417_v60 = vmul.f32 0.0, %v8181_v11 }
 0x661   : > { %2416 = vperm.xlu2 %4578, %v2378_v4   ;;  %2501 = vperm.xlu0 %4579, %v2188_v32   ;;  %v3453_v32 = vmul.f32 0.0, %v5453_v36  ;;  %v3729_v4 = vmul.f32 0.0, %v8217_v3  ;;  %v2447_v36 = vpop.permute.xlu1 %2446 }
 0x662   : > { %v2382_v14 = vmul.f32 0.5, %v2381_v18  ;;  %v2452_v18 = vpop.permute.xlu0 %2451 }
 0x664   : > { %v2383_v27 = vsub.f32 1.5, %v2382_v14  ;;  %v2356_v55 = vpop.f32.mrf.mxu0  ;;  %v2462_v14 = vpop.permute.xlu2 %2461 }
 0x665   : > { %v4828_v38 = vpop.eup %4827  ;;  %v2357_v19 = vadd.f32 1e-05, %v2356_v55  ;;  %v3399_v55 = vmul.f32 0.0, %v8185_v8 }
 0x666   : > { %v2390_v33 = vmul.f32 %v4828_v38, %v2354_v30  ;;  %v2384_v7 = vmul.f32 %v4826_v59, %v2383_v27  ;;  %vm2396_vm5 = vweird.f32 %v4828_v38 }
 0x667   : > { %4829 = vrsqrt.f32 %v2357_v19  ;;  %vm2397_vm3 = vmor %vm2395_vm2, %vm2396_vm5  ;;  %vm2405_vm8 = vweird.f32 %v2357_v19 }
 0x668   : > { %v2391_v52 = vmul.f32 %v4828_v38, %v2390_v33  ;;  %v2388_v61 = vsel %vm2387_vm0, %v4826_v59, %v2384_v7  ;;  %v3657_v33 = vmul.f32 0.0, %v8214_v25 }
 0x669   : > { %2421 = vperm.xlu1 %4580, %v2388_v61   ;;  %3531 = vrot.lane.b32.xlu2 %v3525_v20, %s7942_s0  ;;  %v7068_v15 = vpop.permute.xlu1 %3513 }
 0x66a   : > { %v2392_v43 = vmul.f32 0.5, %v2391_v52  ;;  %3755 = vrot.lane.b32.xlu0 %v3747_v51, %s7981_s14  ;;  %v2487_v27 = vpop.permute.xlu0 %2486 }
 0x66c   : > { %v2393_v56 = vsub.f32 1.5, %v2392_v43  ;;  %v7058_v5 = vpop.permute.xlu2 %2456 }
 0x66d   : > { %v4830_v63 = vpop.eup %4829 }
 0x66e   : > { %v2400_v50 = vmul.f32 %v4830_v63, %v2357_v19  ;;  %v2394_v12 = vmul.f32 %v4828_v38, %v2393_v56  ;;  %vm2406_vm6 = vweird.f32 %v4830_v63 }
 0x66f   : > { %vm2407_vm0 = vmor %vm2405_vm8, %vm2406_vm6 }
 0x670   : > { %v2401_v40 = vmul.f32 %v4830_v63, %v2400_v50  ;;  %v2398_v58 = vsel %vm2397_vm3, %v4828_v38, %v2394_v12  ;;  %v3675_v38 = vmul.f32 0.0, %v8224_v57 }
 0x671   : > { %2426 = vperm.xlu1 %4580, %v2398_v58   ;;  %3441 = vrot.lane.b32.xlu2 %v3435_v62, %s7906_s28  ;;  %v7074_v52 = vpop.permute.xlu1 %3495 }
 0x672   : > { %v2402_v29 = vmul.f32 0.5, %v2401_v40  ;;  %3423 = vrot.lane.b32.xlu0 %v3417_v60, %s7918_s22  ;;  %v2497_v19 = vpop.permute.xlu0 %2496 }
 0x674   : > { %v2403_v24 = vsub.f32 1.5, %v2402_v29  ;;  %v7063_v7 = vpop.permute.xlu2 %3175 }
 0x676   : > { %v2404_v35 = vmul.f32 %v4830_v63, %v2403_v24 }
 0x678   : > { %v2408_v1 = vsel %vm2407_vm0, %v4830_v63, %v2404_v35 }
 0x679   : > { %2431 = vperm.xlu1 %4580, %v2408_v1   ;;  %3719 = vrot.lane.b32.xlu2 %v3711_v31, %s7984_s10  ;;  %v7080_v12 = vpop.permute.xlu1 %3477 }
 0x67a   : > { %3701 = vrot.lane.b32.xlu0 %v3693_v26, %s7986_s9  ;;  %v7066_v3 = vpop.permute.xlu0 %2491 }
 0x67c   : > { %v3153_v11 = vpop.f32.mrf.mxu2  ;;  %v7070_v8 = vpop.permute.xlu2 %2466 }
 0x67d   : > { %v3154_v34 = vadd.f32 1e-05, %v3153_v11 }
 0x67f   : > { %4831 = vrsqrt.f32 %v3154_v34  ;;  %vm3162_vm5 = vweird.f32 %v3154_v34 }
 0x681   : > { %3387 = vrot.lane.b32.xlu2 %v3381_v9, %s7937_s19 }
 0x682   : > { %3647 = vrot.lane.b32.xlu0 %v3639_v28, %s8201_s4  ;;  %v7072_v20 = vpop.permute.xlu0 %3182 }
 0x685   : > { %v4832_v53 = vpop.eup %4831 }
 0x686   : > { %v3157_v41 = vmul.f32 %v4832_v53, %v3154_v34  ;;  %vm3163_vm2 = vweird.f32 %v4832_v53 }
 0x687   : > { %vm3164_vm3 = vmor %vm3162_vm5, %vm3163_vm2 }
 0x688   : > { %v3158_v59 = vmul.f32 %v4832_v53, %v3157_v41 }
 0x689   : > { %3369 = vrot.lane.b32.xlu2 %v3363_v2, %s7948_s24 }
 0x68a   : > { %v3159_v30 = vmul.f32 0.5, %v3158_v59 }
 0x68c   : > { %v3160_v47 = vsub.f32 1.5, %v3159_v30 }
 0x68e   : > { %v3161_v0 = vmul.f32 %v4832_v53, %v3160_v47 }
 0x690   : > { %v3165_v44 = vsel %vm3164_vm3, %v4832_v53, %v3161_v0 }
 0x691   : > { %3351 = vrot.lane.b32.xlu2 %v3345_v22, %s7960_s16  ;;  %3168 = vperm.xlu1 %4580, %v3165_v44  }
 0x699   : > { %3459 = vrot.lane.b32.xlu1 %v3453_v32, %s7976_s8 }
 0x6a1   : > { %3737 = vrot.lane.b32.xlu1 %v3729_v4, %s7983_s7 }
 0x6a9   : > { %3405 = vrot.lane.b32.xlu1 %v3399_v55, %s7930_s1 }
 0x6b1   : > { %3683 = vrot.lane.b32.xlu1 %v3675_v38, %s7913_s21 }
 0x6b9   : > { %3665 = vrot.lane.b32.xlu1 %v3657_v33, %s8215_s30 }
 0x6bb   : > { %v2417_v57 = vpop.permute.xlu2 %2416 }
 0x6bc   : > { %v2436_v51 = vmul.f32 %v2417_v57, %v6932_v45  ;;  %v2437_v25 = vmul.f32 %v2417_v57, %v6935_v6 }
 0x6be   : > { %v2471_v63 = vmul.f32 %v2452_v18, %v2436_v51  ;;  %v2472_v50 = vmul.f32 %v2452_v18, %v2437_v25 }
 0x6c0   : > { %v2506_v58 = vadd.f32 %v2487_v27, %v2471_v63  ;;  %v2507_v60 = vadd.f32 %v2487_v27, %v2472_v50 }
 0x6c2   : > { %v4208_v35 = vmul.f32 -1.442695, %v2506_v58  ;;  %v4209_v31 = vmul.f32 -1.442695, %v2507_v60 }
 0x6c4   : > { %4833 = vpow2.f32 %v4208_v35 }
 0x6c5   : > { %4835 = vpow2.f32 %v4209_v31 }
 0x6ca   : > { %v4834_v6 = vpop.eup %4833 }
 0x6cb   : > { %v2412_v61 = vpop.permute.xlu0 %2411  ;;  %v7084_v53 = vadd.f32 1.0, %v4834_v6 }
 0x6cc   : > { %v2434_v43 = vmul.f32 %v2412_v61, %v6942_v17  ;;  %v2435_v56 = vmul.f32 %v2412_v61, %v6945_v23  ;;  %v4836_v23 = vpop.eup %4835 }
 0x6cd   : > { %v7086_v2 = vadd.f32 1.0, %v4836_v23  ;;  %v3246_v63 = vand.u32 2147483648, %v7084_v53  ;;  %vm3240_vm8 = vweird.f32 %v7084_v53  ;;  %v3244_v35 = vand.u32 2147483647, %v7084_v53 }
 0x6ce   : > { %v2469_v62 = vmul.f32 %v2447_v36, %v2434_v43  ;;  %v2470_v40 = vmul.f32 %v2447_v36, %v2435_v56 }
 0x6cf   : > { %vm3255_vm6 = vweird.f32 %v7086_v2 }
 0x6d0   : > { %v2504_v29 = vadd.f32 %v2482_v48, %v2469_v62  ;;  %v2505_v24 = vadd.f32 %v2482_v48, %v2470_v40 }
 0x6d2   : > { %v4206_v1 = vmul.f32 -1.442695, %v2504_v29  ;;  %v4207_v26 = vmul.f32 -1.442695, %v2505_v24  ;;  %v3247_v29 = vor.u32 1.1754944e-38, %v3246_v63  ;;  %v3261_v24 = vand.u32 2147483648, %v7086_v2 }
 0x6d4   : > { %4837 = vpow2.f32 %v4206_v1  ;;  %v3259_v1 = vand.u32 2147483647, %v7086_v2 }
 0x6d5   : > { %4839 = vpow2.f32 %v4207_v26 }
 0x6d6   : > { %4841 = vrcp.f32 %v7084_v53 }
 0x6d7   : > { %4843 = vrcp.f32 %v7086_v2 }
 0x6da   : > { %v4838_v34 = vpop.eup %4837 }
 0x6db   : > { %v2422_v45 = vpop.permute.xlu1 %2421  ;;  %v4840_v28 = vpop.eup %4839  ;;  %v7088_v30 = vadd.f32 1.0, %v4838_v34 }
 0x6dc   : > { %v7090_v0 = vadd.f32 1.0, %v4840_v28  ;;  %v7096_v44 = vpop.eup %4841  ;;  %v2438_v33 = vmul.f32 %v2422_v45, %v6922_v49  ;;  %v2439_v61 = vmul.f32 %v2422_v45, %v6925_v39 }
 0x6dd   : > { %4845 = vrcp.f32 %v7088_v30  ;;  %v7098_v32 = vpop.eup %4843  ;;  %v3236_v4 = vmul.f32 %v7096_v44, %v7084_v53  ;;  %vm3241_vm0 = vweird.f32 %v7096_v44  ;;  %v3208_v26 = vand.u32 2147483648, %v7088_v30 }
 0x6de   : > { %4847 = vrcp.f32 %v7090_v0  ;;  %v3251_v55 = vmul.f32 %v7098_v32, %v7086_v2  ;;  %v2473_v40 = vmul.f32 %v7058_v5, %v2438_v33  ;;  %v2474_v49 = vmul.f32 %v7058_v5, %v2439_v61  ;;  %vm7149_vm1 = vmor %vm3240_vm8, %vm3241_vm0 }
 0x6df   : > { %v3237_v36 = vsub.f32 1.0, %v3236_v4  ;;  %vm3256_vm5 = vweird.f32 %v7098_v32  ;;  %vm3202_vm9 = vweird.f32 %v7088_v30  ;;  %v3223_v28 = vand.u32 2147483648, %v7090_v0 }
 0x6e0   : > { %v3252_v25 = vsub.f32 1.0, %v3251_v55  ;;  %v2508_v5 = vadd.f32 %v7066_v3, %v2473_v40  ;;  %v2509_v6 = vadd.f32 %v7066_v3, %v2474_v49  ;;  %v3206_v3 = vand.u32 2147483647, %v7088_v30 }
 0x6e1   : > { %v3238_v62 = vmul.f32 %v7096_v44, %v3237_v36  ;;  %vm3217_vm8 = vweird.f32 %v7090_v0 }
 0x6e2   : > { %v3253_v39 = vmul.f32 %v7098_v32, %v3252_v25 }
 0x6e3   : > { %v2427_v17 = vpop.permute.xlu1 %2426  ;;  %v7100_v48 = vpop.eup %4845  ;;  %v3239_v31 = vadd.f32 %v7096_v44, %v3238_v62  ;;  %v649_v62 = vld [vmem:[%s618_s26 + $0x8] sm:$0xff] }
 0x6e4   : > { %v2440_v11 = vmul.f32 %v2427_v17, %v6974_v16  ;;  %v2441_v9 = vmul.f32 %v2427_v17, %v6977_v13  ;;  %v7102_v18 = vpop.eup %4847  ;;  %vm3203_vm2 = vweird.f32 %v7100_v48  ;;  %v3254_v23 = vadd.f32 %v7098_v32, %v3253_v39 }
 0x6e5   : > { %v3213_v38 = vmul.f32 %v7102_v18, %v7090_v0  ;;  %vm3218_vm3 = vweird.f32 %v7102_v18  ;;  %vm7161_vm10 = vmor %vm3202_vm9, %vm3203_vm2  ;;  %vm3260_vm2 = vcmp.eq.f32.partialorder %v3259_v1, 8.507059e+37 }
 0x6e6   : > { %v2475_v41 = vmul.f32 %v2462_v14, %v2440_v11  ;;  %v2476_v59 = vmul.f32 %v2462_v14, %v2441_v9  ;;  %v3198_v14 = vmul.f32 %v7100_v48, %v7088_v30  ;;  %v3221_v9 = vand.u32 2147483647, %v7090_v0  ;;  %vm7176_vm9 = vmor %vm3217_vm8, %vm3218_vm3 }
 0x6e7   : > { %v3214_v43 = vsub.f32 1.0, %v3213_v38  ;;  %v3243_v0 = vsel %vm7149_vm1, %v7096_v44, %v3239_v31  ;;  %vm3207_vm1 = vcmp.eq.f32.partialorder %v3206_v3, 8.507059e+37  ;;  %v3224_v44 = vor.u32 1.1754944e-38, %v3223_v28 }
 0x6e8   : > { %v2510_v47 = vadd.f32 %v2497_v19, %v2475_v41  ;;  %v2511_v22 = vadd.f32 %v2497_v19, %v2476_v59  ;;  %v3199_v57 = vsub.f32 1.0, %v3198_v14  ;;  %vm3222_vm0 = vcmp.eq.f32.partialorder %v3221_v9, 8.507059e+37 }
 0x6e9   : > { %v3215_v60 = vmul.f32 %v7102_v18, %v3214_v43  ;;  %v3262_v38 = vor.u32 1.1754944e-38, %v3261_v24 }
 0x6ea   : > { %v4210_v16 = vmul.f32 -1.442695, %v2510_v47  ;;  %v4211_v13 = vmul.f32 -1.442695, %v2511_v22  ;;  %v3200_v58 = vmul.f32 %v7100_v48, %v3199_v57  ;;  %v648_v57 = vld [vmem:[%s618_s26] sm:$0xff]  ;;  %v2502_v47 = vpop.permute.xlu0 %2501  ;;  %s8272_s26 = sld [smem:[#allocation116_spill]] }
 0x6eb   : > { %v7119_v50 = vpop.permute.xlu1 %2431  ;;  %v3216_v17 = vadd.f32 %v7102_v18, %v3215_v60 }
 0x6ec   : > { %4849 = vpow2.f32 %v4210_v16  ;;  %v3201_v45 = vadd.f32 %v7100_v48, %v3200_v58  ;;  %v3209_v16 = vor.u32 1.1754944e-38, %v3208_v26 }
 0x6ed   : > { %4851 = vpow2.f32 %v4211_v13 }
 0x6ee   : > { %v3205_v22 = vsel %vm7161_vm10, %v7100_v48, %v3201_v45  ;;  %vm7194_vm10 = vmor %vm3255_vm6, %vm3256_vm5  ;;  %vm3245_vm6 = vcmp.eq.f32.partialorder %v3244_v35, 8.507059e+37  ;;  %v2443_v45 = vmul.f32 %v7119_v50, %v6915_v42 }
 0x6ef   : > { %v3248_v61 = vsel %vm3245_vm6, %v3247_v29, %v3243_v0 }
 0x6f0   : > { %v3305_v58 = vmul.f32 %v3248_v61, %v648_v57  ;;  %s623_s5 = scalar_lea.vmem %s8272_s26, %s7167_s15  ;;  %v8281_v61 = vld [vmem:[#allocation49_spill] sm:$0xff] }
 0x6f2   : > { %v4850_v27 = vpop.eup %4849 }
 0x6f3   : > { %v4852_v19 = vpop.eup %4851  ;;  %v7114_v51 = vadd.f32 1.0, %v4850_v27  ;;  %v3210_v27 = vsel %vm3207_vm1, %v3209_v16, %v3205_v22 }
 0x6f4   : > { %v7116_v56 = vadd.f32 1.0, %v4852_v19 }
 0x6f5   : > { %4853 = vrcp.f32 %v7114_v51  ;;  %vm3280_vm8 = vweird.f32 %v7114_v51 }
 0x6f6   : > { %4855 = vrcp.f32 %v7116_v56  ;;  %v3299_v42 = vand.u32 2147483647, %v7116_v56 }
 0x6f7   : > { %4857 = vtanh.f32 %v2508_v5  ;;  %v2442_v5 = vmul.f32 %v7119_v50, %v6912_v21  ;;  %v3284_v21 = vand.u32 2147483647, %v7114_v51 }
 0x6f8   : > { %4859 = vtanh.f32 %v2509_v6  ;;  %v3286_v6 = vand.u32 2147483648, %v7114_v51  ;;  %vm3300_vm6 = vcmp.eq.f32.partialorder %v3299_v42, 8.507059e+37 }
 0x6f9   : > { %v2477_v34 = vmul.f32 %v7070_v8, %v2442_v5 }
 0x6fa   : > { %v3287_v3 = vor.u32 1.1754944e-38, %v3286_v6  ;;  %v8290_v6 = vld [vmem:[#allocation51_spill] sm:$0xff] }
 0x6fb   : > { %v7145_v11 = vpop.eup %4853  ;;  %v2512_v22 = vadd.f32 %v2502_v47, %v2477_v34  ;;  %v8293_v34 = vld [vmem:[#allocation47_spill] sm:$0xff] }
 0x6fc   : > { %v7157_v59 = vpop.eup %4855  ;;  %vm3281_vm5 = vweird.f32 %v7145_v11 }
 0x6fd   : > { %v4858_v36 = vpop.eup %4857  ;;  %vm3296_vm3 = vweird.f32 %v7157_v59 }
 0x6fe   : > { %v4860_v25 = vpop.eup %4859  ;;  %v3307_v43 = vmul.f32 %v4858_v36, %v3210_v27  ;;  %v8277_v27 = vld [vmem:[#allocation37_spill] sm:$0xff] }
 0x700   : > { %v3309_v60 = vadd.f32 %v3307_v43, %v3305_v58  ;;  %v8282_v43 = vld [vmem:[#allocation14_spill] sm:$0xff]  ;;  %v8284_v58 = vld [vmem:[#allocation59_spill] sm:$0xff] }
 0x703   : > { %v3169_v41 = vpop.permute.xlu1 %3168 }
 0x704   : > { %v3171_v53 = vmul.f32 %v3169_v41, %v6996_v46  ;;  %v3172_v30 = vmul.f32 %v3169_v41, %v6999_v37  ;;  %v3220_v46 = vsel %vm7176_vm9, %v7102_v18, %v3216_v17  ;;  %v3276_v37 = vmul.f32 %v7145_v11, %v7114_v51  ;;  %vm3282_vm9 = vmor %vm3280_vm8, %vm3281_vm5 }
 0x705   : > { %v3291_v18 = vmul.f32 %v7157_v59, %v7116_v56  ;;  %v3225_v19 = vsel %vm3222_vm0, %v3224_v44, %v3220_v46  ;;  %v2478_v51 = vmul.f32 %v7070_v8, %v2443_v45  ;;  %vm3285_vm0 = vcmp.eq.f32.partialorder %v3284_v21, 8.507059e+37  ;;  %v8273_v8 = vld [vmem:[#allocation18_spill] sm:$0xff]  ;;  %v8276_v44 = vld [vmem:[#allocation28_spill] sm:$0xff] }
 0x706   : > { %v3178_v48 = vmul.f32 %v7063_v7, %v3171_v53  ;;  %v3179_v4 = vmul.f32 %v7063_v7, %v3172_v30  ;;  %v3258_v7 = vsel %vm7194_vm10, %v7098_v32, %v3254_v23  ;;  %v3277_v33 = vsub.f32 1.0, %v3276_v37  ;;  %v8274_v37 = vld [vmem:[#allocation25_spill] sm:$0xff]  ;;  %v8289_v45 = vld [vmem:[#allocation66_spill] sm:$0xff] }
 0x707   : > { %v3292_v63 = vsub.f32 1.0, %v3291_v18  ;;  %v3263_v40 = vsel %vm3260_vm2, %v3262_v38, %v3258_v7  ;;  %v3308_v32 = vmul.f32 %v4860_v25, %v3225_v19  ;;  %v3301_v23 = vand.u32 2147483648, %v7116_v56  ;;  %v8291_v21 = vld [vmem:[#allocation34_spill] sm:$0xff] }
 0x708   : > { %v3185_v2 = vadd.f32 %v7072_v20, %v3178_v48  ;;  %v3186_v55 = vadd.f32 %v7072_v20, %v3179_v4  ;;  %v3278_v20 = vmul.f32 %v7145_v11, %v3277_v33  ;;  %v3306_v49 = vmul.f32 %v3263_v40, %v649_v62  ;;  %v8275_v4 = vld [vmem:[#allocation20_spill] sm:$0xff]  ;;  %v8280_v33 = vld [vmem:[#allocation50_spill] sm:$0xff]  ;;  %v8283_v40 = vld [vmem:[#allocation10_spill] sm:$0xff] }
 0x709   : > { %v3293_v39 = vmul.f32 %v7157_v59, %v3292_v63  ;;  %vm3295_vm10 = vweird.f32 %v7116_v56  ;;  %v3302_v28 = vor.u32 1.1754944e-38, %v3301_v23  ;;  %v3585_v46 = vmul.f32 0.0, %v8273_v8 }
 0x70a   : > { %4861 = vtanh.f32 %v3185_v2  ;;  %v3310_v29 = vadd.f32 %v3308_v32, %v3306_v49  ;;  %v3279_v1 = vadd.f32 %v7145_v11, %v3278_v20  ;;  %vm3297_vm1 = vmor %vm3295_vm10, %vm3296_vm3  ;;  %v3567_v48 = vmul.f32 0.0, %v8274_v37  ;;  %v8278_v2 = vld [vmem:[#allocation35_spill] sm:$0xff]  ;;  %v8285_v49 = vld [vmem:[#allocation58_spill] sm:$0xff] }
 0x70b   : > { %4863 = vtanh.f32 %v3186_v55  ;;  %v3294_v17 = vadd.f32 %v7157_v59, %v3293_v39  ;;  %v3549_v55 = vmul.f32 0.0, %v8278_v2  ;;  %vm8331_vm2 = vcmask 769024  }
 0x70c   : > { %v3283_v50 = vsel %vm3282_vm9, %v7145_v11, %v3279_v1  ;;  %v2513_v11 = vadd.f32 %v2502_v47, %v2478_v51  ;;  %v8295_v47 = vld [vmem:[#allocation17_spill] sm:$0xff]  ;;  %vm8332_vm5 = vmmov %vm8331_vm2  ;;  %vm8333_vm3 = vcmask 777216   ;;  %vm8342_vm9 = vcmask 138240  }
 0x70d   : > { %v3298_v9 = vsel %vm3297_vm1, %v7157_v59, %v3294_v17  ;;  %v3288_v53 = vsel %vm3285_vm0, %v3287_v3, %v3283_v50  ;;  %vm8334_vm8 = vmmov %vm8333_vm3  ;;  %vm8346_vm0 = vcmask 244736  }
 0x70e   : > { %v3303_v56 = vsel %vm3300_vm6, %v3302_v28, %v3298_v9  ;;  %v8294_v9 = vld [vmem:[#allocation62_spill] sm:$0xff]  ;;  %vm8343_vm10 = vmmov %vm8342_vm9 }
 0x70f   : > { %vm8347_vm6 = vmmov %vm8346_vm0 }
 0x710   : > { %v4862_v24 = vpop.eup %4861 }
 0x711   : > { %v4864_v35 = vpop.eup %4863  ;;  %v3311_v31 = vadd.f32 %v4862_v24, %v3309_v60  ;;  %v8286_v60 = vld [vmem:[#allocation67_spill] sm:$0xff] }
 0x712   : > { %v3312_v26 = vadd.f32 %v4864_v35, %v3310_v29  ;;  %v8287_v35 = vld [vmem:[#allocation45_spill] sm:$0xff] }
 0x713   : > { %4865 = vtanh.f32 %v3311_v31  ;;  %4000 = vst [vmem:[%s628_s2] sm:$0xff] %v3311_v31  ;;  %v8288_v31 = vld [vmem:[#allocation64_spill] sm:$0xff] }
 0x714   : > { %4867 = vtanh.f32 %v3312_v26  ;;  %4001 = vst [vmem:[%s628_s2 + $0x8] sm:$0xff] %v3312_v26  ;;  %s8373_s2 = sld [smem:[#allocation118_spill]] }
 0x719   : > { %v4866_v41 = vpop.eup %4865 }
 0x71a   : > { %v4868_v30 = vpop.eup %4867  ;;  %v3315_v16 = vmul.f32 %v4866_v41, %v3288_v53  ;;  %s633_s12 = scalar_lea.vmem %s8373_s2, %s7167_s15 }
 0x71b   : > { %v3316_v13 = vmul.f32 %v4868_v30, %v3303_v56 }
 0x71c   : > { %v7237_v0 = vadd.f32 %v3315_v16, %v2512_v22  ;;  %v8296_v16 = vld [vmem:[#allocation68_spill] sm:$0xff] }
 0x71d   : > { %v7239_v59 = vadd.f32 %v3316_v13, %v2513_v11  ;;  %v8297_v13 = vld [vmem:[#allocation78_spill] sm:$0xff] }
 0x71e   : > { %3998 = vst [vmem:[%s623_s5] sm:$0xff] %v7237_v0  ;;  %v3526_v57 = vmul.f32 %v7237_v0, %v8280_v33  ;;  %v3583_v63 = vmul.f32 %v7237_v0, %v8282_v43  ;;  %v3565_v32 = vmul.f32 %v7237_v0, %v8283_v40  ;;  %v3508_v20 = vmul.f32 %v7237_v0, %v8284_v58  ;;  %v8307_v40 = vld [vmem:[#allocation23_spill] sm:$0xff] }
 0x71f   : > { %3999 = vst [vmem:[%s623_s5 + $0x8] sm:$0xff] %v7239_v59  ;;  %v3584_v14 = vmul.f32 %v7239_v59, %v8275_v4  ;;  %v3566_v18 = vmul.f32 %v7239_v59, %v8276_v44  ;;  %v3548_v7 = vmul.f32 %v7239_v59, %v8277_v27  ;;  %v3527_v25 = vmul.f32 %v7239_v59, %v8281_v61 }
 0x720   : > { %v3509_v39 = vmul.f32 %v7239_v59, %v8285_v49  ;;  %v3490_v24 = vmul.f32 %v7237_v0, %v8286_v60  ;;  %v7274_v29 = vmul.f32 %v7237_v0, %v8199_v10  ;;  %v7278_v5 = vmul.f32 %v7239_v59, %v8287_v35  ;;  %v8292_v10 = vld [vmem:[#allocation54_spill] sm:$0xff]  ;;  %v8308_v60 = vld [vmem:[#allocation12_spill] sm:$0xff]  ;;  %v8309_v35 = vld [vmem:[#allocation19_spill] sm:$0xff] }
 0x721   : > { %v4701_v38 = vpack.i.bf16 %v3585_v46, %v3584_v14  ;;  %v4706_v19 = vpack.i.bf16 %v3567_v48, %v3566_v18  ;;  %v4711_v36 = vpack.i.bf16 %v3549_v55, %v3548_v7  ;;  %v4716_v62 = vpack.i.bf16 %v3527_v25, %v3526_v57  ;;  %v8298_v46 = vld [vmem:[#allocation72_spill] sm:$0xff]  ;;  %v8299_v48 = vld [vmem:[#allocation63_spill] sm:$0xff]  ;;  %v8301_v18 = vld [vmem:[#allocation74_spill] sm:$0xff] }
 0x722   : > { %v7282_v1 = vmul.f32 %v7237_v0, %v8288_v31  ;;  %v3491_v26 = vmul.f32 %v7239_v59, %v8289_v45  ;;  %v7288_v17 = vmul.f32 %v7239_v59, %v8290_v6  ;;  %v7292_v23 = vmul.f32 %v7237_v0, %v8291_v21  ;;  %v8300_v14 = vld [vmem:[#allocation75_spill] sm:$0xff]  ;;  %v8304_v57 = vld [vmem:[#allocation46_spill] sm:$0xff]  ;;  %v8310_v45 = vld [vmem:[#allocation36_spill] sm:$0xff] }
 0x723   : > { %4702 = vrot.lane.b32.xlu1 %v4701_v38, %s7965_s3  ;;  %4707 = vrot.lane.b32.xlu2 %v4706_v19, %s7912_s20  ;;  %v7296_v42 = vmul.f32 %v7239_v59, %v8292_v10  ;;  %v4801_v50 = vpack.i.bf16 %v7278_v5, %v7274_v29  ;;  %v7302_v3 = vmul.f32 %v7237_v0, %v8293_v34  ;;  %v8302_v38 = vld [vmem:[#allocation77_spill] sm:$0xff]  ;;  %v8305_v25 = vld [vmem:[#allocation30_spill] sm:$0xff]  ;;  %v3756_v5 = vpop.permute.xlu0 %3755 }
 0x724   : > { %4712 = vrot.lane.b32.xlu0 %v4711_v36, %s8279_s6  ;;  %v7306_v51 = vmul.f32 %v7239_v59, %v8294_v9  ;;  %v4796_v28 = vpack.i.bf16 %v7288_v17, %v7282_v1  ;;  %v3547_v53 = vmul.f32 %v7237_v0, %v8295_v47  ;;  %v4721_v30 = vpack.i.bf16 %v3509_v39, %v3508_v20  ;;  %v8303_v36 = vld [vmem:[#allocation79_spill] sm:$0xff]  ;;  %v7346_v39 = vpop.permute.xlu2 %3531  ;;  %v8311_v6 = vld [vmem:[#allocation38_spill] sm:$0xff]  ;;  %v8312_v10 = vld [vmem:[#allocation33_spill] sm:$0xff] }
 0x725   : > { %v4811_v41 = vpack.i.bf16 %v7296_v42, %v7292_v23  ;;  %v4726_v56 = vpack.i.bf16 %v3491_v26, %v3490_v24  ;;  %v3745_v11 = vmul.f32 %v7237_v0, %v8296_v16  ;;  %v3746_v8 = vmul.f32 %v7239_v59, %v8297_v13  ;;  %v8313_v9 = vld [vmem:[#allocation32_spill] sm:$0xff] }
 0x726   : > { %v4816_v22 = vpack.i.bf16 %v7306_v51, %v7302_v3  ;;  %v3472_v37 = vmul.f32 %v7237_v0, %v8298_v46  ;;  %v3473_v4 = vmul.f32 %v7239_v59, %v8299_v48  ;;  %v3454_v44 = vmul.f32 %v7237_v0, %v8300_v14 }
 0x727   : > { %v3455_v27 = vmul.f32 %v7239_v59, %v8301_v18  ;;  %v4741_v7 = vpack.i.bf16 %v3746_v8, %v3745_v11  ;;  %v3727_v19 = vmul.f32 %v7237_v0, %v8302_v38  ;;  %v3728_v33 = vmul.f32 %v7239_v59, %v8303_v36  ;;  %v8314_v11 = vld [vmem:[#allocation8_spill] sm:$0xff]  ;;  %v8315_v8 = vld [vmem:[#allocation15_spill] sm:$0xff] }
 0x728   : > { %v4731_v2 = vpack.i.bf16 %v3473_v4, %v3472_v37  ;;  %v3382_v61 = vmul.f32 %v7237_v0, %v8304_v57  ;;  %v3383_v43 = vmul.f32 %v7239_v59, %v8305_v25  ;;  %v3709_v24 = vmul.f32 %v7237_v0, %v8308_v60  ;;  %v8316_v37 = vld [vmem:[#allocation71_spill] sm:$0xff]  ;;  %v8317_v4 = vld [vmem:[#allocation69_spill] sm:$0xff] }
 0x729   : > { %v4736_v55 = vpack.i.bf16 %v3455_v27, %v3454_v44  ;;  %v4751_v58 = vpack.i.bf16 %v3728_v33, %v3727_v19  ;;  %v3710_v31 = vmul.f32 %v7239_v59, %v8309_v35  ;;  %v3655_v26 = vmul.f32 %v7237_v0, %v8310_v45  ;;  %v8318_v44 = vld [vmem:[#allocation42_spill] sm:$0xff]  ;;  %v8319_v27 = vld [vmem:[#allocation40_spill] sm:$0xff]  ;;  %v8321_v19 = vld [vmem:[#allocation55_spill] sm:$0xff] }
 0x72a   : > { %v4776_v20 = vpack.i.bf16 %v3383_v43, %v3382_v61  ;;  %v3656_v21 = vmul.f32 %v7239_v59, %v8311_v6  ;;  %v3418_v34 = vmul.f32 %v7237_v0, %v8312_v10  ;;  %v3419_v47 = vmul.f32 %v7239_v59, %v8313_v9  ;;  %v8322_v33 = vld [vmem:[#allocation41_spill] sm:$0xff]  ;;  %v8323_v61 = vld [vmem:[#allocation27_spill] sm:$0xff]  ;;  %v8327_v35 = vld [vmem:[#allocation52_spill] sm:$0xff] }
 0x72b   : > { %3589 = vrot.lane.b32.xlu1 %v3583_v63, %s7965_s3  ;;  %4717 = vrot.lane.b32.xlu2 %v4716_v62, %s7942_s0  ;;  %v8306_v63 = vld [vmem:[#allocation24_spill] sm:$0xff]  ;;  %v3691_v13 = vmul.f32 %v7237_v0, %v8314_v11  ;;  %v3692_v46 = vmul.f32 %v7239_v59, %v8315_v8  ;;  %v3328_v48 = vmul.f32 %v7237_v0, %v8316_v37  ;;  %s8320_s3 = smov 34   ;;  %v8324_v43 = vld [vmem:[#allocation29_spill] sm:$0xff]  ;;  %s8369_s0 = sld [smem:[#allocation115_spill]] }
 0x72c   : > { %3571 = vrot.lane.b32.xlu0 %v3565_v32, %s7912_s20  ;;  %v3436_v62 = vmul.f32 %v7237_v0, %v8306_v63  ;;  %v3437_v32 = vmul.f32 %v7239_v59, %v8307_v40  ;;  %v7366_v16 = vpop.permute.xlu2 %3441  ;;  %v3329_v14 = vmul.f32 %v7239_v59, %v8317_v4  ;;  %v3400_v18 = vmul.f32 %v7237_v0, %v8318_v44 }
 0x72d   : > { %v3364_v36 = vmul.f32 %v7237_v0, %v8321_v19  ;;  %v3365_v57 = vmul.f32 %v7239_v59, %v8322_v33  ;;  %v3673_v25 = vmul.f32 %v7237_v0, %v8323_v61  ;;  %v3674_v63 = vmul.f32 %v7239_v59, %v8324_v43 }
 0x72e   : > { %v4746_v49 = vpack.i.bf16 %v3437_v32, %v3436_v62  ;;  %v8325_v32 = vld [vmem:[#allocation56_spill] sm:$0xff] }
 0x72f   : > { %v4786_v40 = vpack.i.bf16 %v3365_v57, %v3364_v36 }
 0x733   : > { %3553 = vrot.lane.b32.xlu2 %v3547_v53, %s8279_s6  ;;  %4722 = vrot.lane.b32.xlu1 %v4721_v30, %s7953_s17  ;;  %v4761_v53 = vpack.i.bf16 %v3710_v31, %v3709_v24  ;;  %v4791_v30 = vpack.i.bf16 %v3656_v21, %v3655_v26  ;;  %v7410_v24 = vpop.permute.xlu1 %3459  ;;  %v3621_v31 = vmul.f32 0.0, %v8327_v35  ;;  %s8360_s17 = sld [smem:[#allocation111_spill]] }
 0x734   : > { %4727 = vrot.lane.b32.xlu0 %v4726_v56, %s7966_s25  ;;  %v4756_v56 = vpack.i.bf16 %v3419_v47, %v3418_v34  ;;  %v7391_v62 = vpop.permute.xlu2 %3719 }
 0x73b   : > { %4742 = vrot.lane.b32.xlu2 %v4741_v7, %s7981_s14  ;;  %4732 = vrot.lane.b32.xlu1 %v4731_v2, %s7973_s13  ;;  %v3401_v7 = vmul.f32 %v7239_v59, %v8319_v27  ;;  %v4771_v2 = vpack.i.bf16 %v3692_v46, %v3691_v13  ;;  %v3738_v29 = vpop.permute.xlu1 %3737  ;;  %s8329_s13 = smov 113  }
 0x73c   : > { %4737 = vrot.lane.b32.xlu0 %v4736_v55, %s7976_s8  ;;  %v4806_v55 = vpack.i.bf16 %v3329_v14, %v3328_v48  ;;  %v7400_v60 = vpop.permute.xlu2 %3387 }
 0x73d   : > { %v4766_v38 = vpack.i.bf16 %v3401_v7, %v3400_v18 }
 0x743   : > { %4752 = vrot.lane.b32.xlu2 %v4751_v58, %s7983_s7  ;;  %4777 = vrot.lane.b32.xlu1 %v4776_v20, %s7937_s19  ;;  %v3327_v58 = vmul.f32 0.0, %v8325_v32  ;;  %v4781_v20 = vpack.i.bf16 %v3674_v63, %v3673_v25  ;;  %v7426_v17 = vpop.permute.xlu1 %3405 }
 0x744   : > { %4747 = vrot.lane.b32.xlu0 %v4746_v49, %s7906_s28  ;;  %v7413_v45 = vpop.permute.xlu2 %3369 }
 0x74b   : > { %4762 = vrot.lane.b32.xlu2 %v4761_v53, %s7984_s10  ;;  %4792 = vrot.lane.b32.xlu1 %v4791_v30, %s8215_s30  ;;  %s8328_s10 = smov 112   ;;  %v7432_v23 = vpop.permute.xlu1 %3683 }
 0x74c   : > { %4757 = vrot.lane.b32.xlu0 %v4756_v56, %s7918_s22  ;;  %v7424_v1 = vpop.permute.xlu2 %3351 }
 0x753   : > { %4772 = vrot.lane.b32.xlu2 %v4771_v2, %s7986_s9  ;;  %4807 = vrot.lane.b32.xlu1 %v4806_v55, %s8320_s3  ;;  %s8326_s9 = sld [smem:[#allocation112_spill]]  ;;  %v7436_v21 = vpop.permute.xlu1 %3665  ;;  %v3544_v2 = vmul.f32 %v7239_v59, %v8068_v54  ;;  %v8335_v59 = vld [vmem:[#allocation6_spill] sm:$0xff] }
 0x754   : > { %4767 = vrot.lane.b32.xlu0 %v4766_v38, %s7930_s1  ;;  %v3543_v43 = vmul.f32 %v7237_v0, %v8335_v59 }
 0x759   : > { %v3815_v49 = vld [vmem:[%s8326_s9] sm:$0xff] }
 0x75b   : > { %4787 = vrot.lane.b32.xlu2 %v4786_v40, %s7948_s24  ;;  %3333 = vrot.lane.b32.xlu1 %v3327_v58, %s8320_s3 }
 0x75c   : > { %4782 = vrot.lane.b32.xlu0 %v4781_v20, %s7913_s21 }
 0x763   : > { %4802 = vrot.lane.b32.xlu2 %v4801_v50, %s8201_s4  ;;  %3818 = vperm.xlu1 %4580, %v3815_v49   ;;  %v7428_v50 = vpop.permute.xlu0 %3423  ;;  %s8372_s4 = sld [smem:[#allocation114_spill]] }
 0x764   : > { %4797 = vrot.lane.b32.xlu0 %v4796_v28, %s7960_s16  ;;  %v8330_v28 = vld [vmem:[#allocation60_spill] sm:$0xff] }
 0x765   : > { %v3603_v26 = vmul.f32 0.0, %v8330_v28 }
 0x76b   : > { %3629 = vrot.lane.b32.xlu2 %v3621_v31, %s8328_s10  ;;  %v7434_v42 = vpop.permute.xlu0 %3701 }
 0x76c   : > { %4812 = vrot.lane.b32.xlu0 %v4811_v41, %s8328_s10 }
 0x773   : > { %v7438_v51 = vpop.permute.xlu0 %3647 }
 0x774   : > { %4817 = vrot.lane.b32.xlu0 %v4816_v22, %s8329_s13 }
 0x77c   : > { %3611 = vrot.lane.b32.xlu0 %v3603_v26, %s8329_s13 }
 0x77d   : > { %v4708_v6 = vpop.permute.xlu2 %4707 }
 0x77e   : > { %v4710_v22 = vunpack.i.h.bf16 %v4708_v6  ;;  %v4709_v10 = vunpack.i.l.bf16 %v4708_v6 }
 0x780   : > { %v3578_v4 = vsel %vm954_vm15, %v4709_v10, %v4710_v22 }
 0x785   : > { %v4718_v41 = vpop.permute.xlu2 %4717 }
 0x786   : > { %v4720_v44 = vunpack.i.h.bf16 %v4718_v41  ;;  %v4719_v18 = vunpack.i.l.bf16 %v4718_v41 }
 0x788   : > { %v3538_v25 = vsel %vm999_vm7, %v4719_v18, %v4720_v44  ;;  %v3537_v32 = vsel %vm999_vm7, %v7346_v39, %v4719_v18  ;;  %vm8336_vm7 = vcmask 113664  }
 0x78d   : > { %v3554_v3 = vpop.permute.xlu2 %3553 }
 0x795   : > { %v4743_v34 = vpop.permute.xlu2 %4742  ;;  %v4703_v9 = vpop.permute.xlu1 %4702 }
 0x796   : > { %v4713_v47 = vpop.permute.xlu0 %4712  ;;  %v4745_v53 = vunpack.i.h.bf16 %v4743_v34  ;;  %v4744_v30 = vunpack.i.l.bf16 %v4743_v34  ;;  %v4705_v56 = vunpack.i.h.bf16 %v4703_v9  ;;  %v4704_v11 = vunpack.i.l.bf16 %v4703_v9 }
 0x797   : > { %v4715_v13 = vunpack.i.h.bf16 %v4713_v47  ;;  %v4714_v8 = vunpack.i.l.bf16 %v4713_v47 }
 0x798   : > { %v3757_v46 = vsel %vm8331_vm2, %v4744_v30, %v4745_v53  ;;  %v3596_v37 = vsel %vm926_vm13, %v4704_v11, %v4705_v56  ;;  %v3758_v48 = vsel %vm8332_vm5, %v4745_v53, %v3756_v5  ;;  %vm8348_vm2 = vcmask 252928  }
 0x799   : > { %3851 = vmatpush.msrb.mxu3 %v3757_v46  ;;  %3864 = vmatpush.msra.mxu2 %v3596_v37  ;;  %v3560_v14 = vsel %vm982_vm12, %v4714_v8, %v4715_v13  ;;  %v3559_v54 = vsel %vm982_vm12, %v3554_v3, %v4714_v8  ;;  %vm8337_vm12 = vmmov %vm8336_vm7 }
 0x79a   : > { %3891 = vmatpush.msra.mxu1 %v3758_v48  ;;  %vm8349_vm5 = vmmov %vm8348_vm2 }
 0x79b   : > { %3865 = vmatpush.msra.mxu2 %v3578_v4 }
 0x79d   : > { %v4753_v27 = vpop.permute.xlu2 %4752  ;;  %v3590_v7 = vpop.permute.xlu1 %3589  ;;  %3866 = vmatpush.msra.mxu2 %v3560_v14 }
 0x79e   : > { %v3572_v55 = vpop.permute.xlu0 %3571  ;;  %v4755_v38 = vunpack.i.h.bf16 %v4753_v27  ;;  %v4754_v19 = vunpack.i.l.bf16 %v4753_v27  ;;  %v3595_v36 = vsel %vm926_vm13, %v3590_v7, %v4704_v11 }
 0x79f   : > { %3824 = vmatpush.msrb.mxu0 %v3595_v36  ;;  %3867 = vmatpush.msra.mxu2 %v3544_v2  ;;  %v3577_v33 = vsel %vm954_vm15, %v3572_v55, %v4709_v10 }
 0x7a0   : > { %v3739_v57 = vsel %vm8333_vm3, %v4754_v19, %v4755_v38  ;;  %v3740_v61 = vsel %vm8334_vm8, %v4755_v38, %v3738_v29  ;;  %vm8350_vm3 = vcmask 261120  }
 0x7a1   : > { %3825 = vmatpush.msrb.mxu0 %v3577_v33  ;;  %3852 = vmatpush.msrb.mxu3 %v3739_v57  ;;  %vm8351_vm8 = vmmov %vm8350_vm3 }
 0x7a2   : > { %3868 = vmatpush.msra.mxu2 %v3538_v25  ;;  %3892 = vmatpush.msra.mxu1 %v3740_v61 }
 0x7a3   : > { %3826 = vmatpush.msrb.mxu0 %v3559_v54 }
 0x7a5   : > { %v4763_v63 = vpop.permute.xlu2 %4762  ;;  %v4723_v40 = vpop.permute.xlu1 %4722  ;;  %3827 = vmatpush.msrb.mxu0 %v3543_v43 }
 0x7a6   : > { %v4765_v58 = vunpack.i.h.bf16 %v4763_v63  ;;  %v4764_v20 = vunpack.i.l.bf16 %v4763_v63  ;;  %v4728_v49 = vpop.permute.xlu0 %4727  ;;  %v4725_v35 = vunpack.i.h.bf16 %v4723_v40  ;;  %v4724_v31 = vunpack.i.l.bf16 %v4723_v40 }
 0x7a7   : > { %v4730_v29 = vunpack.i.h.bf16 %v4728_v49  ;;  %v4729_v5 = vunpack.i.l.bf16 %v4728_v49  ;;  %3828 = vmatpush.msrb.mxu0 %v3537_v32 }
 0x7a8   : > { %v3519_v28 = vsel %vm971_vm4, %v7068_v15, %v4724_v31  ;;  %v3721_v26 = vsel %vm722_vm14, %v4764_v20, %v4765_v58  ;;  %v3520_v0 = vsel %vm971_vm4, %v4724_v31, %v4725_v35  ;;  %v3722_v6 = vsel %vm722_vm14, %v4765_v58, %v7391_v62 }
 0x7a9   : > { %3829 = vmatpush.msrb.mxu0 %v3519_v28  ;;  %3853 = vmatpush.msrb.mxu3 %v3721_v26  ;;  %v3501_v39 = vsel %vm8336_vm7, %v7074_v52, %v4729_v5  ;;  %v3502_v41 = vsel %vm8337_vm12, %v4729_v5, %v4730_v29  ;;  %vm8338_vm4 = vcmask 121856   ;;  %vm8340_vm14 = vcmask 130048  }
 0x7aa   : > { %3869 = vmatpush.msra.mxu2 %v3520_v0  ;;  %3893 = vmatpush.msra.mxu1 %v3722_v6  ;;  %vm8339_vm13 = vmmov %vm8338_vm4  ;;  %vm8352_vm7 = vcmask 801792  }
 0x7ab   : > { %3830 = vmatpush.msrb.mxu0 %v3501_v39  ;;  %vm8341_vm15 = vmmov %vm8340_vm14 }
 0x7ac   : > { %3870 = vmatpush.msra.mxu2 %v3502_v41  ;;  %vm8353_vm12 = vmmov %vm8352_vm7 }
 0x7ad   : > { %v4773_v3 = vpop.permute.xlu2 %4772  ;;  %v4733_v15 = vpop.permute.xlu1 %4732 }
 0x7ae   : > { %v4775_v22 = vunpack.i.h.bf16 %v4773_v3  ;;  %v4774_v10 = vunpack.i.l.bf16 %v4773_v3  ;;  %v4738_v34 = vpop.permute.xlu0 %4737  ;;  %v4735_v9 = vunpack.i.h.bf16 %v4733_v15  ;;  %v4734_v47 = vunpack.i.l.bf16 %v4733_v15 }
 0x7af   : > { %v4740_v53 = vunpack.i.h.bf16 %v4738_v34  ;;  %v4739_v62 = vunpack.i.l.bf16 %v4738_v34 }
 0x7b0   : > { %v3483_v30 = vsel %vm8338_vm4, %v7080_v12, %v4734_v47  ;;  %v3703_v56 = vsel %vm754_vm11, %v4774_v10, %v4775_v22  ;;  %v3484_v52 = vsel %vm8339_vm13, %v4734_v47, %v4735_v9  ;;  %v3704_v11 = vsel %vm754_vm11, %v4775_v22, %v7434_v42  ;;  %v3763_v22 = vld [vmem:[%s8360_s17] sm:$0xff] }
 0x7b1   : > { %3831 = vmatpush.msrb.mxu0 %v3483_v30  ;;  %3854 = vmatpush.msrb.mxu3 %v3703_v56  ;;  %v3465_v13 = vsel %vm8340_vm14, %v7410_v24, %v4739_v62  ;;  %v3466_v8 = vsel %vm8341_vm15, %v4739_v62, %v4740_v53  ;;  %vm8344_vm11 = vcmask 146432   ;;  %vm8354_vm4 = vcmask 900096  }
 0x7b2   : > { %3871 = vmatpush.msra.mxu2 %v3484_v52  ;;  %3894 = vmatpush.msra.mxu1 %v3704_v11  ;;  %vm8345_vm1 = vmmov %vm8344_vm11  ;;  %vm8356_vm14 = vcmask 908288   ;;  %v3764_v11 = vld [vmem:[%s8360_s17 + $0x8] sm:$0xff] }
 0x7b3   : > { %3832 = vmatpush.msrb.mxu0 %v3465_v13  ;;  %vm8355_vm13 = vmmov %vm8354_vm4 }
 0x7b4   : > { %3872 = vmatpush.msra.mxu2 %v3466_v8  ;;  %vm8357_vm15 = vmmov %vm8356_vm14 }
 0x7b5   : > { %v4778_v42 = vpop.permute.xlu1 %4777  ;;  %v4788_v7 = vpop.permute.xlu2 %4787 }
 0x7b6   : > { %v4748_v46 = vpop.permute.xlu0 %4747  ;;  %v4780_v38 = vunpack.i.h.bf16 %v4778_v42  ;;  %v4790_v33 = vunpack.i.h.bf16 %v4788_v7  ;;  %v4789_v57 = vunpack.i.l.bf16 %v4788_v7 }
 0x7b7   : > { %v4750_v12 = vunpack.i.h.bf16 %v4748_v46  ;;  %v4749_v37 = vunpack.i.l.bf16 %v4748_v46 }
 0x7b8   : > { %v3375_v43 = vsel %vm8350_vm3, %v7413_v45, %v4789_v57  ;;  %v3376_v63 = vsel %vm8351_vm8, %v4789_v57, %v4790_v33 }
 0x7b9   : > { %v3447_v48 = vsel %vm8342_vm9, %v7366_v16, %v4749_v37  ;;  %v3448_v4 = vsel %vm8343_vm10, %v4749_v37, %v4750_v12  ;;  %v4779_v16 = vunpack.i.l.bf16 %v4778_v42  ;;  %vm8358_vm9 = vcmask 269312  }
 0x7ba   : > { %3833 = vmatpush.msrb.mxu0 %v3447_v48  ;;  %3873 = vmatpush.msra.mxu2 %v3448_v4  ;;  %vm8359_vm10 = vmmov %vm8358_vm9 }
 0x7bb   : > { %v3394_v54 = vsel %vm8349_vm5, %v4779_v16, %v4780_v38  ;;  %vm8366_vm5 = vcmask 588800  }
 0x7bc   : > { %vm8368_vm8 = vmmov %vm8366_vm5 }
 0x7bd   : > { %v4793_v2 = vpop.permute.xlu1 %4792  ;;  %v4803_v59 = vpop.permute.xlu2 %4802 }
 0x7be   : > { %v4758_v14 = vpop.permute.xlu0 %4757  ;;  %v4794_v58 = vunpack.i.l.bf16 %v4793_v2  ;;  %v4805_v35 = vunpack.i.h.bf16 %v4803_v59 }
 0x7bf   : > { %v4760_v44 = vunpack.i.h.bf16 %v4758_v14  ;;  %v4759_v18 = vunpack.i.l.bf16 %v4758_v14 }
 0x7c0   : > { %v3650_v26 = vsel %vm8357_vm15, %v4805_v35, %v7438_v51 }
 0x7c1   : > { %v3429_v24 = vsel %vm8344_vm11, %v7428_v50, %v4759_v18  ;;  %v3430_v27 = vsel %vm8345_vm1, %v4759_v18, %v4760_v44  ;;  %v3393_v50 = vsel %vm8348_vm2, %v7400_v60, %v4779_v16  ;;  %v4804_v60 = vunpack.i.l.bf16 %v4803_v59  ;;  %v3904_v16 = vld [vmem:[%s8256_s27] sm:$0xff] }
 0x7c2   : > { %3834 = vmatpush.msrb.mxu0 %v3429_v24  ;;  %3874 = vmatpush.msra.mxu2 %v3430_v27  ;;  %vm8361_vm11 = vcmask 277504   ;;  %vm8365_vm2 = vcmask 924672  }
 0x7c3   : > { %v3649_v28 = vsel %vm8356_vm14, %v4804_v60, %v4805_v35  ;;  %vm8362_vm1 = vmmov %vm8361_vm11  ;;  %v3905_v35 = vld [vmem:[%s8372_s4] sm:$0xff] }
 0x7c4   : > { %vm8367_vm3 = vmmov %vm8365_vm2 }
 0x7c5   : > { %v4808_v40 = vpop.permute.xlu1 %4807 }
 0x7c6   : > { %v4768_v55 = vpop.permute.xlu0 %4767  ;;  %v4810_v6 = vunpack.i.h.bf16 %v4808_v40  ;;  %v4809_v39 = vunpack.i.l.bf16 %v4808_v40 }
 0x7c7   : > { %v4770_v19 = vunpack.i.h.bf16 %v4768_v55  ;;  %v4769_v36 = vunpack.i.l.bf16 %v4768_v55  ;;  %v3906_v55 = vld [vmem:[%s8369_s0] sm:$0xff] }
 0x7c8   : > { %v3340_v10 = vsel %vm8362_vm1, %v4809_v39, %v4810_v6 }
 0x7c9   : > { %v3411_v61 = vsel %vm8346_vm0, %v7426_v17, %v4769_v36  ;;  %v3412_v25 = vsel %vm8347_vm6, %v4769_v36, %v4770_v19  ;;  %v4795_v17 = vunpack.i.h.bf16 %v4793_v2  ;;  %vm8363_vm0 = vcmask 916480  }
 0x7ca   : > { %3835 = vmatpush.msrb.mxu0 %v3411_v61  ;;  %3875 = vmatpush.msra.mxu2 %v3412_v25  ;;  %vm8364_vm6 = vmmov %vm8363_vm0 }
 0x7cb   : > { %v3667_v45 = vsel %vm8354_vm4, %v4794_v58, %v4795_v17  ;;  %v3668_v5 = vsel %vm8355_vm13, %v4795_v17, %v7436_v21 }
 0x7cc   : > { %3836 = vmatpush.msrb.mxu0 %v3393_v50  ;;  %3876 = vmatpush.msra.mxu2 %v3394_v54 }
 0x7cd   : > { %v3334_v3 = vpop.permute.xlu1 %3333 }
 0x7ce   : > { %v4783_v32 = vpop.permute.xlu0 %4782  ;;  %3837 = vmatpush.msrb.mxu0 %v3375_v43  ;;  %3877 = vmatpush.msra.mxu2 %v3376_v63  ;;  %v3339_v51 = vsel %vm8361_vm11, %v3334_v3, %v4809_v39 }
 0x7cf   : > { %v4785_v20 = vunpack.i.h.bf16 %v4783_v32  ;;  %v4784_v49 = vunpack.i.l.bf16 %v4783_v32 }
 0x7d1   : > { %v3685_v31 = vsel %vm8352_vm7, %v4784_v49, %v4785_v20  ;;  %v3686_v29 = vsel %vm8353_vm12, %v4785_v20, %v7432_v23  ;;  %vm8370_vm7 = vcmask 64512  }
 0x7d2   : > { %3855 = vmatpush.msrb.mxu3 %v3685_v31  ;;  %3895 = vmatpush.msra.mxu1 %v3686_v29  ;;  %vm8371_vm12 = vmmov %vm8370_vm7 }
 0x7d4   : > { %3856 = vmatpush.msrb.mxu3 %v3667_v45  ;;  %3896 = vmatpush.msra.mxu1 %v3668_v5 }
 0x7d5   : > { %v3819_v48 = vpop.permute.xlu1 %3818 }
 0x7d6   : > { %v4798_v0 = vpop.permute.xlu0 %4797  ;;  %3857 = vmatpush.msrb.mxu3 %v3649_v28  ;;  %3897 = vmatpush.msra.mxu1 %v3650_v26 }
 0x7d7   : > { %v4800_v23 = vunpack.i.h.bf16 %v4798_v0  ;;  %v4799_v41 = vunpack.i.l.bf16 %v4798_v0 }
 0x7d9   : > { %v3357_v15 = vsel %vm8358_vm9, %v7424_v1, %v4799_v41  ;;  %v3358_v21 = vsel %vm8359_vm10, %v4799_v41, %v4800_v23  ;;  %v3630_v1 = vpop.permute.xlu2 %3629 }
 0x7da   : > { %3838 = vmatpush.msrb.mxu0 %v3357_v15  ;;  %3878 = vmatpush.msra.mxu2 %v3358_v21 }
 0x7dc   : > { %3839 = vmatpush.msrb.mxu0 %v3339_v51  ;;  %3879 = vmatpush.msra.mxu2 %v3340_v10 }
 0x7dd   : > { %3840 = vmatmul.f32.vlgmr.msrb.gmra.mxu0 %v3763_v22  ;;  %3880 = vmatmul.f32.vlgmr.msra.gmra.mxu2 %v3763_v22 }
 0x7de   : > { %v4813_v34 = vpop.permute.xlu0 %4812 }
 0x7df   : > { %v4815_v9 = vunpack.i.h.bf16 %v4813_v34  ;;  %v4814_v47 = vunpack.i.l.bf16 %v4813_v34 }
 0x7e1   : > { %v3631_v53 = vsel %vm8363_vm0, %v4814_v47, %v4815_v9  ;;  %v3632_v62 = vsel %vm8364_vm6, %v4815_v9, %v3630_v1 }
 0x7e2   : > { %3858 = vmatpush.msrb.mxu3 %v3631_v53  ;;  %3898 = vmatpush.msra.mxu1 %v3632_v62 }
 0x7e6   : > { %v4818_v30 = vpop.permute.xlu0 %4817 }
 0x7e7   : > { %v4820_v56 = vunpack.i.h.bf16 %v4818_v30  ;;  %v4819_v52 = vunpack.i.l.bf16 %v4818_v30 }
 0x7e9   : > { %v3613_v13 = vsel %vm8365_vm2, %v4819_v52, %v4820_v56 }
 0x7ea   : > { %3859 = vmatpush.msrb.mxu3 %v3613_v13 }
 0x7eb   : > { %4212 = vmatmul.msk.f32.vlgmr.msrb.gmra.mxu3 %vm8366_vm5, %v3764_v11 }
 0x7ee   : > { %v3612_v8 = vpop.permute.xlu0 %3611 }
 0x7ef   : > { %v3614_v46 = vsel %vm8367_vm3, %v4820_v56, %v3612_v8 }
 0x7f0   : > { %3899 = vmatpush.msra.mxu1 %v3614_v46 }
 0x7f1   : > { %4213 = vmatmul.msk.f32.vlgmr.msra.gmra.mxu1 %vm8368_vm8, %v3764_v11 }
 0x85a   : > { %v3841_v12 = vpop.f32.mrf.mxu0 }
 0x85b   : > { %v3842_v4 = vadd.f32 %v3841_v12, %v3819_v48 }
 0x860   : > { %v3881_v37 = vpop.f32.mrf.mxu2 }
 0x861   : > { %v3882_v42 = vadd.f32 %v3881_v37, %v3819_v48 }
 0x86e   : > { %v3861_v14 = vpop.f32.mrf.mxu3  ;;  %v3901_v44 = vpop.f32.mrf.mxu1 }
 0x86f   : > { %v3862_v18 = vadd.f32 %v3861_v14, %v3842_v4  ;;  %v3902_v24 = vadd.f32 %v3901_v44, %v3882_v42 }
 0x871   : > { %v3907_v27 = vadd.f32 %v3902_v24, %v3862_v18 }
 0x873   : > { %3908 = vadd.xlane.f32.xlu2 %v3907_v27 }
 0x8e6   : > { %v3909_v7 = vpop.xlane.xlu2 %3908 }
 0x8e7   : > { %v3910_v2 = vmul.f32 0.00390625, %v3909_v7 }
 0x8e9   : > { %3929 = vmatpush.msra.mxu3 %v3910_v2 }
 0x8ea   : > { %4214 = vmatmul.msk.f32.vlgmr.msra.gmra.mxu3 %vm8370_vm7, %v3906_v55 }
 0x96d   : > { %v3931_v38 = vpop.f32.mrf.mxu3 }
 0x96e   : > { %3936 = vperm.xlu0 %4579, %v3931_v38  }
 0x976   : > { %3986 = vperm.xlu0 %4579, %v3904_v16  }
 0x9e0   : > { %v3937_v19 = vpop.permute.xlu0 %3936 }
 0x9e1   : > { %v3939_v36 = vsub.f32 %v3862_v18, %v3937_v19  ;;  %v3940_v33 = vsub.f32 %v3902_v24, %v3937_v19 }
 0x9e3   : > { %v3941_v57 = vmul.f32 %v3939_v36, %v3939_v36  ;;  %v3942_v61 = vmul.f32 %v3940_v33, %v3940_v33 }
 0x9e5   : > { %v3943_v25 = vadd.f32 %v3942_v61, %v3941_v57 }
 0x9e7   : > { %3944 = vadd.xlane.f32.xlu1 %v3943_v25 }
 0x9e8   : > { %v3987_v60 = vpop.permute.xlu0 %3986 }
 0xa5a   : > { %v3945_v50 = vpop.xlane.xlu1 %3944 }
 0xa5b   : > { %v3946_v54 = vmul.f32 0.00390625, %v3945_v50 }
 0xa5d   : > { %3962 = vmatpush.msrb.mxu1 %v3946_v54 }
 0xa5e   : > { %4215 = vmatmul.msk.f32.vlgmr.msrb.gmra.mxu1 %vm8371_vm12, %v3906_v55 }
 0xadb   : > { %v3964_v59 = vpop.f32.mrf.mxu1 }
 0xadc   : > { %v3965_v43 = vadd.f32 1e-05, %v3964_v59 }
 0xade   : > { %4869 = vrsqrt.f32 %v3965_v43  ;;  %vm3973_vm13 = vweird.f32 %v3965_v43 }
 0xae4   : > { %v4870_v63 = vpop.eup %4869 }
 0xae5   : > { %v3968_v40 = vmul.f32 %v4870_v63, %v3965_v43  ;;  %vm3974_vm4 = vweird.f32 %v4870_v63 }
 0xae6   : > { %vm3975_vm14 = vmor %vm3973_vm13, %vm3974_vm4 }
 0xae7   : > { %v3969_v32 = vmul.f32 %v4870_v63, %v3968_v40 }
 0xae9   : > { %v3970_v17 = vmul.f32 0.5, %v3969_v32 }
 0xaeb   : > { %v3971_v58 = vsub.f32 1.5, %v3970_v17 }
 0xaed   : > { %v3972_v20 = vmul.f32 %v4870_v63, %v3971_v58 }
 0xaef   : > { %v3976_v49 = vsel %vm3975_vm14, %v4870_v63, %v3972_v20 }
 0xaf0   : > { %3979 = vperm.xlu0 %4579, %v3976_v49  }
 0xaf8   : > { %3993 = vperm.xlu0 %4579, %v3905_v35  }
 0xb62   : > { %v3980_v31 = vpop.permute.xlu0 %3979 }
 0xb63   : > { %v3982_v29 = vmul.f32 %v3980_v31, %v3939_v36  ;;  %v3983_v45 = vmul.f32 %v3980_v31, %v3940_v33 }
 0xb65   : > { %v3989_v5 = vmul.f32 %v3987_v60, %v3982_v29  ;;  %v3990_v28 = vmul.f32 %v3987_v60, %v3983_v45 }
 0xb6a   : > { %v3994_v26 = vpop.permute.xlu0 %3993 }
 0xb6b   : > { %v3996_v0 = vadd.f32 %v3994_v26, %v3989_v5  ;;  %v3997_v6 = vadd.f32 %v3994_v26, %v3990_v28 }
 0xb6d   : > { %4871 = vtanh.f32 %v3996_v0 }
 0xb6e   : > { %4873 = vtanh.f32 %v3997_v6 }
 0xb73   : > { %v4872_v39 = vpop.eup %4871 }
 0xb74   : > { %v4874_v23 = vpop.eup %4873  ;;  %4004 = vst [vmem:[%s633_s12] sm:$0xff] %v4872_v39 }
 0xb75   : > { %4005 = vst [vmem:[%s633_s12 + $0x8] sm:$0xff] %v4874_v23 }
 0xb76 PF: > { %s8374_s29 = sld [smem:[#allocation5_spill]] }
 0xb7c   : > { %s28_s24 = sadd.s32 1, %s8374_s29  }
 0xb7d   : > { %p25_p4 = scmp.ge.s32.totalorder %s28_s24, 4  }
 0xb7f   :  { %27 = sbr.rel (!%p25_p4) target bundleno = 19 (0x13), region = 143 }

</bundles_post_ra>
